<compile_context>
chip_gen: v7x
topology: tpu7x:2x2x1
jax: 0.10.0
libtpu: 0.0.40
codegen_flags: <defaults>
</compile_context>

<pallas_src>
import functools

import jax
import jax.numpy as jnp
from jax.experimental import pallas as pl
from jax.experimental.pallas import tpu as pltpu

_LANE = 128

# Per-generation VMEM scoped limit: ~3/4 of physical capacity, capped at 100 MiB
# (v5e/v6e 128 MiB parts -> 96 MiB; v7x 64 MiB -> 48 MiB). Conservative fallback.
try:
    _VMEM_LIMIT_BYTES = min(
        int(pltpu.get_tpu_info().vmem_capacity_bytes) * 3 // 4, 100 * 1024 * 1024)
except Exception:  # defensive: query unavailable -> proven-safe default
    _VMEM_LIMIT_BYTES = 40 * 1024 * 1024

_CONV_TM_MAX = 512   # conv matmul row-tile cap (multiple of 8)
_FC_TM_MAX = 256     # FC row-tile cap (rows == batch)


def _row_tile(m, tm_max):
    """Row-tile choice: cap at tm_max; otherwise split M evenly in two
    multiple-of-8 blocks so ("parallel",) can use both v7x TensorCores
    (no-op loop on single-TC v5e/v6e); else one full-M block."""
    if m > tm_max:
        return tm_max
    half = m // 2
    if half >= 8 and half % 8 == 0 and 2 * half == m:
        return half
    return m


# ------------------------------ Pallas kernels ------------------------------ #

def _matmul_bias_kernel(x_ref, w_ref, b_ref, o_ref, *, relu):
    x = x_ref[...]
    if x.dtype != w_ref.dtype:          # cast in-kernel; no separate XLA pass
        x = x.astype(w_ref.dtype)
    acc = jnp.dot(x, w_ref[...], preferred_element_type=jnp.float32)
    acc = acc + b_ref[...]
    if relu:
        acc = jnp.maximum(acc, 0.0)
    o_ref[...] = acc.astype(o_ref.dtype)


def matmul_bias_act(x, w, b, *, relu, tm_max=_CONV_TM_MAX, out_dtype=None):
    """y = [relu](x @ w + b). M-tiled grid; w/b are VMEM-resident across M steps."""
    M, K = x.shape
    K2, N = w.shape
    assert K == K2, (K, K2)
    tm = _row_tile(M, tm_max)
    grid = (pl.cdiv(M, tm),)
    out_dtype = w.dtype if out_dtype is None else out_dtype
    kernel = functools.partial(_matmul_bias_kernel, relu=relu)
    return pl.pallas_call(
        kernel,
        out_shape=jax.ShapeDtypeStruct((M, N), out_dtype),
        grid=grid,
        in_specs=[
            pl.BlockSpec((tm, K), lambda i: (i, 0)),
            pl.BlockSpec((K, N), lambda i: (0, 0)),   # resident weights
            pl.BlockSpec((1, N), lambda i: (0, 0)),   # resident bias
        ],
        out_specs=pl.BlockSpec((tm, N), lambda i: (i, 0)),
        compiler_params=pltpu.CompilerParams(
            dimension_semantics=("parallel",),
            vmem_limit_bytes=_VMEM_LIMIT_BYTES),
    )(x, w, b)


def _fused_fc_kernel(x_ref, w1_ref, b1_ref, w2_ref, b2_ref, w3_ref, b3_ref,
                     w4_ref, b4_ref, o_ref):
    cd = w1_ref.dtype                    # matmul input dtype; accumulation is f32
    x = x_ref[...]
    if x.dtype != cd:
        x = x.astype(cd)
    h = jnp.dot(x, w1_ref[...], preferred_element_type=jnp.float32)
    h = jnp.maximum(h + b1_ref[...], 0.0)
    h = jnp.dot(h.astype(cd), w2_ref[...], preferred_element_type=jnp.float32)
    h = jnp.maximum(h + b2_ref[...], 0.0)
    h = jnp.dot(h.astype(cd), w3_ref[...], preferred_element_type=jnp.float32)
    h = jnp.maximum(h + b3_ref[...], 0.0)
    h = jnp.dot(h.astype(cd), w4_ref[...], preferred_element_type=jnp.float32)
    o_ref[...] = (h + b4_ref[...]).astype(o_ref.dtype)


def fused_fc_stack(x, w1, b1, w2, b2, w3, b3, w4, b4, *, tm_max=_FC_TM_MAX):
    """relu(relu(relu(x@w1+b1)@w2+b2)@w3+b3)@w4+b4 in ONE pallas_call.

    All weights/biases are VMEM-resident; the (TM,512)/(TM,256)/(TM,128)
    intermediates never touch HBM."""
    M, K = x.shape
    n1, n2, n3, n4 = w1.shape[1], w2.shape[1], w3.shape[1], w4.shape[1]
    tm = _row_tile(M, tm_max)
    grid = (pl.cdiv(M, tm),)
    res = lambda i: (0, 0)   # resident operands: block never changes
    return pl.pallas_call(
        _fused_fc_kernel,
        out_shape=jax.ShapeDtypeStruct((M, n4), jnp.float32),
        grid=grid,
        in_specs=[
            pl.BlockSpec((tm, K), lambda i: (i, 0)),
            pl.BlockSpec((K, n1), res), pl.BlockSpec((1, n1), res),
            pl.BlockSpec((n1, n2), res), pl.BlockSpec((1, n2), res),
            pl.BlockSpec((n2, n3), res), pl.BlockSpec((1, n3), res),
            pl.BlockSpec((n3, n4), res), pl.BlockSpec((1, n4), res),
        ],
        out_specs=pl.BlockSpec((tm, n4), lambda i: (i, 0)),
        compiler_params=pltpu.CompilerParams(
            dimension_semantics=("parallel",),
            vmem_limit_bytes=_VMEM_LIMIT_BYTES),
    )(x, w1, b1, w2, b2, w3, b3, w4, b4)


# ------------------------------ conv as matmul ------------------------------ #

def _im2col_nchw(x, kh, kw, stride, pad):
    """x: (B, C, H, W) -> patch rows (B*Ho*Wo, kh*kw*C), columns ordered (kh, kw, c).
    The NCHW -> (h, w, c) relayout is folded into this gather (one XLA fusion)
    instead of a separate per-forward transpose of the full activation."""
    B, C, H, W = x.shape
    xp = jnp.pad(x, ((0, 0), (0, 0), (pad, pad), (pad, pad)))
    Ho = (H + 2 * pad - kh) // stride + 1
    Wo = (W + 2 * pad - kw) // stride + 1
    cols = []
    for i in range(kh):
        for j in range(kw):
            cols.append(xp[:, :, i:i + stride * Ho:stride, j:j + stride * Wo:stride])
    p = jnp.stack(cols, axis=1)                     # (B, kh*kw, C, Ho, Wo)
    p = jnp.transpose(p, (0, 3, 4, 1, 2))           # (B, Ho, Wo, kh*kw, C)
    return p.reshape(B * Ho * Wo, kh * kw * C), Ho, Wo


def _im2col_nhwc(x, kh, kw, stride, pad):
    """x: (B, H, W, C) -> patch rows (B*Ho*Wo, kh*kw*C), columns ordered (kh, kw, c)."""
    B, H, W, C = x.shape
    xp = jnp.pad(x, ((0, 0), (pad, pad), (pad, pad), (0, 0)))
    Ho = (H + 2 * pad - kh) // stride + 1
    Wo = (W + 2 * pad - kw) // stride + 1
    cols = []
    for i in range(kh):
        for j in range(kw):
            cols.append(xp[:, i:i + stride * Ho:stride, j:j + stride * Wo:stride, :])
    p = jnp.stack(cols, axis=3)                     # (B, Ho, Wo, kh*kw, C)
    return p.reshape(B * Ho * Wo, kh * kw * C), Ho, Wo


def conv2d_relu_nchw_in(x_nchw, w_mat, b_row, *, kh, kw, stride, pad):
    """Conv+relu as one Pallas matmul; input NCHW, output NHWC with natural Cout."""
    B = x_nchw.shape[0]
    patches, Ho, Wo = _im2col_nchw(x_nchw, kh, kw, stride, pad)
    y = matmul_bias_act(patches, w_mat, b_row, relu=True)
    return y.reshape(B, Ho, Wo, w_mat.shape[1])


def conv2d_relu_nhwc_in(x_nhwc, w_mat, b_row, *, kh, kw, stride, pad):
    """Conv+relu as one Pallas matmul; input/output NHWC with natural Cout."""
    B = x_nhwc.shape[0]
    patches, Ho, Wo = _im2col_nhwc(x_nhwc, kh, kw, stride, pad)
    y = matmul_bias_act(patches, w_mat, b_row, relu=True)
    return y.reshape(B, Ho, Wo, w_mat.shape[1])


# -------------------------- parameters & weight prep ------------------------ #

def init_params(key, action_size):
    """PyTorch-style uniform(-1/sqrt(fan_in), 1/sqrt(fan_in)) init.
    FC weights are stored as (in, out); conv weights as (Cout, Cin, kh, kw)."""
    keys = jax.random.split(key, 12)

    def u(k, shape, fan_in):
        bound = 1.0 / float(fan_in) ** 0.5
        return jax.random.uniform(k, shape, jnp.float32, -bound, bound)

    return {
        "conv1_w": u(keys[0], (36, 20, 4, 4), 20 * 4 * 4),
        "conv1_b": u(keys[1], (36,), 20 * 4 * 4),
        "conv2_w": u(keys[2], (48, 36, 4, 4), 36 * 4 * 4),
        "conv2_b": u(keys[3], (48,), 36 * 4 * 4),
        "ffc1_w":  u(keys[4], (1728, 512), 1728),
        "ffc1_b":  u(keys[5], (512,), 1728),
        "ffc2_w":  u(keys[6], (512, 256), 512),
        "ffc2_b":  u(keys[7], (256,), 512),
        "fc1_w":   u(keys[8], (256, 64), 256),
        "fc1_b":   u(keys[9], (64,), 256),
        "fcv_w":   u(keys[10], (64, action_size), 64),
        "fcv_b":   u(keys[11], (action_size,), 64),
    }


def prepare_params(params, compute_dtype=jnp.float32):
    """One-time weight prep:
      * conv weights flattened to im2col layout, rows ordered (kh, kw, cin),
        NATURAL Cout (36 / 48) — no zero-channel padding, so conv2 K=576 and
        ffc1 K=1728.
      * the PyTorch NCHW flatten -> (h, w, c) row permutation folded into ffc1.
      * fc1's 64-wide hidden and the action dim zero-padded to 128 lanes
        (exactly-zero weights/biases stay numerically inert; Q padded lanes are
        sliced off outside the kernel).
    compute_dtype=jnp.bfloat16 halves weight DMA / VMEM on v6e/v7x; f32
    accumulation is preserved inside the kernels."""
    cd = compute_dtype
    f32 = jnp.float32
    assert params["fcv_w"].shape[1] <= _LANE, "action_size must be <= 128"

    def pad_to(a, rows=None, cols=None):
        r = 0 if rows is None else rows - a.shape[0]
        c = 0 if cols is None else cols - a.shape[1]
        return jnp.pad(a, ((0, r), (0, c)))

    # conv1: (36, 20, 4, 4) -> (4, 4, 20, 36) -> (320, 36)
    w1 = jnp.transpose(params["conv1_w"], (2, 3, 1, 0)).reshape(4 * 4 * 20, 36)
    # conv2: (48, 36, 4, 4) -> (4, 4, 36, 48) -> (576, 48)
    w2 = jnp.transpose(params["conv2_w"], (2, 3, 1, 0)).reshape(4 * 4 * 36, 48)
    # ffc1: PyTorch NCHW flatten row index is c*36 + h*6 + w; permute rows to the
    # kernel activation order (h*6 + w)*48 + c.
    wf1 = params["ffc1_w"].reshape(48, 6, 6, 512)
    wf1 = jnp.transpose(wf1, (1, 2, 0, 3)).reshape(6 * 6 * 48, 512)
    # fc1 / fc_val: lane-pad the 64 hidden and action_size to 128 with zeros.
    wf3 = pad_to(params["fc1_w"], cols=_LANE)                       # (256, 128)
    bf3 = pad_to(params["fc1_b"].reshape(1, -1), cols=_LANE)        # (1, 128)
    wf4 = pad_to(params["fcv_w"], rows=_LANE, cols=_LANE)           # (128, 128)
    bf4 = pad_to(params["fcv_b"].reshape(1, -1), cols=_LANE)        # (1, 128)

    return {
        "conv1_w": w1.astype(cd),
        "conv1_b": params["conv1_b"].reshape(1, 36).astype(f32),
        "conv2_w": w2.astype(cd),
        "conv2_b": params["conv2_b"].reshape(1, 48).astype(f32),
        "ffc1_w": wf1.astype(cd),
        "ffc1_b": params["ffc1_b"].reshape(1, 512).astype(f32),
        "ffc2_w": params["ffc2_w"].astype(cd),
        "ffc2_b": params["ffc2_b"].reshape(1, 256).astype(f32),
        "fc1_w": wf3.astype(cd),
        "fc1_b": bf3.astype(f32),
        "fcv_w": wf4.astype(cd),
        "fcv_b": bf4.astype(f32),
    }


# --------------------------------- forward ---------------------------------- #

def network_obs_forward(prepped, state, action_size):
    """state: (B, 20, 24, 24) NCHW -> Q-values (B, action_size)."""
    x = state.astype(jnp.float32)                      # matches PyTorch .float()
    x = conv2d_relu_nchw_in(x, prepped["conv1_w"], prepped["conv1_b"],
                            kh=4, kw=4, stride=2, pad=1)   # (B, 12, 12, 36) NHWC
    x = conv2d_relu_nhwc_in(x, prepped["conv2_w"], prepped["conv2_b"],
                            kh=4, kw=4, stride=2, pad=1)   # (B, 6, 6, 48) NHWC
    B = x.shape[0]
    x = x.reshape(B, 6 * 6 * 48)                       # contiguous (h, w, c) flatten
    q = fused_fc_stack(
        x,
        prepped["ffc1_w"], prepped["ffc1_b"],
        prepped["ffc2_w"], prepped["ffc2_b"],
        prepped["fc1_w"], prepped["fc1_b"],
        prepped["fcv_w"], prepped["fcv_b"])            # (B, 128) lane-dense, f32
    # TODO(synk): pfrl.action_value.DiscreteActionValue is a Python wrapper
    # (argmax/max helpers) with no kernel equivalent — return raw Q-values.
    return q[:, :action_size]


# -------------------------- plain-JAX reference (check) --------------------- #

def _reference_forward(params, state):
    hp = jax.lax.Precision.HIGHEST
    x = state.astype(jnp.float32)

    def conv(x, w, b):
        y = jax.lax.conv_general_dilated(
            x, w, window_strides=(2, 2), padding=((1, 1), (1, 1)),
            dimension_numbers=("NCHW", "OIHW", "NCHW"), precision=hp)
        return jnp.maximum(y + b[None, :, None, None], 0.0)

    x = conv(x, params["conv1_w"], params["conv1_b"])
    x = conv(x, params["conv2_w"], params["conv2_b"])
    x = x.reshape(x.shape[0], -1)
    x = jnp.maximum(jnp.dot(x, params["ffc1_w"], precision=hp) + params["ffc1_b"], 0.0)
    x = jnp.maximum(jnp.dot(x, params["ffc2_w"], precision=hp) + params["ffc2_b"], 0.0)
    x = jnp.maximum(jnp.dot(x, params["fc1_w"], precision=hp) + params["fc1_b"], 0.0)
    return jnp.dot(x, params["fcv_w"], precision=hp) + params["fcv_b"]


# ----------------------------------- main ------------------------------------ #

if __name__ == "__main__":
    action_size = 6
    key = jax.random.PRNGKey(0)
    pkey, xkey = jax.random.split(key)

    params = init_params(pkey, action_size)
    # Input spatial must be 24x24 so that 48*6*6 == 1728 (frame_fc1 input size).
    state = jax.random.normal(xkey, (2, 20, 24, 24), dtype=jnp.float32)

    prepped = prepare_params(params)            # one-time weight prep (f32 compute)
    fwd = jax.jit(network_obs_forward, static_argnums=2)
    q = fwd(prepped, state, action_size)
    jax.block_until_ready(q)

    assert q.shape == (2, action_size), q.shape
    assert q.dtype == jnp.float32

    # Correctness cross-check against a plain-JAX implementation of the module.
    q_ref = _reference_forward(params, state)
    max_err = float(jnp.max(jnp.abs(q - q_ref)))
    assert jnp.allclose(q, q_ref, atol=2e-2, rtol=2e-2), max_err

    print("KERNEL_OK")
</pallas_src>

<mosaic_0001>
module attributes {stable_mosaic.version = 11 : i64} {
  func.func @_matmul_bias_kernel(%arg0: i32, %arg1: memref<144x320xf32, #tpu.memory_space<vmem>>, %arg2: memref<320x36xf32, #tpu.memory_space<vmem>>, %arg3: memref<1x36xf32, #tpu.memory_space<vmem>>, %arg4: memref<144x36xf32, #tpu.memory_space<vmem>>) attributes {dimension_semantics = [#tpu.dimension_semantics<parallel>], iteration_bounds = array<i64: 2>, scalar_prefetch = 0 : i64, scratch_operands = 0 : i64, tpu.core_type = #tpu.core_type<tc>, window_params = [{transform_indices = @transform_0, window_bounds = array<i64: 144, 320>}, {pipeline_mode = #tpu.pipeline_mode<synchronous>, transform_indices = @transform_1, window_bounds = array<i64: 320, 36>}, {pipeline_mode = #tpu.pipeline_mode<synchronous>, transform_indices = @transform_2, window_bounds = array<i64: 1, 36>}, {transform_indices = @transform_3, window_bounds = array<i64: 144, 36>}]} {
    %c0 = arith.constant 0 : index
    %c0_0 = arith.constant 0 : index
    %0 = vector.load %arg1[%c0, %c0_0] : memref<144x320xf32, #tpu.memory_space<vmem>>, vector<144x320xf32>
    %c0_1 = arith.constant 0 : index
    %c0_2 = arith.constant 0 : index
    %1 = vector.load %arg2[%c0_1, %c0_2] : memref<320x36xf32, #tpu.memory_space<vmem>>, vector<320x36xf32>
    %cst = arith.constant dense<0.000000e+00> : vector<144x36xf32>
    %2 = tpu.matmul %0, %1, %cst {dimension_numbers = #tpu.dot_dimension_numbers<[1], [0], [0], [1], [0, 0, 1, 1], [], []>} : vector<144x320xf32>, vector<320x36xf32>, vector<144x36xf32> -> vector<144x36xf32>
    %c0_3 = arith.constant 0 : index
    %c0_4 = arith.constant 0 : index
    %3 = vector.load %arg3[%c0_3, %c0_4] : memref<1x36xf32, #tpu.memory_space<vmem>>, vector<1x36xf32>
    %4 = vector.broadcast %3 : vector<1x36xf32> to vector<144x36xf32>
    %5 = arith.addf %2, %4 : vector<144x36xf32>
    %cst_5 = arith.constant 0.000000e+00 : f32
    %6 = vector.broadcast %cst_5 : f32 to vector<144x36xf32>
    %7 = arith.maximumf %5, %6 : vector<144x36xf32>
    %c0_6 = arith.constant 0 : index
    %c0_7 = arith.constant 0 : index
    %8 = vector.load %arg4[%c0_6, %c0_7] : memref<144x36xf32, #tpu.memory_space<vmem>>, vector<144x36xf32>
    tpu.vector_store %arg4[%c0_6, %c0_7], %7 {strides = array<i32>} : memref<144x36xf32, #tpu.memory_space<vmem>>, vector<144x36xf32>,
    return
  }
  func.func @transform_0(%arg0: i32) -> (i32, i32) {
    %c0_i32 = arith.constant 0 : i32
    %c0_i32_0 = arith.constant 0 : i32
    return %arg0, %c0_i32 : i32, i32
  }
  func.func @transform_1(%arg0: i32) -> (i32, i32) {
    %c0_i32 = arith.constant 0 : i32
    %c0_i32_0 = arith.constant 0 : i32
    %c0_i32_1 = arith.constant 0 : i32
    return %c0_i32, %c0_i32_0 : i32, i32
  }
  func.func @transform_2(%arg0: i32) -> (i32, i32) {
    %c0_i32 = arith.constant 0 : i32
    %c0_i32_0 = arith.constant 0 : i32
    %c0_i32_1 = arith.constant 0 : i32
    return %c0_i32, %c0_i32_0 : i32, i32
  }
  func.func @transform_3(%arg0: i32) -> (i32, i32) {
    %c0_i32 = arith.constant 0 : i32
    %c0_i32_0 = arith.constant 0 : i32
    return %arg0, %c0_i32 : i32, i32
  }
}

module attributes {stable_mosaic.version = 11 : i64} {
  func.func @_matmul_bias_kernel(%arg0: i32, %arg1: memref<72x576xf32, #tpu.memory_space<vmem>>, %arg2: memref<576x48xf32, #tpu.memory_space<vmem>>, %arg3: memref<1x48xf32, #tpu.memory_space<vmem>>, %arg4: memref<72x48xf32, #tpu.memory_space<vmem>>) attributes {dimension_semantics = [#tpu.dimension_semantics<parallel>], iteration_bounds = array<i64: 1>, scalar_prefetch = 0 : i64, scratch_operands = 0 : i64, tpu.core_type = #tpu.core_type<tc>, window_params = [{transform_indices = @transform_0, window_bounds = array<i64: 72, 576>}, {pipeline_mode = #tpu.pipeline_mode<synchronous>, transform_indices = @transform_1, window_bounds = array<i64: 576, 48>}, {pipeline_mode = #tpu.pipeline_mode<synchronous>, transform_indices = @transform_2, window_bounds = array<i64: 1, 48>}, {transform_indices = @transform_3, window_bounds = array<i64: 72, 48>}]} {
    %c0 = arith.constant 0 : index
    %c0_0 = arith.constant 0 : index
    %0 = vector.load %arg1[%c0, %c0_0] : memref<72x576xf32, #tpu.memory_space<vmem>>, vector<72x576xf32>
    %c0_1 = arith.constant 0 : index
    %c0_2 = arith.constant 0 : index
    %1 = vector.load %arg2[%c0_1, %c0_2] : memref<576x48xf32, #tpu.memory_space<vmem>>, vector<576x48xf32>
    %cst = arith.constant dense<0.000000e+00> : vector<72x48xf32>
    %2 = tpu.matmul %0, %1, %cst {dimension_numbers = #tpu.dot_dimension_numbers<[1], [0], [0], [1], [0, 0, 1, 1], [], []>} : vector<72x576xf32>, vector<576x48xf32>, vector<72x48xf32> -> vector<72x48xf32>
    %c0_3 = arith.constant 0 : index
    %c0_4 = arith.constant 0 : index
    %3 = vector.load %arg3[%c0_3, %c0_4] : memref<1x48xf32, #tpu.memory_space<vmem>>, vector<1x48xf32>
    %4 = vector.broadcast %3 : vector<1x48xf32> to vector<72x48xf32>
    %5 = arith.addf %2, %4 : vector<72x48xf32>
    %cst_5 = arith.constant 0.000000e+00 : f32
    %6 = vector.broadcast %cst_5 : f32 to vector<72x48xf32>
    %7 = arith.maximumf %5, %6 : vector<72x48xf32>
    %c0_6 = arith.constant 0 : index
    %c0_7 = arith.constant 0 : index
    %8 = vector.load %arg4[%c0_6, %c0_7] : memref<72x48xf32, #tpu.memory_space<vmem>>, vector<72x48xf32>
    tpu.vector_store %arg4[%c0_6, %c0_7], %7 {strides = array<i32>} : memref<72x48xf32, #tpu.memory_space<vmem>>, vector<72x48xf32>,
    return
  }
  func.func @transform_0(%arg0: i32) -> (i32, i32) {
    %c0_i32 = arith.constant 0 : i32
    %c0_i32_0 = arith.constant 0 : i32
    return %arg0, %c0_i32 : i32, i32
  }
  func.func @transform_1(%arg0: i32) -> (i32, i32) {
    %c0_i32 = arith.constant 0 : i32
    %c0_i32_0 = arith.constant 0 : i32
    %c0_i32_1 = arith.constant 0 : i32
    return %c0_i32, %c0_i32_0 : i32, i32
  }
  func.func @transform_2(%arg0: i32) -> (i32, i32) {
    %c0_i32 = arith.constant 0 : i32
    %c0_i32_0 = arith.constant 0 : i32
    %c0_i32_1 = arith.constant 0 : i32
    return %c0_i32, %c0_i32_0 : i32, i32
  }
  func.func @transform_3(%arg0: i32) -> (i32, i32) {
    %c0_i32 = arith.constant 0 : i32
    %c0_i32_0 = arith.constant 0 : i32
    return %arg0, %c0_i32 : i32, i32
  }
}

module attributes {stable_mosaic.version = 11 : i64} {
  func.func @_fused_fc_kernel(%arg0: i32, %arg1: memref<2x1728xf32, #tpu.memory_space<vmem>>, %arg2: memref<1728x512xf32, #tpu.memory_space<vmem>>, %arg3: memref<1x512xf32, #tpu.memory_space<vmem>>, %arg4: memref<512x256xf32, #tpu.memory_space<vmem>>, %arg5: memref<1x256xf32, #tpu.memory_space<vmem>>, %arg6: memref<256x128xf32, #tpu.memory_space<vmem>>, %arg7: memref<1x128xf32, #tpu.memory_space<vmem>>, %arg8: memref<128x128xf32, #tpu.memory_space<vmem>>, %arg9: memref<1x128xf32, #tpu.memory_space<vmem>>, %arg10: memref<2x128xf32, #tpu.memory_space<vmem>>) attributes {dimension_semantics = [#tpu.dimension_semantics<parallel>], iteration_bounds = array<i64: 1>, scalar_prefetch = 0 : i64, scratch_operands = 0 : i64, tpu.core_type = #tpu.core_type<tc>, window_params = [{transform_indices = @transform_0, window_bounds = array<i64: 2, 1728>}, {pipeline_mode = #tpu.pipeline_mode<synchronous>, transform_indices = @transform_1, window_bounds = array<i64: 1728, 512>}, {pipeline_mode = #tpu.pipeline_mode<synchronous>, transform_indices = @transform_2, window_bounds = array<i64: 1, 512>}, {pipeline_mode = #tpu.pipeline_mode<synchronous>, transform_indices = @transform_3, window_bounds = array<i64: 512, 256>}, {pipeline_mode = #tpu.pipeline_mode<synchronous>, transform_indices = @transform_4, window_bounds = array<i64: 1, 256>}, {pipeline_mode = #tpu.pipeline_mode<synchronous>, transform_indices = @transform_5, window_bounds = array<i64: 256, 128>}, {pipeline_mode = #tpu.pipeline_mode<synchronous>, transform_indices = @transform_6, window_bounds = array<i64: 1, 128>}, {pipeline_mode = #tpu.pipeline_mode<synchronous>, transform_indices = @transform_7, window_bounds = array<i64: 128, 128>}, {pipeline_mode = #tpu.pipeline_mode<synchronous>, transform_indices = @transform_8, window_bounds = array<i64: 1, 128>}, {transform_indices = @transform_9, window_bounds = array<i64: 2, 128>}]} {
    %c0 = arith.constant 0 : index
    %c0_0 = arith.constant 0 : index
    %0 = vector.load %arg1[%c0, %c0_0] : memref<2x1728xf32, #tpu.memory_space<vmem>>, vector<2x1728xf32>
    %c0_1 = arith.constant 0 : index
    %c0_2 = arith.constant 0 : index
    %1 = vector.load %arg2[%c0_1, %c0_2] : memref<1728x512xf32, #tpu.memory_space<vmem>>, vector<1728x512xf32>
    %cst = arith.constant dense<0.000000e+00> : vector<2x512xf32>
    %2 = tpu.matmul %0, %1, %cst {dimension_numbers = #tpu.dot_dimension_numbers<[1], [0], [0], [1], [0, 0, 1, 1], [], []>} : vector<2x1728xf32>, vector<1728x512xf32>, vector<2x512xf32> -> vector<2x512xf32>
    %c0_3 = arith.constant 0 : index
    %c0_4 = arith.constant 0 : index
    %3 = vector.load %arg3[%c0_3, %c0_4] : memref<1x512xf32, #tpu.memory_space<vmem>>, vector<1x512xf32>
    %4 = vector.broadcast %3 : vector<1x512xf32> to vector<2x512xf32>
    %5 = arith.addf %2, %4 : vector<2x512xf32>
    %cst_5 = arith.constant 0.000000e+00 : f32
    %6 = vector.broadcast %cst_5 : f32 to vector<2x512xf32>
    %7 = arith.maximumf %5, %6 : vector<2x512xf32>
    %c0_6 = arith.constant 0 : index
    %c0_7 = arith.constant 0 : index
    %8 = vector.load %arg4[%c0_6, %c0_7] : memref<512x256xf32, #tpu.memory_space<vmem>>, vector<512x256xf32>
    %cst_8 = arith.constant dense<0.000000e+00> : vector<2x256xf32>
    %9 = tpu.matmul %7, %8, %cst_8 {dimension_numbers = #tpu.dot_dimension_numbers<[1], [0], [0], [1], [0, 0, 1, 1], [], []>} : vector<2x512xf32>, vector<512x256xf32>, vector<2x256xf32> -> vector<2x256xf32>
    %c0_9 = arith.constant 0 : index
    %c0_10 = arith.constant 0 : index
    %10 = vector.load %arg5[%c0_9, %c0_10] : memref<1x256xf32, #tpu.memory_space<vmem>>, vector<1x256xf32>
    %11 = vector.broadcast %10 : vector<1x256xf32> to vector<2x256xf32>
    %12 = arith.addf %9, %11 : vector<2x256xf32>
    %cst_11 = arith.constant 0.000000e+00 : f32
    %13 = vector.broadcast %cst_11 : f32 to vector<2x256xf32>
    %14 = arith.maximumf %12, %13 : vector<2x256xf32>
    %c0_12 = arith.constant 0 : index
    %c0_13 = arith.constant 0 : index
    %15 = vector.load %arg6[%c0_12, %c0_13] : memref<256x128xf32, #tpu.memory_space<vmem>>, vector<256x128xf32>
    %cst_14 = arith.constant dense<0.000000e+00> : vector<2x128xf32>
    %16 = tpu.matmul %14, %15, %cst_14 {dimension_numbers = #tpu.dot_dimension_numbers<[1], [0], [0], [1], [0, 0, 1, 1], [], []>} : vector<2x256xf32>, vector<256x128xf32>, vector<2x128xf32> -> vector<2x128xf32>
    %c0_15 = arith.constant 0 : index
    %c0_16 = arith.constant 0 : index
    %17 = vector.load %arg7[%c0_15, %c0_16] : memref<1x128xf32, #tpu.memory_space<vmem>>, vector<1x128xf32>
    %18 = vector.broadcast %17 : vector<1x128xf32> to vector<2x128xf32>
    %19 = arith.addf %16, %18 : vector<2x128xf32>
    %cst_17 = arith.constant 0.000000e+00 : f32
    %20 = vector.broadcast %cst_17 : f32 to vector<2x128xf32>
    %21 = arith.maximumf %19, %20 : vector<2x128xf32>
    %c0_18 = arith.constant 0 : index
    %c0_19 = arith.constant 0 : index
    %22 = vector.load %arg8[%c0_18, %c0_19] : memref<128x128xf32, #tpu.memory_space<vmem>>, vector<128x128xf32>
    %cst_20 = arith.constant dense<0.000000e+00> : vector<2x128xf32>
    %23 = tpu.matmul %21, %22, %cst_20 {dimension_numbers = #tpu.dot_dimension_numbers<[1], [0], [0], [1], [0, 0, 1, 1], [], []>} : vector<2x128xf32>, vector<128x128xf32>, vector<2x128xf32> -> vector<2x128xf32>
    %c0_21 = arith.constant 0 : index
    %c0_22 = arith.constant 0 : index
    %24 = vector.load %arg9[%c0_21, %c0_22] : memref<1x128xf32, #tpu.memory_space<vmem>>, vector<1x128xf32>
    %25 = vector.broadcast %24 : vector<1x128xf32> to vector<2x128xf32>
    %26 = arith.addf %23, %25 : vector<2x128xf32>
    %c0_23 = arith.constant 0 : index
    %c0_24 = arith.constant 0 : index
    %27 = vector.load %arg10[%c0_23, %c0_24] : memref<2x128xf32, #tpu.memory_space<vmem>>, vector<2x128xf32>
    tpu.vector_store %arg10[%c0_23, %c0_24], %26 {strides = array<i32>} : memref<2x128xf32, #tpu.memory_space<vmem>>, vector<2x128xf32>,
    return
  }
  func.func @transform_0(%arg0: i32) -> (i32, i32) {
    %c0_i32 = arith.constant 0 : i32
    %c0_i32_0 = arith.constant 0 : i32
    return %arg0, %c0_i32 : i32, i32
  }
  func.func @transform_1(%arg0: i32) -> (i32, i32) {
    %c0_i32 = arith.constant 0 : i32
    %c0_i32_0 = arith.constant 0 : i32
    %c0_i32_1 = arith.constant 0 : i32
    return %c0_i32, %c0_i32_0 : i32, i32
  }
  func.func @transform_2(%arg0: i32) -> (i32, i32) {
    %c0_i32 = arith.constant 0 : i32
    %c0_i32_0 = arith.constant 0 : i32
    %c0_i32_1 = arith.constant 0 : i32
    return %c0_i32, %c0_i32_0 : i32, i32
  }
  func.func @transform_3(%arg0: i32) -> (i32, i32) {
    %c0_i32 = arith.constant 0 : i32
    %c0_i32_0 = arith.constant 0 : i32
    %c0_i32_1 = arith.constant 0 : i32
    return %c0_i32, %c0_i32_0 : i32, i32
  }
  func.func @transform_4(%arg0: i32) -> (i32, i32) {
    %c0_i32 = arith.constant 0 : i32
    %c0_i32_0 = arith.constant 0 : i32
    %c0_i32_1 = arith.constant 0 : i32
    return %c0_i32, %c0_i32_0 : i32, i32
  }
  func.func @transform_5(%arg0: i32) -> (i32, i32) {
    %c0_i32 = arith.constant 0 : i32
    %c0_i32_0 = arith.constant 0 : i32
    %c0_i32_1 = arith.constant 0 : i32
    return %c0_i32, %c0_i32_0 : i32, i32
  }
  func.func @transform_6(%arg0: i32) -> (i32, i32) {
    %c0_i32 = arith.constant 0 : i32
    %c0_i32_0 = arith.constant 0 : i32
    %c0_i32_1 = arith.constant 0 : i32
    return %c0_i32, %c0_i32_0 : i32, i32
  }
  func.func @transform_7(%arg0: i32) -> (i32, i32) {
    %c0_i32 = arith.constant 0 : i32
    %c0_i32_0 = arith.constant 0 : i32
    %c0_i32_1 = arith.constant 0 : i32
    return %c0_i32, %c0_i32_0 : i32, i32
  }
  func.func @transform_8(%arg0: i32) -> (i32, i32) {
    %c0_i32 = arith.constant 0 : i32
    %c0_i32_0 = arith.constant 0 : i32
    %c0_i32_1 = arith.constant 0 : i32
    return %c0_i32, %c0_i32_0 : i32, i32
  }
  func.func @transform_9(%arg0: i32) -> (i32, i32) {
    %c0_i32 = arith.constant 0 : i32
    %c0_i32_0 = arith.constant 0 : i32
    return %arg0, %c0_i32 : i32, i32
  }
}

</mosaic_0001>

<bundles_post_ra>
// kernel: network_obs_forward.3
= control target key start
LH: loop header
LB: loop body
LE: loop exit
PB: predicated region body
PF: predicated region fallthrough
CT: control target
= control target key end

     0   :  { %s968_s12 = smov 0   ;;  %s1288_s0 = inlined_call_operand.vmem [shape: f32[288,320], index: 0, kind: input, shape index: {}]   ;;  %s1289_s1 = inlined_call_operand.vmem [shape: f32[320,36], index: 1, kind: input, shape index: {}]   ;;  %s1290_s2 = inlined_call_operand.vmem [shape: f32[1,36], index: 2, kind: input, shape index: {}]   ;;  %s1291_s3 = inlined_call_operand.vmem [shape: f32[288,36], index: 3, kind: output, shape index: {}]  }
   0x1 LB: > { %s736_s13 = sadd.s32 4294967295, %s945_s12   ;;  %p740_p0 = scmp.ge.s32.totalorder %s945_s12, 1  ;;  %s945_s12 = sphi %s968_s12, %s13_s12  }
   0x2   : > { %p139_p1 = scmp.lt.s32.totalorder %s945_s12, 3 }
   0x4   : > { %p140_p2 = pnand %p740_p0, %p139_p1 }
   0x5   : > { %v231_v0 = vld [vmem:[%s1289_s1] sm:$0xff] (!%p140_p2)  ;;  %v232_v1 = vld [vmem:[%s1289_s1 + $0x8] sm:$0xff] (!%p140_p2)  ;;  %v233_v2 = vld [vmem:[%s1289_s1 + $0x10] sm:$0xff] (!%p140_p2)  ;;  %s164_s20 = smul.u32 (!%p140_p2), 18, %s736_s13  ;;  %v947_v3 = vmov (!%p140_p2), 0.0|0.0   ;;  %vm278_vm0 = vcmask (!%p140_p2), 523264  }
   0x6   : > { %143 = sbr.rel (%p140_p2) target bundleno = 342 (0x156), region = 32  ;;  %833 = vmatprep.subr.bf16.mxu0 (!%p140_p2), %v947_v3  ;;  %897 = vmatprep.subr.bf16.mxu1 (!%p140_p2), %v947_v3  ;;  %v834_v4 = vpack.c.bf16 (!%p140_p2), %v232_v1, %v231_v0  ;;  %v234_v5 = vld [vmem:[%s1289_s1 + $0x18] sm:$0xff] (!%p140_p2)  ;;  %v235_v7 = vld [vmem:[%s1289_s1 + $0x20] sm:$0xff] (!%p140_p2)  ;;  %v236_v8 = vld [vmem:[%s1289_s1 + $0x28] sm:$0xff] (!%p140_p2)  ;;  %vm661_vm1 = vcmask (!%p140_p2), 293888  }
   0x7   : > { %p165_p3 = scmp.lt.s32.totalorder (!%p140_p2), %s164_s20, 35  ;;  %v837_v6 = vpack.c.bf16 (!%p140_p2), %v234_v5, %v233_v2  ;;  %v840_v9 = vpack.c.bf16 (!%p140_p2), %v236_v8, %v235_v7  ;;  %v237_v10 = vld [vmem:[%s1289_s1 + $0x30] sm:$0xff] (!%p140_p2)  ;;  %v238_v11 = vld [vmem:[%s1289_s1 + $0x38] sm:$0xff] (!%p140_p2)  ;;  %v239_v15 = vld [vmem:[%s1289_s1 + $0x40] sm:$0xff] (!%p140_p2) }
   0x8   : > { %835 = vmatpush1.bf16.msra.mxu0 (!%p140_p2), %v834_v4  ;;  %913 = vmatpush1.bf16.msra.mxu1 (!%p140_p2), %v834_v4  ;;  %v843_v13 = vpack.c.bf16 (!%p140_p2), %v238_v11, %v237_v10  ;;  %v240_v16 = vld [vmem:[%s1289_s1 + $0x48] sm:$0xff] (!%p140_p2)  ;;  %v241_v18 = vld [vmem:[%s1289_s1 + $0x50] sm:$0xff] (!%p140_p2)  ;;  %v242_v19 = vld [vmem:[%s1289_s1 + $0x58] sm:$0xff] (!%p140_p2) }
   0x9   : > { %836 = vmatprep.subr.bf16.mxu0 (!%p140_p2), %v947_v3  ;;  %898 = vmatprep.subr.bf16.mxu1 (!%p140_p2), %v947_v3  ;;  %v846_v17 = vpack.c.bf16 (!%p140_p2), %v240_v16, %v239_v15  ;;  %v849_v20 = vpack.c.bf16 (!%p140_p2), %v242_v19, %v241_v18  ;;  %v243_v21 = vld [vmem:[%s1289_s1 + $0x60] sm:$0xff] (!%p140_p2)  ;;  %v244_v22 = vld [vmem:[%s1289_s1 + $0x68] sm:$0xff] (!%p140_p2)  ;;  %v245_v24 = vld [vmem:[%s1289_s1 + $0x70] sm:$0xff] (!%p140_p2) }
   0xa   : > { %v852_v23 = vpack.c.bf16 (!%p140_p2), %v244_v22, %v243_v21  ;;  %v246_v25 = vld [vmem:[%s1289_s1 + $0x78] sm:$0xff] (!%p140_p2)  ;;  %v247_v27 = vld [vmem:[%s1289_s1 + $0x80] sm:$0xff] (!%p140_p2)  ;;  %v248_v28 = vld [vmem:[%s1289_s1 + $0x88] sm:$0xff] (!%p140_p2) }
   0xb   : > { %v855_v26 = vpack.c.bf16 (!%p140_p2), %v246_v25, %v245_v24  ;;  %v858_v29 = vpack.c.bf16 (!%p140_p2), %v248_v28, %v247_v27  ;;  %v249_v30 = vld [vmem:[%s1289_s1 + $0x90] sm:$0xff] (!%p140_p2)  ;;  %v250_v31 = vld [vmem:[%s1289_s1 + $0x98] sm:$0xff] (!%p140_p2)  ;;  %v251_v33 = vld [vmem:[%s1289_s1 + $0xa0] sm:$0xff] (!%p140_p2) }
   0xc   : > { %838 = vmatpush1.bf16.msra.mxu0 (!%p140_p2), %v837_v6  ;;  %914 = vmatpush1.bf16.msra.mxu1 (!%p140_p2), %v837_v6  ;;  %v861_v32 = vpack.c.bf16 (!%p140_p2), %v250_v31, %v249_v30  ;;  %v252_v34 = vld [vmem:[%s1289_s1 + $0xa8] sm:$0xff] (!%p140_p2)  ;;  %v253_v36 = vld [vmem:[%s1289_s1 + $0xb0] sm:$0xff] (!%p140_p2)  ;;  %v254_v37 = vld [vmem:[%s1289_s1 + $0xb8] sm:$0xff] (!%p140_p2) }
   0xd   : > { %s1293_s20 = smov (!%p165_p3, %s164_s20), 35  ;;  %839 = vmatprep.subr.bf16.mxu0 %v947_v3  ;;  %899 = vmatprep.subr.bf16.mxu1 %v947_v3  ;;  %v864_v35 = vpack.c.bf16 %v252_v34, %v251_v33  ;;  %v867_v38 = vpack.c.bf16 %v254_v37, %v253_v36  ;;  %v255_v39 = vld [vmem:[%s1289_s1 + $0xc0] sm:$0xff]  ;;  %v256_v40 = vld [vmem:[%s1289_s1 + $0xc8] sm:$0xff]  ;;  %v257_v42 = vld [vmem:[%s1289_s1 + $0xd0] sm:$0xff] }
   0xe   : > { %s929_s27 = smul.u32 24, %s1293_s20  ;;  %v870_v41 = vpack.c.bf16 %v256_v40, %v255_v39  ;;  %v258_v43 = vld [vmem:[%s1289_s1 + $0xd8] sm:$0xff]  ;;  %v259_v45 = vld [vmem:[%s1289_s1 + $0xe0] sm:$0xff]  ;;  %v260_v46 = vld [vmem:[%s1289_s1 + $0xe8] sm:$0xff] }
   0xf   : > { %v873_v44 = vpack.c.bf16 %v258_v43, %v257_v42  ;;  %v876_v47 = vpack.c.bf16 %v260_v46, %v259_v45  ;;  %v261_v48 = vld [vmem:[%s1289_s1 + $0xf0] sm:$0xff]  ;;  %v262_v49 = vld [vmem:[%s1289_s1 + $0xf8] sm:$0xff]  ;;  %v263_v50 = vld [vmem:[%s1289_s1 + $0x100] sm:$0xff] }
  0x10   : > { %s1012_s7 = scalar_lea.vmem %s1288_s0, %s929_s27  ;;  %841 = vmatpush1.bf16.msra.mxu0 %v840_v9  ;;  %915 = vmatpush1.bf16.msra.mxu1 %v840_v9  ;;  %v264_v51 = vld [vmem:[%s1289_s1 + $0x108] sm:$0xff]  ;;  %v879_v52 = vpack.c.bf16 %v262_v49, %v261_v48  ;;  %v265_v54 = vld [vmem:[%s1289_s1 + $0x110] sm:$0xff]  ;;  %v266_v55 = vld [vmem:[%s1289_s1 + $0x118] sm:$0xff]  ;;  %s742_s27 = sshll.u32 %s1293_s20, 3 }
  0x11   : > { %v178_v12 = vld [vmem:[%s1012_s7 + $0x8] sm:$0xff]  ;;  %v220_v14 = vld [vmem:[%s1012_s7 + $0x158] sm:$0xff]  ;;  %842 = vmatprep.subr.bf16.mxu0 %v947_v3  ;;  %900 = vmatprep.subr.bf16.mxu1 %v947_v3  ;;  %v881_v53 = vpack.c.bf16 %v264_v51, %v263_v50  ;;  %v177_v56 = vld [vmem:[%s1012_s7] sm:$0xff]  ;;  %v885_v59 = vpack.c.bf16 %v266_v55, %v265_v54  ;;  %s1227_s30 = scalar_lea.vmem %s1291_s3, %s742_s27 }
  0x12   : > { %397 = vmatprep.mubr.f32.mxu0 %v178_v12  ;;  %467 = vmatprep.mubr.f32.mxu1 %v220_v14  ;;  %v219_v57 = vld [vmem:[%s1012_s7 + $0x150] sm:$0xff]  ;;  %v181_v58 = vld [vmem:[%s1012_s7 + $0x20] sm:$0xff]  ;;  %v268_v62 = vld [vmem:[%s1289_s1 + $0x128] sm:$0xff] }
  0x13   : > { %v223_v60 = vld [vmem:[%s1012_s7 + $0x170] sm:$0xff]  ;;  %v267_v61 = vld [vmem:[%s1289_s1 + $0x120] sm:$0xff]  ;;  %v180_v63 = vld [vmem:[%s1012_s7 + $0x18] sm:$0xff] }
  0x14   : > { %844 = vmatpush1.bf16.msra.mxu0 %v843_v13  ;;  %916 = vmatpush1.bf16.msra.mxu1 %v843_v13  ;;  %v222_v0 = vld [vmem:[%s1012_s7 + $0x168] sm:$0xff]  ;;  %v184_v1 = vld [vmem:[%s1012_s7 + $0x38] sm:$0xff]  ;;  %v889_v2 = vpack.c.bf16 %v268_v62, %v267_v61  ;;  %v269_v4 = vld [vmem:[%s1289_s1 + $0x130] sm:$0xff] }
  0x15   : > { %845 = vmatprep.subr.bf16.mxu0 %v947_v3  ;;  %901 = vmatprep.subr.bf16.mxu1 %v947_v3  ;;  %v270_v5 = vld [vmem:[%s1289_s1 + $0x138] sm:$0xff]  ;;  %v183_v6 = vld [vmem:[%s1012_s7 + $0x30] sm:$0xff]  ;;  %v225_v7 = vld [vmem:[%s1012_s7 + $0x180] sm:$0xff] }
  0x16   : > { %v187_v8 = vld [vmem:[%s1012_s7 + $0x50] sm:$0xff]  ;;  %v893_v9 = vpack.c.bf16 %v270_v5, %v269_v4  ;;  %v229_v10 = vld [vmem:[%s1012_s7 + $0x1a0] sm:$0xff]  ;;  %v186_v11 = vld [vmem:[%s1012_s7 + $0x48] sm:$0xff] }
  0x17   : > { %v228_v12 = vld [vmem:[%s1012_s7 + $0x198] sm:$0xff]  ;;  %v190_v13 = vld [vmem:[%s1012_s7 + $0x68] sm:$0xff]  ;;  %v179_v14 = vld [vmem:[%s1012_s7 + $0x10] sm:$0xff] }
  0x18   : > { %847 = vmatpush1.bf16.msra.mxu0 %v846_v17  ;;  %917 = vmatpush1.bf16.msra.mxu1 %v846_v17  ;;  %v189_v15 = vld [vmem:[%s1012_s7 + $0x60] sm:$0xff]  ;;  %v182_v16 = vld [vmem:[%s1012_s7 + $0x28] sm:$0xff]  ;;  %v192_v19 = vld [vmem:[%s1012_s7 + $0x78] sm:$0xff] }
  0x19   : > { %848 = vmatprep.subr.bf16.mxu0 %v947_v3  ;;  %902 = vmatprep.subr.bf16.mxu1 %v947_v3  ;;  %v193_v17 = vld [vmem:[%s1012_s7 + $0x80] sm:$0xff]  ;;  %v196_v21 = vld [vmem:[%s1012_s7 + $0x98] sm:$0xff]  ;;  %v191_v22 = vld [vmem:[%s1012_s7 + $0x70] sm:$0xff] }
  0x1a   : > { %v185_v18 = vld [vmem:[%s1012_s7 + $0x40] sm:$0xff]  ;;  %v194_v24 = vld [vmem:[%s1012_s7 + $0x88] sm:$0xff]  ;;  %v199_v25 = vld [vmem:[%s1012_s7 + $0xb0] sm:$0xff] }
  0x1b   : > { %v198_v27 = vld [vmem:[%s1012_s7 + $0xa8] sm:$0xff]  ;;  %v200_v28 = vld [vmem:[%s1012_s7 + $0xb8] sm:$0xff]  ;;  %v203_v30 = vld [vmem:[%s1012_s7 + $0xd0] sm:$0xff] }
  0x1c   : > { %850 = vmatpush1.bf16.msra.mxu0 %v849_v20  ;;  %918 = vmatpush1.bf16.msra.mxu1 %v849_v20  ;;  %v188_v20 = vld [vmem:[%s1012_s7 + $0x58] sm:$0xff]  ;;  %v201_v31 = vld [vmem:[%s1012_s7 + $0xc0] sm:$0xff]  ;;  %v207_v39 = vld [vmem:[%s1012_s7 + $0xf0] sm:$0xff] }
  0x1d   : > { %851 = vmatprep.subr.bf16.mxu0 %v947_v3  ;;  %903 = vmatprep.subr.bf16.mxu1 %v947_v3  ;;  %v205_v33 = vld [vmem:[%s1012_s7 + $0xe0] sm:$0xff]  ;;  %v212_v36 = vld [vmem:[%s1012_s7 + $0x118] sm:$0xff]  ;;  %v218_v40 = vld [vmem:[%s1012_s7 + $0x148] sm:$0xff] }
  0x1e   : > { %v209_v34 = vld [vmem:[%s1012_s7 + $0x100] sm:$0xff]  ;;  %v208_v37 = vld [vmem:[%s1012_s7 + $0xf8] sm:$0xff]  ;;  %v210_v43 = vld [vmem:[%s1012_s7 + $0x108] sm:$0xff] }
  0x1f   : > { %v221_v42 = vld [vmem:[%s1012_s7 + $0x160] sm:$0xff]  ;;  %v214_v45 = vld [vmem:[%s1012_s7 + $0x128] sm:$0xff]  ;;  %v227_v46 = vld [vmem:[%s1012_s7 + $0x190] sm:$0xff] }
  0x20   : > { %853 = vmatpush1.bf16.msra.mxu0 %v852_v23  ;;  %919 = vmatpush1.bf16.msra.mxu1 %v852_v23  ;;  %v195_v23 = vld [vmem:[%s1012_s7 + $0x90] sm:$0xff]  ;;  %v230_v48 = vld [vmem:[%s1012_s7 + $0x1a8] sm:$0xff]  ;;  %v217_v49 = vld [vmem:[%s1012_s7 + $0x140] sm:$0xff] }
  0x21   : > { %854 = vmatprep.subr.bf16.mxu0 %v947_v3  ;;  %904 = vmatprep.subr.bf16.mxu1 %v947_v3  ;;  %v216_v50 = vld [vmem:[%s1012_s7 + $0x138] sm:$0xff] }
  0x24   : > { %856 = vmatpush1.bf16.msra.mxu0 %v855_v26  ;;  %920 = vmatpush1.bf16.msra.mxu1 %v855_v26  ;;  %v197_v26 = vld [vmem:[%s1012_s7 + $0xa0] sm:$0xff] }
  0x25   : > { %857 = vmatprep.subr.bf16.mxu0 %v947_v3  ;;  %905 = vmatprep.subr.bf16.mxu1 %v947_v3 }
  0x28   : > { %859 = vmatpush1.bf16.msra.mxu0 %v858_v29  ;;  %921 = vmatpush1.bf16.msra.mxu1 %v858_v29  ;;  %v202_v29 = vld [vmem:[%s1012_s7 + $0xc8] sm:$0xff] }
  0x29   : > { %860 = vmatprep.subr.bf16.mxu0 %v947_v3  ;;  %906 = vmatprep.subr.bf16.mxu1 %v947_v3 }
  0x2c   : > { %862 = vmatpush1.bf16.msra.mxu0 %v861_v32  ;;  %922 = vmatpush1.bf16.msra.mxu1 %v861_v32  ;;  %v206_v32 = vld [vmem:[%s1012_s7 + $0xe8] sm:$0xff] }
  0x2d   : > { %863 = vmatprep.subr.bf16.mxu0 %v947_v3  ;;  %907 = vmatprep.subr.bf16.mxu1 %v947_v3 }
  0x30   : > { %865 = vmatpush1.bf16.msra.mxu0 %v864_v35  ;;  %923 = vmatpush1.bf16.msra.mxu1 %v864_v35  ;;  %v204_v35 = vld [vmem:[%s1012_s7 + $0xd8] sm:$0xff] }
  0x31   : > { %866 = vmatprep.subr.bf16.mxu0 %v947_v3  ;;  %908 = vmatprep.subr.bf16.mxu1 %v947_v3 }
  0x34   : > { %868 = vmatpush1.bf16.msra.mxu0 %v867_v38  ;;  %924 = vmatpush1.bf16.msra.mxu1 %v867_v38  ;;  %v215_v38 = vld [vmem:[%s1012_s7 + $0x130] sm:$0xff] }
  0x35   : > { %869 = vmatprep.subr.bf16.mxu0 %v947_v3  ;;  %909 = vmatprep.subr.bf16.mxu1 %v947_v3 }
  0x38   : > { %871 = vmatpush1.bf16.msra.mxu0 %v870_v41  ;;  %925 = vmatpush1.bf16.msra.mxu1 %v870_v41  ;;  %v211_v41 = vld [vmem:[%s1012_s7 + $0x110] sm:$0xff] }
  0x39   : > { %872 = vmatprep.subr.bf16.mxu0 %v947_v3  ;;  %910 = vmatprep.subr.bf16.mxu1 %v947_v3 }
  0x3c   : > { %874 = vmatpush1.bf16.msra.mxu0 %v873_v44  ;;  %926 = vmatpush1.bf16.msra.mxu1 %v873_v44  ;;  %v224_v44 = vld [vmem:[%s1012_s7 + $0x178] sm:$0xff] }
  0x3d   : > { %875 = vmatprep.subr.bf16.mxu0 %v947_v3  ;;  %911 = vmatprep.subr.bf16.mxu1 %v947_v3 }
  0x40   : > { %877 = vmatpush1.bf16.msra.mxu0 %v876_v47  ;;  %927 = vmatpush1.bf16.msra.mxu1 %v876_v47  ;;  %v213_v47 = vld [vmem:[%s1012_s7 + $0x120] sm:$0xff] }
  0x41   : > { %878 = vmatprep.subr.bf16.mxu0 %v947_v3  ;;  %912 = vmatprep.subr.bf16.mxu1 %v947_v3  ;;  %v226_v3 = vld [vmem:[%s1012_s7 + $0x188] sm:$0xff] }
  0x44   : > { %880 = vmatpush1.bf16.msra.mxu0 %v879_v52  ;;  %928 = vmatpush1.bf16.msra.mxu1 %v879_v52 }
  0x45   : > { %882 = vmatprep.subr.bf16.mxu1 %v881_v53 }
  0x47   : > { %398 = vmatmul.mubr.f32.vlgmr.msra.gmra.mrb[0].mxu0 %v177_v56  ;;  %468 = vmatmul.mubr.f32.vlgmr.msra.gmra.mrb[0].mxu1 %v219_v57 }
  0x48   : > { %884 = vmatpush3.bf16.msra.mxu1 %v881_v53  ;;  %402 = vmatprep.mubr.f32.mxu0 %v181_v58 }
  0x49   : > { %472 = vmatprep.mubr.f32.mxu1 %v223_v60  ;;  %886 = vmatprep.subr.bf16.mxu1 %v885_v59 }
  0x4b   : > { %403 = vmatmul.mubr.f32.gmra.mrb[2].mxu0 %v180_v63  ;;  %473 = vmatmul.mubr.f32.gmra.mrb[2].mxu1 %v222_v0 }
  0x4c   : > { %888 = vmatpush3.bf16.msra.mxu1 %v885_v59  ;;  %407 = vmatprep.mubr.f32.mxu0 %v184_v1  ;;  %v1219_v1 = vld [vmem:[%s1290_s2] ss:$0 sm:$0xff] }
  0x4d   : > { %477 = vmatprep.mubr.f32.mxu1 %v226_v3  ;;  %890 = vmatprep.subr.bf16.mxu1 %v889_v2 }
  0x4f   : > { %408 = vmatmul.mubr.f32.gmra.mrb[4].mxu0 %v183_v6  ;;  %478 = vmatmul.mubr.f32.gmra.mrb[4].mxu1 %v225_v7 }
  0x50   : > { %892 = vmatpush3.bf16.msra.mxu1 %v889_v2  ;;  %412 = vmatprep.mubr.f32.mxu0 %v187_v8 }
  0x51   : > { %482 = vmatprep.mubr.f32.mxu1 %v229_v10  ;;  %894 = vmatprep.subr.bf16.mxu1 %v893_v9 }
  0x53   : > { %413 = vmatmul.mubr.f32.gmra.mrb[6].mxu0 %v186_v11  ;;  %483 = vmatmul.mubr.f32.gmra.mrb[6].mxu1 %v228_v12 }
  0x54   : > { %896 = vmatpush3.bf16.msra.mxu1 %v893_v9  ;;  %417 = vmatprep.mubr.f32.mxu0 %v190_v13 }
  0x55   : > { %806 = vmatprep.mubr.msk.f32.mxu1 %vm278_vm0, %v179_v14 }
  0x57   : > { %418 = vmatmul.mubr.f32.gmra.mrb[8].mxu0 %v189_v15  ;;  %807 = vmatmul.mubr.msk.f32.vlgmr.msra.gmra.mrb[8].mxu1 %vm278_vm0, %v182_v16 }
  0x58   : > { %422 = vmatprep.mubr.f32.mxu0 %v193_v17  ;;  %809 = vmatprep.mubr.msk.f32.mxu1 %vm278_vm0, %v185_v18 }
  0x5b   : > { %423 = vmatmul.mubr.f32.gmra.mrb[10].mxu0 %v192_v19  ;;  %810 = vmatmul.mubr.msk.f32.gmra.mrb[10].mxu1 %vm278_vm0, %v188_v20 }
  0x5c   : > { %427 = vmatprep.mubr.f32.mxu0 %v196_v21  ;;  %812 = vmatprep.mubr.msk.f32.mxu1 %vm278_vm0, %v191_v22 }
  0x5f   : > { %428 = vmatmul.mubr.f32.gmra.mrb[12].mxu0 %v195_v23  ;;  %813 = vmatmul.mubr.msk.f32.gmra.mrb[12].mxu1 %vm278_vm0, %v194_v24 }
  0x60   : > { %432 = vmatprep.mubr.f32.mxu0 %v199_v25  ;;  %815 = vmatprep.mubr.msk.f32.mxu1 %vm278_vm0, %v197_v26 }
  0x63   : > { %433 = vmatmul.mubr.f32.gmra.mrb[14].mxu0 %v198_v27  ;;  %816 = vmatmul.mubr.msk.f32.gmra.mrb[14].mxu1 %vm278_vm0, %v200_v28 }
  0x64   : > { %437 = vmatprep.mubr.f32.mxu0 %v202_v29  ;;  %818 = vmatprep.mubr.msk.f32.mxu1 %vm278_vm0, %v203_v30 }
  0x67   : > { %438 = vmatmul.mubr.f32.gmra.mrb[16].mxu0 %v201_v31  ;;  %819 = vmatmul.mubr.msk.f32.gmra.mrb[16].mxu1 %vm278_vm0, %v206_v32 }
  0x68   : > { %442 = vmatprep.mubr.f32.mxu0 %v205_v33  ;;  %821 = vmatprep.mubr.msk.f32.mxu1 %vm278_vm0, %v209_v34 }
  0x6b   : > { %443 = vmatmul.mubr.f32.gmra.mrb[18].mxu0 %v204_v35  ;;  %822 = vmatmul.mubr.msk.f32.gmra.mrb[18].mxu1 %vm278_vm0, %v212_v36 }
  0x6c   : > { %447 = vmatprep.mubr.f32.mxu0 %v208_v37  ;;  %824 = vmatprep.mubr.msk.f32.mxu1 %vm278_vm0, %v215_v38 }
  0x6f   : > { %448 = vmatmul.mubr.f32.gmra.mrb[20].mxu0 %v207_v39  ;;  %825 = vmatmul.mubr.msk.f32.gmra.mrb[20].mxu1 %vm278_vm0, %v218_v40 }
  0x70   : > { %452 = vmatprep.mubr.f32.mxu0 %v211_v41  ;;  %827 = vmatprep.mubr.msk.f32.mxu1 %vm278_vm0, %v221_v42 }
  0x73   : > { %453 = vmatmul.mubr.f32.gmra.mrb[22].mxu0 %v210_v43  ;;  %828 = vmatmul.mubr.msk.f32.gmra.mrb[22].mxu1 %vm278_vm0, %v224_v44 }
  0x74   : > { %457 = vmatprep.mubr.f32.mxu0 %v214_v45  ;;  %830 = vmatprep.mubr.msk.f32.mxu1 %vm278_vm0, %v227_v46 }
  0x77   : > { %458 = vmatmul.mubr.f32.gmra.mrb[24].mxu0 %v213_v47  ;;  %831 = vmatmul.mubr.msk.f32.gmra.mrb[24].mxu1 %vm278_vm0, %v230_v48 }
  0x78   : > { %462 = vmatprep.mubr.f32.mxu0 %v217_v49 }
  0x7b   : > { %463 = vmatmul.mubr.f32.gmra.mrb[26].mxu0 %v216_v50 }
 0x11a   : > { %v399_v51 = vpop.f32.mrb[0].mxu0  ;;  %v1208_v52 = vpop.f32.mrb[0].mxu1 }
 0x11b   : > { %v401_v53 = vpop.f32.mrb[1].mxu0  ;;  %v471_v54 = vpop.f32.mrb[1].mxu1  ;;  %v400_v5 = vadd.f32 %v1219_v1, %v399_v51 }
 0x11e   : > { %v404_v55 = vpop.f32.mrb[2].mxu0  ;;  %v1210_v56 = vpop.f32.mrb[2].mxu1 }
 0x11f   : > { %v406_v57 = vpop.f32.mrb[3].mxu0  ;;  %v476_v58 = vpop.f32.mrb[3].mxu1  ;;  %v405_v4 = vadd.f32 %v1219_v1, %v404_v55 }
 0x122   : > { %v409_v59 = vpop.f32.mrb[4].mxu0  ;;  %v1212_v60 = vpop.f32.mrb[4].mxu1 }
 0x123   : > { %v411_v61 = vpop.f32.mrb[5].mxu0  ;;  %v481_v62 = vpop.f32.mrb[5].mxu1  ;;  %v410_v14 = vadd.f32 %v1219_v1, %v409_v59 }
 0x126   : > { %v414_v63 = vpop.f32.mrb[6].mxu0  ;;  %v1214_v0 = vpop.f32.mrb[6].mxu1 }
 0x127   : > { %v416_v2 = vpop.f32.mrb[7].mxu0  ;;  %v486_v3 = vpop.f32.mrb[7].mxu1  ;;  %v415_v12 = vadd.f32 %v1219_v1, %v414_v63 }
 0x12a   : > { %v419_v6 = vpop.f32.mrb[8].mxu0  ;;  %v808_v7 = vpop.f32.mrb[8].mxu1 }
 0x12b   : > { %v560_v8 = vadd.f32 %v808_v7, %v405_v4  ;;  %v421_v9 = vpop.f32.mrb[9].mxu0  ;;  %v554_v10 = vpop.f32.mrb[9].mxu1  ;;  %v420_v24 = vadd.f32 %v1219_v1, %v419_v6  ;;  %v475_v4 = vadd.f32 %v1219_v1, %v1210_v56  ;;  %v470_v6 = vadd.f32 %v1219_v1, %v1208_v52 }
 0x12c   : > { %v555_v11 = vadd.f32 %v554_v10, %v400_v5  ;;  %v485_v56 = vadd.f32 %v1219_v1, %v1214_v0  ;;  %v480_v52 = vadd.f32 %v1219_v1, %v1212_v60 }
 0x12d   : > { %v644_v13 = vmax.f32 %v560_v8, 0.0 }
 0x12e   : > { %v643_v15 = vmax.f32 %v555_v11, 0.0  ;;  %v424_v16 = vpop.f32.mrb[10].mxu0  ;;  %v811_v17 = vpop.f32.mrb[10].mxu1 }
 0x12f   : > { %663 = vst.msk [vmem:[%s1227_s30 + $0x8] sm:$0xff] %vm661_vm1, %v644_v13  ;;  %v570_v18 = vadd.f32 %v811_v17, %v415_v12  ;;  %v426_v19 = vpop.f32.mrb[11].mxu0  ;;  %v564_v20 = vpop.f32.mrb[11].mxu1  ;;  %v425_v22 = vadd.f32 %v1219_v1, %v424_v16 }
 0x130   : > { %662 = vst.msk [vmem:[%s1227_s30] sm:$0xff] %vm661_vm1, %v643_v15  ;;  %v565_v21 = vadd.f32 %v564_v20, %v410_v14 }
 0x131   : > { %v646_v23 = vmax.f32 %v570_v18, 0.0 }
 0x132   : > { %v645_v25 = vmax.f32 %v565_v21, 0.0  ;;  %v429_v26 = vpop.f32.mrb[12].mxu0  ;;  %v814_v27 = vpop.f32.mrb[12].mxu1 }
 0x133   : > { %665 = vst.msk [vmem:[%s1227_s30 + $0x18] sm:$0xff] %vm661_vm1, %v646_v23  ;;  %v580_v28 = vadd.f32 %v814_v27, %v425_v22  ;;  %v431_v29 = vpop.f32.mrb[13].mxu0  ;;  %v574_v30 = vpop.f32.mrb[13].mxu1  ;;  %v430_v33 = vadd.f32 %v1219_v1, %v429_v26 }
 0x134   : > { %664 = vst.msk [vmem:[%s1227_s30 + $0x10] sm:$0xff] %vm661_vm1, %v645_v25  ;;  %v575_v31 = vadd.f32 %v574_v30, %v420_v24 }
 0x135   : > { %v648_v32 = vmax.f32 %v580_v28, 0.0 }
 0x136   : > { %v647_v34 = vmax.f32 %v575_v31, 0.0  ;;  %v434_v35 = vpop.f32.mrb[14].mxu0  ;;  %v817_v36 = vpop.f32.mrb[14].mxu1 }
 0x137   : > { %667 = vst.msk [vmem:[%s1227_s30 + $0x28] sm:$0xff] %vm661_vm1, %v648_v32  ;;  %v435_v37 = vadd.f32 %v1219_v1, %v434_v35  ;;  %v436_v38 = vpop.f32.mrb[15].mxu0  ;;  %v584_v39 = vpop.f32.mrb[15].mxu1 }
 0x138   : > { %666 = vst.msk [vmem:[%s1227_s30 + $0x20] sm:$0xff] %vm661_vm1, %v647_v34  ;;  %v585_v40 = vadd.f32 %v584_v39, %v430_v33 }
 0x139   : > { %v590_v41 = vadd.f32 %v817_v36, %v435_v37 }
 0x13a   : > { %v649_v42 = vmax.f32 %v585_v40, 0.0  ;;  %v439_v43 = vpop.f32.mrb[16].mxu0  ;;  %v820_v44 = vpop.f32.mrb[16].mxu1 }
 0x13b   : > { %v650_v45 = vmax.f32 %v590_v41, 0.0  ;;  %v440_v46 = vadd.f32 %v1219_v1, %v439_v43  ;;  %v441_v47 = vpop.f32.mrb[17].mxu0  ;;  %v594_v48 = vpop.f32.mrb[17].mxu1 }
 0x13c   : > { %668 = vst.msk [vmem:[%s1227_s30 + $0x30] sm:$0xff] %vm661_vm1, %v649_v42 }
 0x13d   : > { %669 = vst.msk [vmem:[%s1227_s30 + $0x38] sm:$0xff] %vm661_vm1, %v650_v45  ;;  %v595_v49 = vadd.f32 %v594_v48, %v440_v46 }
 0x13e   : > { %v444_v50 = vpop.f32.mrb[18].mxu0  ;;  %v823_v51 = vpop.f32.mrb[18].mxu1 }
 0x13f   : > { %v651_v53 = vmax.f32 %v595_v49, 0.0  ;;  %v445_v54 = vadd.f32 %v1219_v1, %v444_v50  ;;  %v446_v55 = vpop.f32.mrb[19].mxu0  ;;  %v604_v57 = vpop.f32.mrb[19].mxu1 }
 0x141   : > { %670 = vst.msk [vmem:[%s1227_s30 + $0x40] sm:$0xff] %vm661_vm1, %v651_v53  ;;  %v600_v58 = vadd.f32 %v820_v44, %v445_v54 }
 0x142   : > { %v449_v59 = vpop.f32.mrb[20].mxu0  ;;  %v826_v61 = vpop.f32.mrb[20].mxu1 }
 0x143   : > { %v652_v62 = vmax.f32 %v600_v58, 0.0  ;;  %v450_v63 = vadd.f32 %v1219_v1, %v449_v59  ;;  %v451_v2 = vpop.f32.mrb[21].mxu0  ;;  %v614_v3 = vpop.f32.mrb[21].mxu1 }
 0x145   : > { %671 = vst.msk [vmem:[%s1227_s30 + $0x48] sm:$0xff] %vm661_vm1, %v652_v62  ;;  %v605_v5 = vadd.f32 %v604_v57, %v450_v63 }
 0x146   : > { %v454_v7 = vpop.f32.mrb[22].mxu0  ;;  %v829_v8 = vpop.f32.mrb[22].mxu1 }
 0x147   : > { %v653_v9 = vmax.f32 %v605_v5, 0.0  ;;  %v455_v10 = vadd.f32 %v1219_v1, %v454_v7  ;;  %v630_v11 = vadd.f32 %v829_v8, %v475_v4  ;;  %v456_v12 = vpop.f32.mrb[23].mxu0  ;;  %v624_v13 = vpop.f32.mrb[23].mxu1 }
 0x148   : > { %v625_v14 = vadd.f32 %v624_v13, %v470_v6 }
 0x149   : > { %672 = vst.msk [vmem:[%s1227_s30 + $0x50] sm:$0xff] %vm661_vm1, %v653_v9  ;;  %v610_v15 = vadd.f32 %v823_v51, %v455_v10  ;;  %v658_v16 = vmax.f32 %v630_v11, 0.0 }
 0x14a   : > { %v657_v17 = vmax.f32 %v625_v14, 0.0  ;;  %v459_v18 = vpop.f32.mrb[24].mxu0  ;;  %v832_v19 = vpop.f32.mrb[24].mxu1 }
 0x14b   : > { %v654_v20 = vmax.f32 %v610_v15, 0.0  ;;  %677 = vst.msk [vmem:[%s1227_s30 + $0x78] sm:$0xff] %vm661_vm1, %v658_v16  ;;  %v460_v21 = vadd.f32 %v1219_v1, %v459_v18  ;;  %v640_v0 = vadd.f32 %v832_v19, %v485_v56  ;;  %v461_v22 = vpop.f32.mrb[25].mxu0  ;;  %v634_v23 = vpop.f32.mrb[25].mxu1 }
 0x14c   : > { %676 = vst.msk [vmem:[%s1227_s30 + $0x70] sm:$0xff] %vm661_vm1, %v657_v17  ;;  %v635_v24 = vadd.f32 %v634_v23, %v480_v52 }
 0x14d   : > { %673 = vst.msk [vmem:[%s1227_s30 + $0x58] sm:$0xff] %vm661_vm1, %v654_v20  ;;  %v615_v60 = vadd.f32 %v614_v3, %v460_v21  ;;  %v660_v25 = vmax.f32 %v640_v0, 0.0 }
 0x14e   : > { %v659_v26 = vmax.f32 %v635_v24, 0.0  ;;  %v464_v27 = vpop.f32.mrb[26].mxu0 }
 0x14f   : > { %v655_v28 = vmax.f32 %v615_v60, 0.0  ;;  %679 = vst.msk [vmem:[%s1227_s30 + $0x88] sm:$0xff] %vm661_vm1, %v660_v25  ;;  %v465_v29 = vadd.f32 %v1219_v1, %v464_v27  ;;  %v466_v30 = vpop.f32.mrb[27].mxu0 }
 0x150   : > { %678 = vst.msk [vmem:[%s1227_s30 + $0x80] sm:$0xff] %vm661_vm1, %v659_v26 }
 0x151   : > { %674 = vst.msk [vmem:[%s1227_s30 + $0x60] sm:$0xff] %vm661_vm1, %v655_v28  ;;  %v620_v31 = vadd.f32 %v826_v61, %v465_v29 }
 0x153   : > { %v656_v32 = vmax.f32 %v620_v31, 0.0 }
 0x155   : > { %675 = vst.msk [vmem:[%s1227_s30 + $0x68] sm:$0xff] %vm661_vm1, %v656_v32 }
 0x156 PF: > { %s13_s12 = sadd.s32 1, %s945_s12  }
 0x157   : > { %p10_p4 = scmp.ge.s32.totalorder %s13_s12, 4  }
 0x159   :  { %12 = sbr.rel (!%p10_p4) target bundleno = 1 (0x1), region = 62 }

// kernel: network_obs_forward.4
= control target key start
LH: loop header
LB: loop body
LE: loop exit
PB: predicated region body
PF: predicated region fallthrough
CT: control target
= control target key end

     0   :  { %vm795_vm0 = vmmov 0   ;;  %vm138_vm1 = vcmask 523264   ;;  %vm505_vm2 = vcmask 392192   ;;  %s1248_s1 = inlined_call_operand.vmem [shape: f32[576,48], index: 1, kind: input, shape index: {}]   ;;  %s1249_s0 = inlined_call_operand.vmem [shape: f32[72,576], index: 0, kind: input, shape index: {}]   ;;  %s1250_s2 = inlined_call_operand.vmem [shape: f32[1,48], index: 2, kind: input, shape index: {}]   ;;  %s1251_s3 = inlined_call_operand.vmem [shape: f32[72,48], index: 3, kind: output, shape index: {}]  }
   0x1   :  { %v75_v0 = vld [vmem:[%s1248_s1 + $0x80] sm:$0xff]  ;;  %v76_v1 = vld [vmem:[%s1248_s1 + $0x88] sm:$0xff]  ;;  %v77_v11 = vld [vmem:[%s1248_s1 + $0x90] sm:$0xff] }
   0x2   :  { %v107_v2 = vld [vmem:[%s1248_s1 + $0x180] sm:$0xff]  ;;  %v707_v3 = vpack.c.bf16 %v76_v1, %v75_v0  ;;  %v108_v4 = vld [vmem:[%s1248_s1 + $0x188] sm:$0xff]  ;;  %v78_v13 = vld [vmem:[%s1248_s1 + $0x98] sm:$0xff] }
   0x3   :  { %v59_v5 = vld [vmem:[%s1248_s1] sm:$0xff]  ;;  %v60_v6 = vld [vmem:[%s1248_s1 + $0x8] sm:$0xff]  ;;  %v739_v7 = vpack.c.bf16 %v108_v4, %v107_v2  ;;  %v109_v14 = vld [vmem:[%s1248_s1 + $0x190] sm:$0xff]  ;;  %v711_v16 = vpack.c.bf16 %v78_v13, %v77_v11 }
   0x4   :  { %v709_v8 = vpack.c.bf16 %v60_v6, %v59_v5  ;;  %v91_v9 = vld [vmem:[%s1248_s1 + $0x100] sm:$0xff]  ;;  %v92_v10 = vld [vmem:[%s1248_s1 + $0x108] sm:$0xff]  ;;  %708 = vmatprep.subr.bf16.mxu0 %v707_v3  ;;  %v110_v15 = vld [vmem:[%s1248_s1 + $0x198] sm:$0xff] }
   0x5   :  { %v741_v12 = vpack.c.bf16 %v92_v10, %v91_v9  ;;  %740 = vmatprep.subr.bf16.mxu1 %v739_v7  ;;  %v743_v17 = vpack.c.bf16 %v110_v15, %v109_v14  ;;  %v61_v18 = vld [vmem:[%s1248_s1 + $0x10] sm:$0xff]  ;;  %v62_v19 = vld [vmem:[%s1248_s1 + $0x18] sm:$0xff]  ;;  %v79_v23 = vld [vmem:[%s1248_s1 + $0xa0] sm:$0xff] }
   0x6   :  { %710 = vmatpush3.bf16.msra.mxu0 %v709_v8  ;;  %v93_v20 = vld [vmem:[%s1248_s1 + $0x110] sm:$0xff]  ;;  %v713_v21 = vpack.c.bf16 %v62_v19, %v61_v18  ;;  %v94_v22 = vld [vmem:[%s1248_s1 + $0x118] sm:$0xff]  ;;  %v80_v24 = vld [vmem:[%s1248_s1 + $0xa8] sm:$0xff] }
   0x7   :  { %742 = vmatpush3.bf16.msra.mxu1 %v741_v12  ;;  %712 = vmatprep.subr.bf16.mxu0 %v711_v16  ;;  %v745_v25 = vpack.c.bf16 %v94_v22, %v93_v20  ;;  %v715_v26 = vpack.c.bf16 %v80_v24, %v79_v23  ;;  %v111_v27 = vld [vmem:[%s1248_s1 + $0x1a0] sm:$0xff]  ;;  %v112_v28 = vld [vmem:[%s1248_s1 + $0x1a8] sm:$0xff]  ;;  %v81_v35 = vld [vmem:[%s1248_s1 + $0xb0] sm:$0xff] }
   0x8   :  { %744 = vmatprep.subr.bf16.mxu1 %v743_v17  ;;  %v63_v29 = vld [vmem:[%s1248_s1 + $0x20] sm:$0xff]  ;;  %v747_v30 = vpack.c.bf16 %v112_v28, %v111_v27  ;;  %v64_v31 = vld [vmem:[%s1248_s1 + $0x28] sm:$0xff]  ;;  %v82_v36 = vld [vmem:[%s1248_s1 + $0xb8] sm:$0xff] }
   0x9   :  { %v95_v32 = vld [vmem:[%s1248_s1 + $0x120] sm:$0xff]  ;;  %v96_v33 = vld [vmem:[%s1248_s1 + $0x128] sm:$0xff]  ;;  %v717_v34 = vpack.c.bf16 %v64_v31, %v63_v29  ;;  %v113_v37 = vld [vmem:[%s1248_s1 + $0x1b0] sm:$0xff]  ;;  %v719_v39 = vpack.c.bf16 %v82_v36, %v81_v35 }
   0xa   :  { %714 = vmatpush3.bf16.msra.mxu0 %v713_v21  ;;  %v749_v38 = vpack.c.bf16 %v96_v33, %v95_v32  ;;  %v114_v40 = vld [vmem:[%s1248_s1 + $0x1b8] sm:$0xff]  ;;  %v65_v41 = vld [vmem:[%s1248_s1 + $0x30] sm:$0xff]  ;;  %v83_v46 = vld [vmem:[%s1248_s1 + $0xc0] sm:$0xff] }
   0xb   :  { %746 = vmatpush3.bf16.msra.mxu1 %v745_v25  ;;  %716 = vmatprep.subr.bf16.mxu0 %v715_v26  ;;  %v66_v42 = vld [vmem:[%s1248_s1 + $0x38] sm:$0xff]  ;;  %v751_v43 = vpack.c.bf16 %v114_v40, %v113_v37  ;;  %v97_v44 = vld [vmem:[%s1248_s1 + $0x130] sm:$0xff]  ;;  %v84_v47 = vld [vmem:[%s1248_s1 + $0xc8] sm:$0xff] }
   0xc   :  { %748 = vmatprep.subr.bf16.mxu1 %v747_v30  ;;  %v98_v45 = vld [vmem:[%s1248_s1 + $0x138] sm:$0xff]  ;;  %v115_v48 = vld [vmem:[%s1248_s1 + $0x1c0] sm:$0xff]  ;;  %v116_v49 = vld [vmem:[%s1248_s1 + $0x1c8] sm:$0xff]  ;;  %v721_v50 = vpack.c.bf16 %v66_v42, %v65_v41  ;;  %v723_v52 = vpack.c.bf16 %v84_v47, %v83_v46 }
   0xd   :  { %v753_v51 = vpack.c.bf16 %v98_v45, %v97_v44  ;;  %v67_v53 = vld [vmem:[%s1248_s1 + $0x40] sm:$0xff]  ;;  %v68_v54 = vld [vmem:[%s1248_s1 + $0x48] sm:$0xff]  ;;  %v755_v56 = vpack.c.bf16 %v116_v49, %v115_v48  ;;  %v85_v58 = vld [vmem:[%s1248_s1 + $0xd0] sm:$0xff] }
   0xe   :  { %718 = vmatpush3.bf16.msra.mxu0 %v717_v34  ;;  %v99_v55 = vld [vmem:[%s1248_s1 + $0x140] sm:$0xff]  ;;  %v100_v57 = vld [vmem:[%s1248_s1 + $0x148] sm:$0xff]  ;;  %v86_v59 = vld [vmem:[%s1248_s1 + $0xd8] sm:$0xff]  ;;  %v725_v62 = vpack.c.bf16 %v68_v54, %v67_v53 }
   0xf   :  { %750 = vmatpush3.bf16.msra.mxu1 %v749_v38  ;;  %720 = vmatprep.subr.bf16.mxu0 %v719_v39  ;;  %v117_v60 = vld [vmem:[%s1248_s1 + $0x1d0] sm:$0xff]  ;;  %v118_v61 = vld [vmem:[%s1248_s1 + $0x1d8] sm:$0xff]  ;;  %v757_v63 = vpack.c.bf16 %v100_v57, %v99_v55  ;;  %v727_v0 = vpack.c.bf16 %v86_v59, %v85_v58  ;;  %v87_v6 = vld [vmem:[%s1248_s1 + $0xe0] sm:$0xff]  ;;  %v794_v39 = vmov 0.0|0.0  }
  0x10   :  { %752 = vmatprep.subr.bf16.mxu1 %v751_v43  ;;  %v69_v1 = vld [vmem:[%s1248_s1 + $0x50] sm:$0xff]  ;;  %v70_v2 = vld [vmem:[%s1248_s1 + $0x58] sm:$0xff]  ;;  %v759_v4 = vpack.c.bf16 %v118_v61, %v117_v60  ;;  %v88_v7 = vld [vmem:[%s1248_s1 + $0xe8] sm:$0xff] }
  0x11   :  { %v101_v3 = vld [vmem:[%s1248_s1 + $0x150] sm:$0xff]  ;;  %v102_v5 = vld [vmem:[%s1248_s1 + $0x158] sm:$0xff]  ;;  %v119_v8 = vld [vmem:[%s1248_s1 + $0x1e0] sm:$0xff]  ;;  %v729_v10 = vpack.c.bf16 %v70_v2, %v69_v1  ;;  %v731_v14 = vpack.c.bf16 %v88_v7, %v87_v6 }
  0x12   :  { %722 = vmatpush3.bf16.msra.mxu0 %v721_v50  ;;  %v120_v9 = vld [vmem:[%s1248_s1 + $0x1e8] sm:$0xff]  ;;  %v71_v11 = vld [vmem:[%s1248_s1 + $0x60] sm:$0xff]  ;;  %v761_v13 = vpack.c.bf16 %v102_v5, %v101_v3  ;;  %v17_v17 = vld [vmem:[%s1249_s0 + $0x18] sm:$0xff] }
  0x13   :  { %754 = vmatpush3.bf16.msra.mxu1 %v753_v51  ;;  %724 = vmatprep.subr.bf16.mxu0 %v723_v52  ;;  %v72_v12 = vld [vmem:[%s1248_s1 + $0x68] sm:$0xff]  ;;  %v103_v15 = vld [vmem:[%s1248_s1 + $0x160] sm:$0xff]  ;;  %v763_v18 = vpack.c.bf16 %v120_v9, %v119_v8  ;;  %v89_v20 = vld [vmem:[%s1248_s1 + $0xf0] sm:$0xff] }
  0x14   :  { %756 = vmatprep.subr.bf16.mxu1 %v755_v56  ;;  %v15_v16 = vld [vmem:[%s1249_s0 + $0x8] sm:$0xff]  ;;  %v90_v21 = vld [vmem:[%s1248_s1 + $0xf8] sm:$0xff]  ;;  %v121_v22 = vld [vmem:[%s1248_s1 + $0x1f0] sm:$0xff]  ;;  %340 = vmatprep.mubr.f32.mxu1 %v17_v17  ;;  %v733_v24 = vpack.c.bf16 %v72_v12, %v71_v11  ;;  %v796_v17 = vmov 0.0  }
  0x15   :  { %v104_v19 = vld [vmem:[%s1248_s1 + $0x168] sm:$0xff]  ;;  %230 = vmatprep.mubr.f32.mxu0 %v15_v16  ;;  %v122_v23 = vld [vmem:[%s1248_s1 + $0x1f8] sm:$0xff]  ;;  %v735_v26 = vpack.c.bf16 %v90_v21, %v89_v20  ;;  %v73_v27 = vld [vmem:[%s1248_s1 + $0x70] sm:$0xff] }
  0x16   :  { %726 = vmatpush3.bf16.msra.mxu0 %v725_v62  ;;  %v765_v25 = vpack.c.bf16 %v104_v19, %v103_v15  ;;  %v74_v28 = vld [vmem:[%s1248_s1 + $0x78] sm:$0xff]  ;;  %v767_v29 = vpack.c.bf16 %v122_v23, %v121_v22  ;;  %v105_v30 = vld [vmem:[%s1248_s1 + $0x170] sm:$0xff]  ;;  %v123_v34 = vld [vmem:[%s1248_s1 + $0x200] sm:$0xff] }
  0x17   :  { %758 = vmatpush3.bf16.msra.mxu1 %v757_v63  ;;  %728 = vmatprep.subr.bf16.mxu0 %v727_v0  ;;  %v106_v31 = vld [vmem:[%s1248_s1 + $0x178] sm:$0xff]  ;;  %v737_v32 = vpack.c.bf16 %v74_v28, %v73_v27  ;;  %v124_v35 = vld [vmem:[%s1248_s1 + $0x208] sm:$0xff]  ;;  %v14_v36 = vld [vmem:[%s1249_s0] sm:$0xff] }
  0x18   :  { %760 = vmatprep.subr.bf16.mxu1 %v759_v4  ;;  %v769_v33 = vpack.c.bf16 %v106_v31, %v105_v30  ;;  %v772_v37 = vpack.c.bf16 %v124_v35, %v123_v34  ;;  %v16_v38 = vld [vmem:[%s1249_s0 + $0x10] sm:$0xff]  ;;  %v22_v41 = vld [vmem:[%s1249_s0 + $0x40] sm:$0xff]  ;;  %v126_v43 = vld [vmem:[%s1248_s1 + $0x218] sm:$0xff] }
  0x19   :  { %v20_v40 = vld [vmem:[%s1249_s0 + $0x30] sm:$0xff]  ;;  %v19_v44 = vld [vmem:[%s1249_s0 + $0x28] sm:$0xff]  ;;  %v21_v45 = vld [vmem:[%s1249_s0 + $0x38] sm:$0xff] }
  0x1a   :  { %730 = vmatpush3.bf16.msra.mxu0 %v729_v10  ;;  %v125_v42 = vld [vmem:[%s1248_s1 + $0x210] sm:$0xff]  ;;  %v25_v46 = vld [vmem:[%s1249_s0 + $0x58] sm:$0xff]  ;;  %v27_v48 = vld [vmem:[%s1249_s0 + $0x68] sm:$0xff] }
  0x1b   :  { %762 = vmatpush3.bf16.msra.mxu1 %v761_v13  ;;  %732 = vmatprep.subr.bf16.mxu0 %v731_v14  ;;  %v775_v47 = vpack.c.bf16 %v126_v43, %v125_v42  ;;  %v127_v49 = vld [vmem:[%s1248_s1 + $0x220] sm:$0xff]  ;;  %v128_v50 = vld [vmem:[%s1248_s1 + $0x228] sm:$0xff]  ;;  %v24_v51 = vld [vmem:[%s1249_s0 + $0x50] sm:$0xff] }
  0x1c   :  { %764 = vmatprep.subr.bf16.mxu1 %v763_v18  ;;  %v26_v52 = vld [vmem:[%s1249_s0 + $0x60] sm:$0xff]  ;;  %v778_v54 = vpack.c.bf16 %v128_v50, %v127_v49  ;;  %v32_v55 = vld [vmem:[%s1249_s0 + $0x90] sm:$0xff]  ;;  %v130_v57 = vld [vmem:[%s1248_s1 + $0x238] sm:$0xff] }
  0x1d   :  { %v30_v53 = vld [vmem:[%s1249_s0 + $0x80] sm:$0xff]  ;;  %v129_v56 = vld [vmem:[%s1248_s1 + $0x230] sm:$0xff]  ;;  %v29_v58 = vld [vmem:[%s1249_s0 + $0x78] sm:$0xff] }
  0x1e   :  { %734 = vmatpush3.bf16.msra.mxu0 %v733_v24  ;;  %v31_v59 = vld [vmem:[%s1249_s0 + $0x88] sm:$0xff]  ;;  %v781_v61 = vpack.c.bf16 %v130_v57, %v129_v56  ;;  %v37_v62 = vld [vmem:[%s1249_s0 + $0xb8] sm:$0xff]  ;;  %v34_v63 = vld [vmem:[%s1249_s0 + $0xa0] sm:$0xff] }
  0x1f   :  { %766 = vmatpush3.bf16.msra.mxu1 %v765_v25  ;;  %736 = vmatprep.subr.bf16.mxu0 %v735_v26  ;;  %v35_v60 = vld [vmem:[%s1249_s0 + $0xa8] sm:$0xff]  ;;  %v36_v0 = vld [vmem:[%s1249_s0 + $0xb0] sm:$0xff]  ;;  %v42_v2 = vld [vmem:[%s1249_s0 + $0xe0] sm:$0xff] }
  0x20   :  { %768 = vmatprep.subr.bf16.mxu1 %v767_v29  ;;  %v40_v1 = vld [vmem:[%s1249_s0 + $0xd0] sm:$0xff]  ;;  %v39_v3 = vld [vmem:[%s1249_s0 + $0xc8] sm:$0xff]  ;;  %v41_v4 = vld [vmem:[%s1249_s0 + $0xd8] sm:$0xff] }
  0x21   :  { %v45_v5 = vld [vmem:[%s1249_s0 + $0xf8] sm:$0xff]  ;;  %v47_v6 = vld [vmem:[%s1249_s0 + $0x108] sm:$0xff]  ;;  %v44_v7 = vld [vmem:[%s1249_s0 + $0xf0] sm:$0xff] }
  0x22   :  { %738 = vmatpush3.bf16.msra.mxu0 %v737_v32  ;;  %v46_v8 = vld [vmem:[%s1249_s0 + $0x100] sm:$0xff]  ;;  %v52_v10 = vld [vmem:[%s1249_s0 + $0x130] sm:$0xff]  ;;  %v49_v11 = vld [vmem:[%s1249_s0 + $0x118] sm:$0xff] }
  0x23   :  { %770 = vmatpush3.bf16.msra.mxu1 %v769_v33  ;;  %771 = vmatprep.subr.bf16.mxu0 %v794_v39  ;;  %v50_v9 = vld [vmem:[%s1249_s0 + $0x120] sm:$0xff]  ;;  %v51_v12 = vld [vmem:[%s1249_s0 + $0x128] sm:$0xff]  ;;  %v57_v14 = vld [vmem:[%s1249_s0 + $0x158] sm:$0xff] }
  0x24   :  { %783 = vmatprep.subr.bf16.mxu1 %v794_v39  ;;  %v55_v13 = vld [vmem:[%s1249_s0 + $0x148] sm:$0xff]  ;;  %v54_v15 = vld [vmem:[%s1249_s0 + $0x140] sm:$0xff]  ;;  %v56_v16 = vld [vmem:[%s1249_s0 + $0x150] sm:$0xff] }
  0x25   :  { %231 = vmatmul.mubr.f32.vlgmr.msra.gmra.mrb[0].mxu0 %v14_v36  ;;  %v18_v18 = vld [vmem:[%s1249_s0 + $0x20] sm:$0xff]  ;;  %v43_v19 = vld [vmem:[%s1249_s0 + $0xe8] sm:$0xff]  ;;  %v48_v21 = vld [vmem:[%s1249_s0 + $0x110] sm:$0xff] }
  0x26   :  { %341 = vmatmul.mubr.f32.vlgmr.msra.gmra.mrb[0].mxu1 %v16_v38  ;;  %773 = vmatpush3.bf16.msra.mxu0 %v772_v37  ;;  %v23_v20 = vld [vmem:[%s1249_s0 + $0x48] sm:$0xff]  ;;  %v28_v22 = vld [vmem:[%s1249_s0 + $0x70] sm:$0xff]  ;;  %v53_v23 = vld [vmem:[%s1249_s0 + $0x138] sm:$0xff] }
  0x27   :  { %235 = vmatprep.mubr.f32.mxu0 %v20_v40  ;;  %345 = vmatprep.mubr.f32.mxu1 %v22_v41  ;;  %v33_v24 = vld [vmem:[%s1249_s0 + $0x98] sm:$0xff]  ;;  %v58_v25 = vld [vmem:[%s1249_s0 + $0x160] sm:$0xff] }
  0x28   :  { %787 = vmatpush3.bf16.msra.mxu1 %v772_v37  ;;  %774 = vmatprep.subr.bf16.mxu0 %v794_v39  ;;  %v38_v26 = vld [vmem:[%s1249_s0 + $0xc0] sm:$0xff] }
  0x29   :  { %236 = vmatmul.mubr.f32.gmra.mrb[2].mxu0 %v19_v44  ;;  %784 = vmatprep.subr.bf16.mxu1 %v794_v39  ;;  %v1189_v28 = vld [vmem:[%s1250_s2] ss:$0 sm:$0xff] }
  0x2a   :  { %346 = vmatmul.mubr.f32.gmra.mrb[2].mxu1 %v21_v45  ;;  %240 = vmatprep.mubr.f32.mxu0 %v25_v46 }
  0x2b   :  { %350 = vmatprep.mubr.f32.mxu1 %v27_v48  ;;  %776 = vmatpush3.bf16.msra.mxu0 %v775_v47 }
  0x2c   :  { %788 = vmatpush3.bf16.msra.mxu1 %v775_v47  ;;  %777 = vmatprep.subr.bf16.mxu0 %v794_v39 }
  0x2d   :  { %241 = vmatmul.mubr.f32.gmra.mrb[4].mxu0 %v24_v51  ;;  %785 = vmatprep.subr.bf16.mxu1 %v794_v39 }
  0x2e   :  { %351 = vmatmul.mubr.f32.gmra.mrb[4].mxu1 %v26_v52  ;;  %245 = vmatprep.mubr.f32.mxu0 %v30_v53 }
  0x2f   :  { %355 = vmatprep.mubr.f32.mxu1 %v32_v55  ;;  %779 = vmatpush3.bf16.msra.mxu0 %v778_v54 }
  0x30   :  { %789 = vmatpush3.bf16.msra.mxu1 %v778_v54  ;;  %780 = vmatprep.subr.bf16.mxu0 %v794_v39 }
  0x31   :  { %246 = vmatmul.mubr.f32.gmra.mrb[6].mxu0 %v29_v58  ;;  %786 = vmatprep.subr.bf16.mxu1 %v794_v39 }
  0x32   :  { %356 = vmatmul.mubr.f32.gmra.mrb[6].mxu1 %v31_v59  ;;  %250 = vmatprep.mubr.f32.mxu0 %v35_v60 }
  0x33   :  { %360 = vmatprep.mubr.f32.mxu1 %v37_v62  ;;  %782 = vmatpush3.bf16.msra.mxu0 %v781_v61 }
  0x34   :  { %790 = vmatpush3.bf16.msra.mxu1 %v781_v61 }
  0x35   :  { %251 = vmatmul.mubr.f32.gmra.mrb[8].mxu0 %v34_v63 }
  0x36   :  { %361 = vmatmul.mubr.f32.gmra.mrb[8].mxu1 %v36_v0  ;;  %255 = vmatprep.mubr.f32.mxu0 %v40_v1 }
  0x37   :  { %365 = vmatprep.mubr.f32.mxu1 %v42_v2 }
  0x39   :  { %256 = vmatmul.mubr.f32.gmra.mrb[10].mxu0 %v39_v3 }
  0x3a   :  { %366 = vmatmul.mubr.f32.gmra.mrb[10].mxu1 %v41_v4  ;;  %260 = vmatprep.mubr.f32.mxu0 %v45_v5 }
  0x3b   :  { %370 = vmatprep.mubr.f32.mxu1 %v47_v6 }
  0x3d   :  { %261 = vmatmul.mubr.f32.gmra.mrb[12].mxu0 %v44_v7 }
  0x3e   :  { %371 = vmatmul.mubr.f32.gmra.mrb[12].mxu1 %v46_v8  ;;  %265 = vmatprep.mubr.f32.mxu0 %v50_v9 }
  0x3f   :  { %375 = vmatprep.mubr.f32.mxu1 %v52_v10 }
  0x41   :  { %266 = vmatmul.mubr.f32.gmra.mrb[14].mxu0 %v49_v11 }
  0x42   :  { %376 = vmatmul.mubr.f32.gmra.mrb[14].mxu1 %v51_v12  ;;  %270 = vmatprep.mubr.f32.mxu0 %v55_v13 }
  0x43   :  { %380 = vmatprep.mubr.f32.mxu1 %v57_v14 }
  0x45   :  { %271 = vmatmul.mubr.f32.gmra.mrb[16].mxu0 %v54_v15 }
  0x46   :  { %381 = vmatmul.mubr.f32.gmra.mrb[16].mxu1 %v56_v16  ;;  %680 = vmatprep.mubr.msk.f32.mxu0 %vm795_vm0, %v796_v17 }
  0x47   :  { %695 = vmatprep.mubr.msk.f32.mxu1 %vm795_vm0, %v796_v17 }
  0x49   :  { %681 = vmatmul.mubr.msk.f32.vlgmr.msra.gmra.mrb[18].mxu0 %vm138_vm1, %v18_v18 }
  0x4a   :  { %696 = vmatmul.mubr.msk.f32.vlgmr.msra.gmra.mrb[18].mxu1 %vm138_vm1, %v43_v19  ;;  %683 = vmatprep.mubr.msk.f32.mxu0 %vm795_vm0, %v796_v17 }
  0x4b   :  { %698 = vmatprep.mubr.msk.f32.mxu1 %vm795_vm0, %v796_v17 }
  0x4d   :  { %684 = vmatmul.mubr.msk.f32.gmra.mrb[20].mxu0 %vm138_vm1, %v23_v20 }
  0x4e   :  { %699 = vmatmul.mubr.msk.f32.gmra.mrb[20].mxu1 %vm138_vm1, %v48_v21  ;;  %686 = vmatprep.mubr.msk.f32.mxu0 %vm795_vm0, %v796_v17 }
  0x4f   :  { %701 = vmatprep.mubr.msk.f32.mxu1 %vm795_vm0, %v796_v17 }
  0x51   :  { %687 = vmatmul.mubr.msk.f32.gmra.mrb[22].mxu0 %vm138_vm1, %v28_v22 }
  0x52   :  { %702 = vmatmul.mubr.msk.f32.gmra.mrb[22].mxu1 %vm138_vm1, %v53_v23  ;;  %689 = vmatprep.mubr.msk.f32.mxu0 %vm795_vm0, %v796_v17 }
  0x53   :  { %704 = vmatprep.mubr.msk.f32.mxu1 %vm795_vm0, %v796_v17 }
  0x55   :  { %690 = vmatmul.mubr.msk.f32.gmra.mrb[24].mxu0 %vm138_vm1, %v33_v24 }
  0x56   :  { %705 = vmatmul.mubr.msk.f32.gmra.mrb[24].mxu1 %vm138_vm1, %v58_v25  ;;  %692 = vmatprep.mubr.msk.f32.mxu0 %vm795_vm0, %v796_v17 }
  0x59   :  { %693 = vmatmul.mubr.msk.f32.gmra.mrb[26].mxu0 %vm138_vm1, %v38_v26 }
  0xf8   :  { %v561_v27 = vpop.f32.mrb[0].mxu0 }
  0xf9   :  { %v562_v29 = vpop.f32.mrb[1].mxu0  ;;  %v620_v30 = vpop.f32.mrb[0].mxu1 }
  0xfa   :  { %v563_v31 = vadd.f32 %v562_v29, %v561_v27  ;;  %v621_v32 = vpop.f32.mrb[1].mxu1 }
  0xfb   :  { %v622_v33 = vadd.f32 %v621_v32, %v620_v30 }
  0xfc   :  { %v233_v34 = vadd.f32 %v563_v31, %v1189_v28  ;;  %v564_v35 = vpop.f32.mrb[2].mxu0 }
  0xfd   :  { %v565_v36 = vpop.f32.mrb[3].mxu0  ;;  %v623_v37 = vpop.f32.mrb[2].mxu1 }
  0xfe   :  { %v566_v38 = vadd.f32 %v565_v36, %v564_v35  ;;  %v624_v39 = vpop.f32.mrb[3].mxu1  ;;  %v343_v40 = vadd.f32 %v622_v33, %v233_v34 }
  0xff   :  { %v625_v41 = vadd.f32 %v624_v39, %v623_v37 }
 0x100   :  { %v238_v42 = vadd.f32 %v566_v38, %v1189_v28  ;;  %v567_v43 = vpop.f32.mrb[4].mxu0 }
 0x101   :  { %v568_v44 = vpop.f32.mrb[5].mxu0  ;;  %v626_v45 = vpop.f32.mrb[4].mxu1 }
 0x102   :  { %v569_v46 = vadd.f32 %v568_v44, %v567_v43  ;;  %v627_v47 = vpop.f32.mrb[5].mxu1  ;;  %v1193_v48 = vadd.f32 %v625_v41, %v238_v42 }
 0x103   :  { %v628_v49 = vadd.f32 %v627_v47, %v626_v45 }
 0x104   :  { %v243_v50 = vadd.f32 %v569_v46, %v1189_v28  ;;  %v570_v51 = vpop.f32.mrb[6].mxu0 }
 0x105   :  { %v571_v52 = vpop.f32.mrb[7].mxu0  ;;  %v629_v53 = vpop.f32.mrb[6].mxu1 }
 0x106   :  { %v572_v54 = vadd.f32 %v571_v52, %v570_v51  ;;  %v630_v55 = vpop.f32.mrb[7].mxu1  ;;  %v1196_v56 = vadd.f32 %v628_v49, %v243_v50 }
 0x107   :  { %v631_v57 = vadd.f32 %v630_v55, %v629_v53 }
 0x108   :  { %v248_v58 = vadd.f32 %v572_v54, %v1189_v28  ;;  %v573_v59 = vpop.f32.mrb[8].mxu0 }
 0x109   :  { %v574_v60 = vpop.f32.mrb[9].mxu0  ;;  %v632_v61 = vpop.f32.mrb[8].mxu1 }
 0x10a   :  { %v575_v62 = vadd.f32 %v574_v60, %v573_v59  ;;  %v633_v63 = vpop.f32.mrb[9].mxu1  ;;  %v1199_v0 = vadd.f32 %v631_v57, %v248_v58 }
 0x10b   :  { %v634_v1 = vadd.f32 %v633_v63, %v632_v61 }
 0x10c   :  { %v253_v2 = vadd.f32 %v575_v62, %v1189_v28  ;;  %v576_v3 = vpop.f32.mrb[10].mxu0 }
 0x10d   :  { %v577_v4 = vpop.f32.mrb[11].mxu0  ;;  %v635_v5 = vpop.f32.mrb[10].mxu1 }
 0x10e   :  { %v578_v6 = vadd.f32 %v577_v4, %v576_v3  ;;  %v636_v7 = vpop.f32.mrb[11].mxu1  ;;  %v1202_v8 = vadd.f32 %v634_v1, %v253_v2 }
 0x10f   :  { %v637_v9 = vadd.f32 %v636_v7, %v635_v5 }
 0x110   :  { %v258_v10 = vadd.f32 %v578_v6, %v1189_v28  ;;  %v579_v11 = vpop.f32.mrb[12].mxu0 }
 0x111   :  { %v580_v12 = vpop.f32.mrb[13].mxu0  ;;  %v638_v13 = vpop.f32.mrb[12].mxu1 }
 0x112   :  { %v581_v14 = vadd.f32 %v580_v12, %v579_v11  ;;  %v639_v15 = vpop.f32.mrb[13].mxu1  ;;  %v368_v16 = vadd.f32 %v637_v9, %v258_v10 }
 0x113   :  { %v640_v17 = vadd.f32 %v639_v15, %v638_v13 }
 0x114   :  { %v263_v18 = vadd.f32 %v581_v14, %v1189_v28  ;;  %v582_v19 = vpop.f32.mrb[14].mxu0 }
 0x115   :  { %v583_v20 = vpop.f32.mrb[15].mxu0  ;;  %v641_v21 = vpop.f32.mrb[14].mxu1 }
 0x116   :  { %v584_v22 = vadd.f32 %v583_v20, %v582_v19  ;;  %v642_v23 = vpop.f32.mrb[15].mxu1  ;;  %v373_v24 = vadd.f32 %v640_v17, %v263_v18 }
 0x117   :  { %v643_v25 = vadd.f32 %v642_v23, %v641_v21 }
 0x118   :  { %v268_v26 = vadd.f32 %v584_v22, %v1189_v28  ;;  %v585_v27 = vpop.f32.mrb[16].mxu0 }
 0x119   :  { %v586_v29 = vpop.f32.mrb[17].mxu0  ;;  %v644_v30 = vpop.f32.mrb[16].mxu1 }
 0x11a   :  { %v587_v31 = vadd.f32 %v586_v29, %v585_v27  ;;  %v645_v32 = vpop.f32.mrb[17].mxu1  ;;  %v378_v33 = vadd.f32 %v643_v25, %v268_v26 }
 0x11b   :  { %v646_v34 = vadd.f32 %v645_v32, %v644_v30 }
 0x11c   :  { %v273_v35 = vadd.f32 %v587_v31, %v1189_v28  ;;  %v452_v36 = vpop.f32.mrb[18].mxu0 }
 0x11d   :  { %v453_v37 = vadd.f32 %v452_v36, %v343_v40  ;;  %v477_v38 = vpop.f32.mrb[18].mxu1  ;;  %v682_v39 = vpop.f32.mrb[19].mxu0 }
 0x11e   :  { %v478_v41 = vadd.f32 %v477_v38, %v368_v16  ;;  %v697_v42 = vpop.f32.mrb[19].mxu1  ;;  %v383_v43 = vadd.f32 %v646_v34, %v273_v35 }
 0x11f   :  { %v496_v44 = vmax.f32 %v453_v37, 0.0 }
 0x120   :  { %v501_v45 = vmax.f32 %v478_v41, 0.0  ;;  %v457_v46 = vpop.f32.mrb[20].mxu0 }
 0x121   :  { %506 = vst.msk [vmem:[%s1251_s3] sm:$0xff] %vm505_vm2, %v496_v44  ;;  %v458_v47 = vadd.f32 %v457_v46, %v1193_v48  ;;  %v482_v49 = vpop.f32.mrb[20].mxu1  ;;  %v685_v28 = vpop.f32.mrb[21].mxu0 }
 0x122   :  { %511 = vst.msk [vmem:[%s1251_s3 + $0x28] sm:$0xff] %vm505_vm2, %v501_v45  ;;  %v483_v40 = vadd.f32 %v482_v49, %v373_v24  ;;  %v700_v50 = vpop.f32.mrb[21].mxu1 }
 0x123   :  { %v497_v51 = vmax.f32 %v458_v47, 0.0 }
 0x124   :  { %v502_v52 = vmax.f32 %v483_v40, 0.0  ;;  %v462_v53 = vpop.f32.mrb[22].mxu0 }
 0x125   :  { %507 = vst.msk [vmem:[%s1251_s3 + $0x8] sm:$0xff] %vm505_vm2, %v497_v51  ;;  %v463_v54 = vadd.f32 %v462_v53, %v1196_v56  ;;  %v487_v48 = vpop.f32.mrb[22].mxu1  ;;  %v688_v55 = vpop.f32.mrb[23].mxu0 }
 0x126   :  { %512 = vst.msk [vmem:[%s1251_s3 + $0x30] sm:$0xff] %vm505_vm2, %v502_v52  ;;  %v488_v57 = vadd.f32 %v487_v48, %v378_v33  ;;  %v703_v58 = vpop.f32.mrb[23].mxu1 }
 0x127   :  { %v498_v59 = vmax.f32 %v463_v54, 0.0 }
 0x128   :  { %v503_v60 = vmax.f32 %v488_v57, 0.0  ;;  %v467_v61 = vpop.f32.mrb[24].mxu0 }
 0x129   :  { %508 = vst.msk [vmem:[%s1251_s3 + $0x10] sm:$0xff] %vm505_vm2, %v498_v59  ;;  %v468_v62 = vadd.f32 %v467_v61, %v1199_v0  ;;  %v492_v56 = vpop.f32.mrb[24].mxu1  ;;  %v691_v63 = vpop.f32.mrb[25].mxu0 }
 0x12a   :  { %513 = vst.msk [vmem:[%s1251_s3 + $0x38] sm:$0xff] %vm505_vm2, %v503_v60  ;;  %v493_v1 = vadd.f32 %v492_v56, %v383_v43  ;;  %v706_v2 = vpop.f32.mrb[25].mxu1 }
 0x12b   :  { %v499_v3 = vmax.f32 %v468_v62, 0.0 }
 0x12c   :  { %v504_v4 = vmax.f32 %v493_v1, 0.0  ;;  %v472_v5 = vpop.f32.mrb[26].mxu0 }
 0x12d   :  { %509 = vst.msk [vmem:[%s1251_s3 + $0x18] sm:$0xff] %vm505_vm2, %v499_v3  ;;  %v473_v6 = vadd.f32 %v472_v5, %v1202_v8  ;;  %v694_v0 = vpop.f32.mrb[27].mxu0 }
 0x12e   :  { %514 = vst.msk [vmem:[%s1251_s3 + $0x40] sm:$0xff] %vm505_vm2, %v504_v4 }
 0x12f   :  { %v500_v7 = vmax.f32 %v473_v6, 0.0 }
 0x131   :  { %510 = vst.msk [vmem:[%s1251_s3 + $0x20] sm:$0xff] %vm505_vm2, %v500_v7 }

// kernel: network_obs_forward.5
= control target key start
LH: loop header
LB: loop body
LE: loop exit
PB: predicated region body
PF: predicated region fallthrough
CT: control target
= control target key end

     0   :  { %vm999_vm0 = vcmask 523264   ;;  %s7038_s0 = inlined_call_operand.vmem [shape: f32[2,1728], index: 0, kind: input, shape index: {}]   ;;  %s7039_s1 = inlined_call_operand.vmem [shape: f32[1728,512], index: 1, kind: input, shape index: {}]   ;;  %s7040_s2 = inlined_call_operand.vmem [shape: f32[1,512], index: 2, kind: input, shape index: {}]   ;;  %s7041_s3 = inlined_call_operand.vmem [shape: f32[512,256], index: 3, kind: input, shape index: {}]   ;;  %s7042_s4 = inlined_call_operand.vmem [shape: f32[1,256], index: 4, kind: input, shape index: {}]   ;;  %s7043_s5 = inlined_call_operand.vmem [shape: f32[256,128], index: 5, kind: input, shape index: {}]   ;;  %s7044_s6 = inlined_call_operand.vmem [shape: f32[1,128], index: 6, kind: input, shape index: {}]   ;;  %s7045_s7 = inlined_call_operand.vmem [shape: f32[128,128], index: 7, kind: input, shape index: {}]   ;;  %s7046_s8 = inlined_call_operand.vmem [shape: f32[1,128], index: 8, kind: input, shape index: {}]   ;;  %s7047_s9 = inlined_call_operand.hbm [shape: f32[2,128], index: 9, kind: output, shape index: {}]  }
   0x1   :  { %v38_v0 = vld [vmem:[%s7039_s1 + $0x8] sm:$0xff]  ;;  %v37_v5 = vld [vmem:[%s7039_s1] sm:$0xff] }
   0x2   :  { %v42_v1 = vld [vmem:[%s7039_s1 + $0x28] sm:$0xff]  ;;  %v41_v6 = vld [vmem:[%s7039_s1 + $0x20] sm:$0xff] }
   0x3   :  { %v806_v2 = vld [vmem:[%s7039_s1 + $0x1808] sm:$0xff]  ;;  %v2594_v3 = vpack.c.bf16 %v42_v1, %v38_v0  ;;  %v2596_v8 = vpack.c.bf16 %v41_v6, %v37_v5  ;;  %v805_v9 = vld [vmem:[%s7039_s1 + $0x1800] sm:$0xff] }
   0x4   :  { %v810_v4 = vld [vmem:[%s7039_s1 + $0x1828] sm:$0xff]  ;;  %v809_v10 = vld [vmem:[%s7039_s1 + $0x1820] sm:$0xff] }
   0x5   :  { %v2978_v7 = vpack.c.bf16 %v810_v4, %v806_v2  ;;  %v46_v11 = vld [vmem:[%s7039_s1 + $0x48] sm:$0xff]  ;;  %2595 = vmatprep.subr.bf16.mxu0 %v2594_v3  ;;  %v2980_v12 = vpack.c.bf16 %v809_v10, %v805_v9  ;;  %v45_v18 = vld [vmem:[%s7039_s1 + $0x40] sm:$0xff] }
   0x6   :  { %v50_v13 = vld [vmem:[%s7039_s1 + $0x68] sm:$0xff]  ;;  %2597 = vmatpush1.bf16.msra.mxu0 %v2596_v8  ;;  %v49_v19 = vld [vmem:[%s7039_s1 + $0x60] sm:$0xff] }
   0x7   :  { %v814_v14 = vld [vmem:[%s7039_s1 + $0x1848] sm:$0xff]  ;;  %2979 = vmatprep.subr.bf16.mxu1 %v2978_v7  ;;  %v2598_v16 = vpack.c.bf16 %v50_v13, %v46_v11  ;;  %v813_v20 = vld [vmem:[%s7039_s1 + $0x1840] sm:$0xff]  ;;  %v2600_v21 = vpack.c.bf16 %v49_v19, %v45_v18 }
   0x8   :  { %v818_v15 = vld [vmem:[%s7039_s1 + $0x1868] sm:$0xff]  ;;  %2981 = vmatpush1.bf16.msra.mxu1 %v2980_v12  ;;  %v817_v22 = vld [vmem:[%s7039_s1 + $0x1860] sm:$0xff] }
   0x9   :  { %v2982_v17 = vpack.c.bf16 %v818_v15, %v814_v14  ;;  %v54_v23 = vld [vmem:[%s7039_s1 + $0x88] sm:$0xff]  ;;  %2599 = vmatprep.subr.bf16.mxu0 %v2598_v16  ;;  %v2984_v25 = vpack.c.bf16 %v817_v22, %v813_v20  ;;  %v53_v29 = vld [vmem:[%s7039_s1 + $0x80] sm:$0xff] }
   0xa   :  { %v58_v24 = vld [vmem:[%s7039_s1 + $0xa8] sm:$0xff]  ;;  %v57_v31 = vld [vmem:[%s7039_s1 + $0xa0] sm:$0xff]  ;;  %2601 = vmatpush1.bf16.msra.mxu0 %v2600_v21 }
   0xb   :  { %2983 = vmatprep.subr.bf16.mxu1 %v2982_v17  ;;  %v2602_v26 = vpack.c.bf16 %v58_v24, %v54_v23  ;;  %v822_v27 = vld [vmem:[%s7039_s1 + $0x1888] sm:$0xff]  ;;  %v821_v32 = vld [vmem:[%s7039_s1 + $0x1880] sm:$0xff]  ;;  %v2604_v34 = vpack.c.bf16 %v57_v31, %v53_v29 }
   0xc   :  { %v826_v28 = vld [vmem:[%s7039_s1 + $0x18a8] sm:$0xff]  ;;  %v825_v33 = vld [vmem:[%s7039_s1 + $0x18a0] sm:$0xff]  ;;  %2985 = vmatpush1.bf16.msra.mxu1 %v2984_v25 }
   0xd   :  { %v2986_v30 = vpack.c.bf16 %v826_v28, %v822_v27  ;;  %v62_v35 = vld [vmem:[%s7039_s1 + $0xc8] sm:$0xff]  ;;  %2603 = vmatprep.subr.bf16.mxu0 %v2602_v26  ;;  %v2988_v38 = vpack.c.bf16 %v825_v33, %v821_v32  ;;  %v61_v41 = vld [vmem:[%s7039_s1 + $0xc0] sm:$0xff] }
   0xe   :  { %v66_v36 = vld [vmem:[%s7039_s1 + $0xe8] sm:$0xff]  ;;  %v65_v42 = vld [vmem:[%s7039_s1 + $0xe0] sm:$0xff]  ;;  %2605 = vmatpush1.bf16.msra.mxu0 %v2604_v34 }
   0xf   :  { %v830_v37 = vld [vmem:[%s7039_s1 + $0x18c8] sm:$0xff]  ;;  %v2606_v39 = vpack.c.bf16 %v66_v36, %v62_v35  ;;  %2987 = vmatprep.subr.bf16.mxu1 %v2986_v30  ;;  %v829_v44 = vld [vmem:[%s7039_s1 + $0x18c0] sm:$0xff]  ;;  %v2608_v50 = vpack.c.bf16 %v65_v42, %v61_v41 }
  0x10   :  { %v834_v40 = vld [vmem:[%s7039_s1 + $0x18e8] sm:$0xff]  ;;  %v833_v45 = vld [vmem:[%s7039_s1 + $0x18e0] sm:$0xff]  ;;  %2989 = vmatpush1.bf16.msra.mxu1 %v2988_v38 }
  0x11   :  { %v2990_v43 = vpack.c.bf16 %v834_v40, %v830_v37  ;;  %v70_v46 = vld [vmem:[%s7039_s1 + $0x108] sm:$0xff]  ;;  %2607 = vmatprep.subr.bf16.mxu0 %v2606_v39  ;;  %v2992_v51 = vpack.c.bf16 %v833_v45, %v829_v44  ;;  %v69_v53 = vld [vmem:[%s7039_s1 + $0x100] sm:$0xff] }
  0x12   :  { %v74_v47 = vld [vmem:[%s7039_s1 + $0x128] sm:$0xff]  ;;  %v73_v54 = vld [vmem:[%s7039_s1 + $0x120] sm:$0xff]  ;;  %2609 = vmatpush1.bf16.msra.mxu0 %v2608_v50 }
  0x13   :  { %v838_v48 = vld [vmem:[%s7039_s1 + $0x1908] sm:$0xff]  ;;  %v2610_v52 = vpack.c.bf16 %v74_v47, %v70_v46  ;;  %v837_v55 = vld [vmem:[%s7039_s1 + $0x1900] sm:$0xff]  ;;  %2991 = vmatprep.subr.bf16.mxu1 %v2990_v43  ;;  %v2612_v62 = vpack.c.bf16 %v73_v54, %v69_v53  ;;  %v3993_v47 = vld.sshfl [vmem:[%s7038_s0 + $0x18] sm:$0x33 pattern:$0x76325410] }
  0x14   :  { %v842_v49 = vld [vmem:[%s7039_s1 + $0x1928] sm:$0xff]  ;;  %v841_v57 = vld [vmem:[%s7039_s1 + $0x1920] sm:$0xff]  ;;  %2993 = vmatpush1.bf16.msra.mxu1 %v2992_v51 }
  0x15   :  { %v2994_v56 = vpack.c.bf16 %v842_v49, %v838_v48  ;;  %v78_v58 = vld [vmem:[%s7039_s1 + $0x148] sm:$0xff]  ;;  %2611 = vmatprep.subr.bf16.mxu0 %v2610_v52  ;;  %v2996_v63 = vpack.c.bf16 %v841_v57, %v837_v55  ;;  %v77_v1 = vld [vmem:[%s7039_s1 + $0x140] sm:$0xff]  ;;  %v903_v48 = vlaneseq  ;;  %v3707_v49 = vmov 1983009808  }
  0x16   :  { %v82_v59 = vld [vmem:[%s7039_s1 + $0x168] sm:$0xff]  ;;  %v81_v2 = vld [vmem:[%s7039_s1 + $0x160] sm:$0xff]  ;;  %2613 = vmatpush1.bf16.msra.mxu0 %v2612_v62  ;;  %v929_v50 = vunpack.c.l.s4 %v3707_v49  ;;  %v51_v49 = vld [vmem:[%s7039_s1 + $0x70] sm:$0xff] }
  0x17   :  { %v846_v60 = vld [vmem:[%s7039_s1 + $0x1948] sm:$0xff]  ;;  %v2614_v0 = vpack.c.bf16 %v82_v59, %v78_v58  ;;  %v845_v3 = vld [vmem:[%s7039_s1 + $0x1940] sm:$0xff]  ;;  %2995 = vmatprep.subr.bf16.mxu1 %v2994_v56  ;;  %v2616_v10 = vpack.c.bf16 %v81_v2, %v77_v1  ;;  %v4006_v56 = vcombine.high %v3993_v47, %v3993_v47 }
  0x18   :  { %v850_v61 = vld [vmem:[%s7039_s1 + $0x1968] sm:$0xff]  ;;  %v849_v5 = vld [vmem:[%s7039_s1 + $0x1960] sm:$0xff]  ;;  %2997 = vmatpush1.bf16.msra.mxu1 %v2996_v63  ;;  %v930_v1 = vunpack.c.0.s8 %v929_v50 }
  0x19   :  { %v2998_v4 = vpack.c.bf16 %v850_v61, %v846_v60  ;;  %v86_v6 = vld [vmem:[%s7039_s1 + $0x188] sm:$0xff]  ;;  %2615 = vmatprep.subr.bf16.mxu0 %v2614_v0  ;;  %v3000_v11 = vpack.c.bf16 %v849_v5, %v845_v3  ;;  %v85_v13 = vld [vmem:[%s7039_s1 + $0x180] sm:$0xff]  ;;  %2503 = vmatprep.mubr.msk.f32.mxu1 %vm999_vm0, %v4006_v56  ;;  %v4025_v0 = vshrl.u32 %v903_v48, 7 }
  0x1a   :  { %v90_v7 = vld [vmem:[%s7039_s1 + $0x1a8] sm:$0xff]  ;;  %v89_v14 = vld [vmem:[%s7039_s1 + $0x1a0] sm:$0xff]  ;;  %2617 = vmatpush1.bf16.msra.mxu0 %v2616_v10 }
  0x1b   :  { %v854_v8 = vld [vmem:[%s7039_s1 + $0x1988] sm:$0xff]  ;;  %v2618_v12 = vpack.c.bf16 %v90_v7, %v86_v6  ;;  %v853_v15 = vld [vmem:[%s7039_s1 + $0x1980] sm:$0xff]  ;;  %2999 = vmatprep.subr.bf16.mxu1 %v2998_v4  ;;  %v2620_v22 = vpack.c.bf16 %v89_v14, %v85_v13  ;;  %v4052_v14 = vsub.s32 %v930_v1, %v4025_v0  ;;  %v64_v1 = vld [vmem:[%s7039_s1 + $0xd8] sm:$0xff] }
  0x1c   :  { %v858_v9 = vld [vmem:[%s7039_s1 + $0x19a8] sm:$0xff]  ;;  %v857_v17 = vld [vmem:[%s7039_s1 + $0x19a0] sm:$0xff]  ;;  %3001 = vmatpush1.bf16.msra.mxu1 %v3000_v11 }
  0x1d   :  { %v3002_v16 = vpack.c.bf16 %v858_v9, %v854_v8  ;;  %v94_v18 = vld [vmem:[%s7039_s1 + $0x1c8] sm:$0xff]  ;;  %2619 = vmatprep.subr.bf16.mxu0 %v2618_v12  ;;  %v3004_v23 = vpack.c.bf16 %v857_v17, %v853_v15  ;;  %v93_v25 = vld [vmem:[%s7039_s1 + $0x1c0] sm:$0xff] }
  0x1e   :  { %v98_v19 = vld [vmem:[%s7039_s1 + $0x1e8] sm:$0xff]  ;;  %v97_v26 = vld [vmem:[%s7039_s1 + $0x1e0] sm:$0xff]  ;;  %2621 = vmatpush1.bf16.msra.mxu0 %v2620_v22 }
  0x1f   :  { %v862_v20 = vld [vmem:[%s7039_s1 + $0x19c8] sm:$0xff]  ;;  %v2622_v24 = vpack.c.bf16 %v98_v19, %v94_v18  ;;  %v861_v27 = vld [vmem:[%s7039_s1 + $0x19c0] sm:$0xff]  ;;  %3003 = vmatprep.subr.bf16.mxu1 %v3002_v16  ;;  %v2624_v34 = vpack.c.bf16 %v97_v26, %v93_v25  ;;  %v44_v25 = vld [vmem:[%s7039_s1 + $0x38] sm:$0xff] }
  0x20   :  { %v866_v21 = vld [vmem:[%s7039_s1 + $0x19e8] sm:$0xff]  ;;  %v865_v29 = vld [vmem:[%s7039_s1 + $0x19e0] sm:$0xff]  ;;  %3005 = vmatpush1.bf16.msra.mxu1 %v3004_v23 }
  0x21   :  { %v3006_v28 = vpack.c.bf16 %v866_v21, %v862_v20  ;;  %v102_v30 = vld [vmem:[%s7039_s1 + $0x208] sm:$0xff]  ;;  %2623 = vmatprep.subr.bf16.mxu0 %v2622_v24  ;;  %v3008_v35 = vpack.c.bf16 %v865_v29, %v861_v27  ;;  %v101_v37 = vld [vmem:[%s7039_s1 + $0x200] sm:$0xff]  ;;  %v40_v24 = vld [vmem:[%s7039_s1 + $0x18] sm:$0xff] }
  0x22   :  { %v106_v31 = vld [vmem:[%s7039_s1 + $0x228] sm:$0xff]  ;;  %v105_v38 = vld [vmem:[%s7039_s1 + $0x220] sm:$0xff]  ;;  %2625 = vmatpush1.bf16.msra.mxu0 %v2624_v34  ;;  %v3026_v34 = vpack.c.bf16 %v44_v25, %v40_v24  ;;  %v75_v25 = vld [vmem:[%s7039_s1 + $0x130] sm:$0xff] }
  0x23   :  { %v870_v32 = vld [vmem:[%s7039_s1 + $0x1a08] sm:$0xff]  ;;  %v2626_v36 = vpack.c.bf16 %v106_v31, %v102_v30  ;;  %v869_v39 = vld [vmem:[%s7039_s1 + $0x1a00] sm:$0xff]  ;;  %3007 = vmatprep.subr.bf16.mxu1 %v3006_v28  ;;  %v2628_v46 = vpack.c.bf16 %v105_v38, %v101_v37 }
  0x24   :  { %v874_v33 = vld [vmem:[%s7039_s1 + $0x1a28] sm:$0xff]  ;;  %v873_v41 = vld [vmem:[%s7039_s1 + $0x1a20] sm:$0xff]  ;;  %3009 = vmatpush1.bf16.msra.mxu1 %v3008_v35  ;;  %v43_v35 = vld [vmem:[%s7039_s1 + $0x30] sm:$0xff] }
  0x25   :  { %v3010_v40 = vpack.c.bf16 %v874_v33, %v870_v32  ;;  %v110_v42 = vld [vmem:[%s7039_s1 + $0x248] sm:$0xff]  ;;  %2627 = vmatprep.subr.bf16.mxu0 %v2626_v36  ;;  %v3012_v51 = vpack.c.bf16 %v873_v41, %v869_v39  ;;  %v109_v53 = vld [vmem:[%s7039_s1 + $0x240] sm:$0xff]  ;;  %v39_v33 = vld [vmem:[%s7039_s1 + $0x10] sm:$0xff] }
  0x26   :  { %v114_v43 = vld [vmem:[%s7039_s1 + $0x268] sm:$0xff]  ;;  %v113_v54 = vld [vmem:[%s7039_s1 + $0x260] sm:$0xff]  ;;  %2629 = vmatpush1.bf16.msra.mxu0 %v2628_v46  ;;  %v48_v39 = vld [vmem:[%s7039_s1 + $0x58] sm:$0xff] }
  0x27   :  { %v878_v44 = vld [vmem:[%s7039_s1 + $0x1a48] sm:$0xff]  ;;  %v2630_v52 = vpack.c.bf16 %v114_v43, %v110_v42  ;;  %v877_v55 = vld [vmem:[%s7039_s1 + $0x1a40] sm:$0xff]  ;;  %3011 = vmatprep.subr.bf16.mxu1 %v3010_v40  ;;  %v2632_v63 = vpack.c.bf16 %v113_v54, %v109_v53  ;;  %v52_v40 = vld [vmem:[%s7039_s1 + $0x78] sm:$0xff]  ;;  %v3028_v42 = vpack.c.bf16 %v43_v35, %v39_v33 }
  0x28   :  { %v882_v45 = vld [vmem:[%s7039_s1 + $0x1a68] sm:$0xff]  ;;  %v881_v58 = vld [vmem:[%s7039_s1 + $0x1a60] sm:$0xff]  ;;  %3013 = vmatpush1.bf16.msra.mxu1 %v3012_v51  ;;  %v47_v46 = vld [vmem:[%s7039_s1 + $0x50] sm:$0xff]  ;;  %v3030_v48 = vpack.c.bf16 %v52_v40, %v48_v39 }
  0x29   :  { %v3014_v57 = vpack.c.bf16 %v882_v45, %v878_v44  ;;  %v118_v59 = vld [vmem:[%s7039_s1 + $0x288] sm:$0xff]  ;;  %2631 = vmatprep.subr.bf16.mxu0 %v2630_v52  ;;  %v3016_v2 = vpack.c.bf16 %v881_v58, %v877_v55  ;;  %v117_v4 = vld [vmem:[%s7039_s1 + $0x280] sm:$0xff]  ;;  %v56_v52 = vld [vmem:[%s7039_s1 + $0x98] sm:$0xff]  ;;  %v3032_v55 = vpack.c.bf16 %v51_v49, %v47_v46 }
  0x2a   :  { %v122_v60 = vld [vmem:[%s7039_s1 + $0x2a8] sm:$0xff]  ;;  %v121_v5 = vld [vmem:[%s7039_s1 + $0x2a0] sm:$0xff]  ;;  %2633 = vmatpush1.bf16.msra.mxu0 %v2632_v63  ;;  %v60_v53 = vld [vmem:[%s7039_s1 + $0xb8] sm:$0xff] }
  0x2b   :  { %v886_v61 = vld [vmem:[%s7039_s1 + $0x1a88] sm:$0xff]  ;;  %v2634_v3 = vpack.c.bf16 %v122_v60, %v118_v59  ;;  %v885_v6 = vld [vmem:[%s7039_s1 + $0x1a80] sm:$0xff]  ;;  %3015 = vmatprep.subr.bf16.mxu1 %v3014_v57  ;;  %v2636_v13 = vpack.c.bf16 %v121_v5, %v117_v4  ;;  %v55_v60 = vld [vmem:[%s7039_s1 + $0x90] sm:$0xff] }
  0x2c   :  { %v890_v62 = vld [vmem:[%s7039_s1 + $0x1aa8] sm:$0xff]  ;;  %v889_v8 = vld [vmem:[%s7039_s1 + $0x1aa0] sm:$0xff]  ;;  %3017 = vmatpush1.bf16.msra.mxu1 %v3016_v2  ;;  %v68_v2 = vld [vmem:[%s7039_s1 + $0xf8] sm:$0xff] }
  0x2d   :  { %v3018_v7 = vpack.c.bf16 %v890_v62, %v886_v61  ;;  %v126_v9 = vld [vmem:[%s7039_s1 + $0x2c8] sm:$0xff]  ;;  %2635 = vmatprep.subr.bf16.mxu0 %v2634_v3  ;;  %v3020_v15 = vpack.c.bf16 %v889_v8, %v885_v6  ;;  %v125_v17 = vld [vmem:[%s7039_s1 + $0x2c0] sm:$0xff]  ;;  %v59_v61 = vld [vmem:[%s7039_s1 + $0xb0] sm:$0xff] }
  0x2e   :  { %v130_v10 = vld [vmem:[%s7039_s1 + $0x2e8] sm:$0xff]  ;;  %v129_v18 = vld [vmem:[%s7039_s1 + $0x2e0] sm:$0xff]  ;;  %2637 = vmatpush1.bf16.msra.mxu0 %v2636_v13  ;;  %v3036_v5 = vpack.c.bf16 %v59_v61, %v55_v60  ;;  %v83_v39 = vld [vmem:[%s7039_s1 + $0x170] sm:$0xff] }
  0x2f   :  { %v894_v11 = vld [vmem:[%s7039_s1 + $0x1ac8] sm:$0xff]  ;;  %v2638_v16 = vpack.c.bf16 %v130_v10, %v126_v9  ;;  %v893_v19 = vld [vmem:[%s7039_s1 + $0x1ac0] sm:$0xff]  ;;  %3019 = vmatprep.subr.bf16.mxu1 %v3018_v7  ;;  %v2640_v27 = vpack.c.bf16 %v129_v18, %v125_v17  ;;  %v63_v9 = vld [vmem:[%s7039_s1 + $0xd0] sm:$0xff]  ;;  %v3038_v10 = vpack.c.bf16 %v68_v2, %v64_v1 }
  0x30   :  { %v898_v12 = vld [vmem:[%s7039_s1 + $0x1ae8] sm:$0xff]  ;;  %v897_v21 = vld [vmem:[%s7039_s1 + $0x1ae0] sm:$0xff]  ;;  %3021 = vmatpush1.bf16.msra.mxu1 %v3020_v15  ;;  %v72_v15 = vld [vmem:[%s7039_s1 + $0x118] sm:$0xff] }
  0x31   :  { %v3022_v20 = vpack.c.bf16 %v898_v12, %v894_v11  ;;  %v134_v22 = vld [vmem:[%s7039_s1 + $0x308] sm:$0xff]  ;;  %v4081_v26 = vld [vmem:[%s7038_s0] sm:$0xff]  ;;  %2639 = vmatprep.subr.bf16.mxu0 %v2638_v16  ;;  %v3024_v29 = vpack.c.bf16 %v897_v21, %v893_v19  ;;  %v67_v11 = vld [vmem:[%s7039_s1 + $0xf0] sm:$0xff] }
  0x32   :  { %v138_v23 = vld [vmem:[%s7039_s1 + $0x328] sm:$0xff]  ;;  %v4085_v28 = vrot.slane %v4081_v26, %v4052_v14  ;;  %v133_v31 = vld [vmem:[%s7039_s1 + $0x300] sm:$0xff]  ;;  %2641 = vmatpush1.bf16.msra.mxu0 %v2640_v27  ;;  %v927_v4 = vcombine.high %v4081_v26, %v4081_v26  ;;  %v76_v16 = vld [vmem:[%s7039_s1 + $0x138] sm:$0xff]  ;;  %v3040_v19 = vpack.c.bf16 %v67_v11, %v63_v9 }
  0x33   :  { %v2642_v30 = vpack.c.bf16 %v138_v23, %v134_v22  ;;  %v137_v32 = vld [vmem:[%s7039_s1 + $0x320] sm:$0xff]  ;;  %3023 = vmatprep.subr.bf16.mxu1 %v3022_v20  ;;  %v142_v36 = vld [vmem:[%s7039_s1 + $0x348] sm:$0xff]  ;;  %v71_v23 = vld [vmem:[%s7039_s1 + $0x110] sm:$0xff]  ;;  %v3042_v24 = vpack.c.bf16 %v76_v16, %v72_v15 }
  0x34   :  { %v146_v37 = vld [vmem:[%s7039_s1 + $0x368] sm:$0xff]  ;;  %v942_v38 = vcombine.high %v4085_v28, %v4085_v28  ;;  %v2644_v41 = vpack.c.bf16 %v137_v32, %v133_v31  ;;  %3025 = vmatpush1.bf16.msra.mxu1 %v3024_v29  ;;  %v141_v44 = vld [vmem:[%s7039_s1 + $0x340] sm:$0xff]  ;;  %v4189_v18 = vrot.slane %v927_v4, %v4052_v14  ;;  %v80_v29 = vld [vmem:[%s7039_s1 + $0x158] sm:$0xff]  ;;  %v3044_v33 = vpack.c.bf16 %v75_v25, %v71_v23 }
  0x35   :  { %2643 = vmatprep.subr.bf16.mxu0 %v2642_v30  ;;  %v2646_v43 = vpack.c.bf16 %v146_v37, %v142_v36  ;;  %v145_v45 = vld [vmem:[%s7039_s1 + $0x360] sm:$0xff]  ;;  %3027 = vmatprep.subr.bf16.mxu1 %v3026_v34  ;;  %v150_v50 = vld [vmem:[%s7039_s1 + $0x388] sm:$0xff]  ;;  %v84_v30 = vld [vmem:[%s7039_s1 + $0x178] sm:$0xff] }
  0x36   :  { %1066 = vmatprep.mubr.f32.mxu0 %v942_v38  ;;  %v154_v51 = vld [vmem:[%s7039_s1 + $0x3a8] sm:$0xff]  ;;  %2645 = vmatpush1.bf16.msra.mxu0 %v2644_v41  ;;  %v2648_v54 = vpack.c.bf16 %v145_v45, %v141_v44  ;;  %v149_v58 = vld [vmem:[%s7039_s1 + $0x380] sm:$0xff]  ;;  %v4217_v32 = vcombine.high %v4189_v18, %v4189_v18  ;;  %v79_v37 = vld [vmem:[%s7039_s1 + $0x150] sm:$0xff] }
  0x37   :  { %1493 = vmatmul.mubr.f32.vlgmr.msra.gmra.mrb[0].mxu1 %v3993_v47  ;;  %2647 = vmatprep.subr.bf16.mxu0 %v2646_v43  ;;  %v2650_v57 = vpack.c.bf16 %v154_v51, %v150_v50  ;;  %v153_v59 = vld [vmem:[%s7039_s1 + $0x3a0] sm:$0xff]  ;;  %v3034_v47 = vpack.c.bf16 %v60_v53, %v56_v52  ;;  %v158_v62 = vld [vmem:[%s7039_s1 + $0x3c8] sm:$0xff]  ;;  %v92_v43 = vld [vmem:[%s7039_s1 + $0x1b8] sm:$0xff]  ;;  %v3048_v45 = vpack.c.bf16 %v83_v39, %v79_v37 }
  0x38   :  { %3029 = vmatpush1.bf16.msra.mxu1 %v3028_v42  ;;  %v162_v63 = vld [vmem:[%s7039_s1 + $0x3e8] sm:$0xff]  ;;  %1563 = vmatprep.mubr.f32.mxu1 %v942_v38  ;;  %v2652_v3 = vpack.c.bf16 %v153_v59, %v149_v58  ;;  %v157_v7 = vld [vmem:[%s7039_s1 + $0x3c0] sm:$0xff]  ;;  %v3046_v38 = vpack.c.bf16 %v84_v30, %v80_v29  ;;  %v88_v42 = vld [vmem:[%s7039_s1 + $0x198] sm:$0xff] }
  0x39   :  { %3031 = vmatprep.subr.bf16.mxu1 %v3030_v48  ;;  %v2654_v6 = vpack.c.bf16 %v162_v63, %v158_v62  ;;  %v161_v8 = vld [vmem:[%s7039_s1 + $0x3e0] sm:$0xff]  ;;  %v166_v12 = vld [vmem:[%s7039_s1 + $0x408] sm:$0xff]  ;;  %v87_v50 = vld [vmem:[%s7039_s1 + $0x190] sm:$0xff]  ;;  %v3050_v51 = vpack.c.bf16 %v92_v43, %v88_v42 }
  0x3a   :  { %2649 = vmatpush1.bf16.msra.mxu0 %v2648_v54  ;;  %v170_v13 = vld [vmem:[%s7039_s1 + $0x428] sm:$0xff]  ;;  %v2656_v17 = vpack.c.bf16 %v161_v8, %v157_v7  ;;  %v165_v21 = vld [vmem:[%s7039_s1 + $0x400] sm:$0xff]  ;;  %v91_v52 = vld [vmem:[%s7039_s1 + $0x1b0] sm:$0xff] }
  0x3b   :  { %2651 = vmatprep.subr.bf16.mxu0 %v2650_v57  ;;  %v2658_v20 = vpack.c.bf16 %v170_v13, %v166_v12  ;;  %v169_v22 = vld [vmem:[%s7039_s1 + $0x420] sm:$0xff]  ;;  %v174_v26 = vld [vmem:[%s7039_s1 + $0x448] sm:$0xff]  ;;  %v100_v57 = vld [vmem:[%s7039_s1 + $0x1f8] sm:$0xff]  ;;  %v3052_v59 = vpack.c.bf16 %v91_v52, %v87_v50 }
  0x3c   :  { %3033 = vmatpush1.bf16.msra.mxu1 %v3032_v55  ;;  %v178_v27 = vld [vmem:[%s7039_s1 + $0x468] sm:$0xff]  ;;  %v2660_v31 = vpack.c.bf16 %v169_v22, %v165_v21  ;;  %v173_v35 = vld [vmem:[%s7039_s1 + $0x440] sm:$0xff]  ;;  %v96_v55 = vld [vmem:[%s7039_s1 + $0x1d8] sm:$0xff] }
  0x3d   :  { %3035 = vmatprep.subr.bf16.mxu1 %v3034_v47  ;;  %v2662_v34 = vpack.c.bf16 %v178_v27, %v174_v26  ;;  %v177_v36 = vld [vmem:[%s7039_s1 + $0x460] sm:$0xff]  ;;  %v182_v40 = vld [vmem:[%s7039_s1 + $0x488] sm:$0xff]  ;;  %v95_v62 = vld [vmem:[%s7039_s1 + $0x1d0] sm:$0xff]  ;;  %v3054_v63 = vpack.c.bf16 %v100_v57, %v96_v55 }
  0x3e   :  { %2653 = vmatpush1.bf16.msra.mxu0 %v2652_v3  ;;  %v186_v41 = vld [vmem:[%s7039_s1 + $0x4a8] sm:$0xff]  ;;  %v2664_v44 = vpack.c.bf16 %v177_v36, %v173_v35  ;;  %v181_v48 = vld [vmem:[%s7039_s1 + $0x480] sm:$0xff]  ;;  %v99_v1 = vld [vmem:[%s7039_s1 + $0x1f0] sm:$0xff] }
  0x3f   :  { %2655 = vmatprep.subr.bf16.mxu0 %v2654_v6  ;;  %v2666_v46 = vpack.c.bf16 %v186_v41, %v182_v40  ;;  %v185_v49 = vld [vmem:[%s7039_s1 + $0x4a0] sm:$0xff]  ;;  %v190_v53 = vld [vmem:[%s7039_s1 + $0x4c8] sm:$0xff]  ;;  %v104_v4 = vld [vmem:[%s7039_s1 + $0x218] sm:$0xff]  ;;  %v3056_v7 = vpack.c.bf16 %v99_v1, %v95_v62 }
  0x40   :  { %3037 = vmatpush1.bf16.msra.mxu1 %v3036_v5  ;;  %v194_v54 = vld [vmem:[%s7039_s1 + $0x4e8] sm:$0xff]  ;;  %v2668_v58 = vpack.c.bf16 %v185_v49, %v181_v48  ;;  %v189_v47 = vld [vmem:[%s7039_s1 + $0x4c0] sm:$0xff]  ;;  %v108_v5 = vld [vmem:[%s7039_s1 + $0x238] sm:$0xff] }
  0x41   :  { %3039 = vmatprep.subr.bf16.mxu1 %v3038_v10  ;;  %v2670_v60 = vpack.c.bf16 %v194_v54, %v190_v53  ;;  %v193_v61 = vld [vmem:[%s7039_s1 + $0x4e0] sm:$0xff]  ;;  %v198_v2 = vld [vmem:[%s7039_s1 + $0x508] sm:$0xff]  ;;  %v103_v11 = vld [vmem:[%s7039_s1 + $0x210] sm:$0xff]  ;;  %v3058_v12 = vpack.c.bf16 %v108_v5, %v104_v4 }
  0x42   :  { %2657 = vmatpush1.bf16.msra.mxu0 %v2656_v17  ;;  %v202_v3 = vld [vmem:[%s7039_s1 + $0x528] sm:$0xff]  ;;  %v2672_v6 = vpack.c.bf16 %v193_v61, %v189_v47  ;;  %v197_v9 = vld [vmem:[%s7039_s1 + $0x500] sm:$0xff]  ;;  %v107_v13 = vld [vmem:[%s7039_s1 + $0x230] sm:$0xff] }
  0x43   :  { %2659 = vmatprep.subr.bf16.mxu0 %v2658_v20  ;;  %v2674_v8 = vpack.c.bf16 %v202_v3, %v198_v2  ;;  %v201_v10 = vld [vmem:[%s7039_s1 + $0x520] sm:$0xff]  ;;  %v206_v15 = vld [vmem:[%s7039_s1 + $0x548] sm:$0xff]  ;;  %v112_v17 = vld [vmem:[%s7039_s1 + $0x258] sm:$0xff]  ;;  %v3060_v21 = vpack.c.bf16 %v107_v13, %v103_v11 }
  0x44   :  { %3041 = vmatpush1.bf16.msra.mxu1 %v3040_v19  ;;  %v210_v16 = vld [vmem:[%s7039_s1 + $0x568] sm:$0xff]  ;;  %v116_v19 = vld [vmem:[%s7039_s1 + $0x278] sm:$0xff]  ;;  %v2676_v20 = vpack.c.bf16 %v201_v10, %v197_v9  ;;  %v205_v23 = vld [vmem:[%s7039_s1 + $0x540] sm:$0xff] }
  0x45   :  { %3043 = vmatprep.subr.bf16.mxu1 %v3042_v24  ;;  %1067 = vmatmul.mubr.f32.vlgmr.msra.gmra.mrb[0].mxu0 %v4085_v28  ;;  %v2678_v22 = vpack.c.bf16 %v210_v16, %v206_v15  ;;  %v209_v24 = vld [vmem:[%s7039_s1 + $0x560] sm:$0xff]  ;;  %v111_v25 = vld [vmem:[%s7039_s1 + $0x250] sm:$0xff]  ;;  %v3062_v26 = vpack.c.bf16 %v116_v19, %v112_v17  ;;  %v214_v29 = vld [vmem:[%s7039_s1 + $0x588] sm:$0xff] }
  0x46   :  { %2661 = vmatpush1.bf16.msra.mxu0 %v2660_v31  ;;  %1137 = vmatprep.mubr.f32.mxu0 %v4217_v32  ;;  %v115_v27 = vld [vmem:[%s7039_s1 + $0x270] sm:$0xff]  ;;  %v218_v30 = vld [vmem:[%s7039_s1 + $0x5a8] sm:$0xff]  ;;  %v120_v31 = vld [vmem:[%s7039_s1 + $0x298] sm:$0xff] }
  0x47   :  { %2663 = vmatprep.subr.bf16.mxu0 %v2662_v34  ;;  %v2680_v34 = vpack.c.bf16 %v209_v24, %v205_v23  ;;  %v3064_v35 = vpack.c.bf16 %v115_v27, %v111_v25  ;;  %v2682_v36 = vpack.c.bf16 %v218_v30, %v214_v29  ;;  %v213_v37 = vld [vmem:[%s7039_s1 + $0x580] sm:$0xff]  ;;  %v119_v39 = vld [vmem:[%s7039_s1 + $0x290] sm:$0xff]  ;;  %v222_v42 = vld [vmem:[%s7039_s1 + $0x5c8] sm:$0xff] }
  0x48   :  { %3045 = vmatpush1.bf16.msra.mxu1 %v3044_v33  ;;  %v124_v33 = vld [vmem:[%s7039_s1 + $0x2b8] sm:$0xff]  ;;  %v123_v41 = vld [vmem:[%s7039_s1 + $0x2b0] sm:$0xff]  ;;  %v226_v43 = vld [vmem:[%s7039_s1 + $0x5e8] sm:$0xff] }
  0x49   :  { %3047 = vmatprep.subr.bf16.mxu1 %v3046_v38  ;;  %v217_v38 = vld [vmem:[%s7039_s1 + $0x5a0] sm:$0xff]  ;;  %v3066_v40 = vpack.c.bf16 %v124_v33, %v120_v31  ;;  %v3068_v48 = vpack.c.bf16 %v123_v41, %v119_v39  ;;  %v2686_v49 = vpack.c.bf16 %v226_v43, %v222_v42  ;;  %v127_v52 = vld [vmem:[%s7039_s1 + $0x2d0] sm:$0xff]  ;;  %v230_v55 = vld [vmem:[%s7039_s1 + $0x608] sm:$0xff] }
  0x4a   :  { %2665 = vmatpush1.bf16.msra.mxu0 %v2664_v44  ;;  %v128_v44 = vld [vmem:[%s7039_s1 + $0x2d8] sm:$0xff]  ;;  %v221_v50 = vld [vmem:[%s7039_s1 + $0x5c0] sm:$0xff]  ;;  %v131_v54 = vld [vmem:[%s7039_s1 + $0x2f0] sm:$0xff] }
  0x4b   :  { %2667 = vmatprep.subr.bf16.mxu0 %v2666_v46  ;;  %v2684_v46 = vpack.c.bf16 %v217_v38, %v213_v37  ;;  %v234_v57 = vld [vmem:[%s7039_s1 + $0x628] sm:$0xff]  ;;  %v3072_v47 = vpack.c.bf16 %v131_v54, %v127_v52  ;;  %v229_v62 = vld [vmem:[%s7039_s1 + $0x600] sm:$0xff]  ;;  %v135_v1 = vld [vmem:[%s7039_s1 + $0x310] sm:$0xff] }
  0x4c   :  { %3049 = vmatpush1.bf16.msra.mxu1 %v3048_v45  ;;  %v132_v45 = vld [vmem:[%s7039_s1 + $0x2f8] sm:$0xff]  ;;  %v2690_v61 = vpack.c.bf16 %v234_v57, %v230_v55  ;;  %v139_v3 = vld [vmem:[%s7039_s1 + $0x330] sm:$0xff]  ;;  %v238_v4 = vld [vmem:[%s7039_s1 + $0x648] sm:$0xff] }
  0x4d   :  { %3051 = vmatprep.subr.bf16.mxu1 %v3050_v51  ;;  %v225_v51 = vld [vmem:[%s7039_s1 + $0x5e0] sm:$0xff]  ;;  %v3070_v53 = vpack.c.bf16 %v132_v45, %v128_v44  ;;  %v242_v5 = vld [vmem:[%s7039_s1 + $0x668] sm:$0xff]  ;;  %v3076_v9 = vpack.c.bf16 %v139_v3, %v135_v1  ;;  %v143_v13 = vld [vmem:[%s7039_s1 + $0x350] sm:$0xff] }
  0x4e   :  { %2669 = vmatpush1.bf16.msra.mxu0 %v2668_v58  ;;  %v136_v58 = vld [vmem:[%s7039_s1 + $0x318] sm:$0xff]  ;;  %v2694_v10 = vpack.c.bf16 %v242_v5, %v238_v4  ;;  %v237_v11 = vld [vmem:[%s7039_s1 + $0x640] sm:$0xff]  ;;  %v147_v16 = vld [vmem:[%s7039_s1 + $0x370] sm:$0xff] }
  0x4f   :  { %2671 = vmatprep.subr.bf16.mxu0 %v2670_v60  ;;  %v2688_v60 = vpack.c.bf16 %v225_v51, %v221_v50  ;;  %v246_v17 = vld [vmem:[%s7039_s1 + $0x688] sm:$0xff]  ;;  %v3080_v23 = vpack.c.bf16 %v147_v16, %v143_v13  ;;  %v245_v25 = vld [vmem:[%s7039_s1 + $0x680] sm:$0xff]  ;;  %v151_v27 = vld [vmem:[%s7039_s1 + $0x390] sm:$0xff] }
  0x50   :  { %3053 = vmatpush1.bf16.msra.mxu1 %v3052_v59  ;;  %v140_v59 = vld [vmem:[%s7039_s1 + $0x338] sm:$0xff]  ;;  %v250_v19 = vld [vmem:[%s7039_s1 + $0x6a8] sm:$0xff]  ;;  %v155_v30 = vld [vmem:[%s7039_s1 + $0x3b0] sm:$0xff] }
  0x51   :  { %3055 = vmatprep.subr.bf16.mxu1 %v3054_v63  ;;  %v233_v63 = vld [vmem:[%s7039_s1 + $0x620] sm:$0xff]  ;;  %v3074_v2 = vpack.c.bf16 %v140_v59, %v136_v58  ;;  %v2698_v24 = vpack.c.bf16 %v250_v19, %v246_v17  ;;  %v254_v31 = vld [vmem:[%s7039_s1 + $0x6c8] sm:$0xff]  ;;  %v3084_v37 = vpack.c.bf16 %v155_v30, %v151_v27  ;;  %v159_v41 = vld [vmem:[%s7039_s1 + $0x3d0] sm:$0xff] }
  0x52   :  { %2673 = vmatpush1.bf16.msra.mxu0 %v2672_v6  ;;  %v144_v6 = vld [vmem:[%s7039_s1 + $0x358] sm:$0xff]  ;;  %v258_v33 = vld [vmem:[%s7039_s1 + $0x6e8] sm:$0xff]  ;;  %v253_v39 = vld [vmem:[%s7039_s1 + $0x6c0] sm:$0xff] }
  0x53   :  { %2675 = vmatprep.subr.bf16.mxu0 %v2674_v8  ;;  %v2692_v8 = vpack.c.bf16 %v233_v63, %v229_v62  ;;  %v2702_v38 = vpack.c.bf16 %v258_v33, %v254_v31  ;;  %v163_v43 = vld [vmem:[%s7039_s1 + $0x3f0] sm:$0xff]  ;;  %v262_v44 = vld [vmem:[%s7039_s1 + $0x708] sm:$0xff]  ;;  %v261_v52 = vld [vmem:[%s7039_s1 + $0x700] sm:$0xff] }
  0x54   :  { %3057 = vmatpush1.bf16.msra.mxu1 %v3056_v7  ;;  %v148_v7 = vld [vmem:[%s7039_s1 + $0x378] sm:$0xff]  ;;  %v266_v45 = vld [vmem:[%s7039_s1 + $0x728] sm:$0xff]  ;;  %v3088_v50 = vpack.c.bf16 %v163_v43, %v159_v41  ;;  %v167_v54 = vld [vmem:[%s7039_s1 + $0x410] sm:$0xff] }
  0x55   :  { %3059 = vmatprep.subr.bf16.mxu1 %v3058_v12  ;;  %v241_v12 = vld [vmem:[%s7039_s1 + $0x660] sm:$0xff]  ;;  %v3078_v15 = vpack.c.bf16 %v148_v7, %v144_v6  ;;  %v2706_v51 = vpack.c.bf16 %v266_v45, %v262_v44  ;;  %v171_v57 = vld [vmem:[%s7039_s1 + $0x430] sm:$0xff]  ;;  %v270_v58 = vld [vmem:[%s7039_s1 + $0x748] sm:$0xff] }
  0x56   :  { %2677 = vmatpush1.bf16.msra.mxu0 %v2676_v20  ;;  %v152_v20 = vld [vmem:[%s7039_s1 + $0x398] sm:$0xff]  ;;  %v274_v59 = vld [vmem:[%s7039_s1 + $0x768] sm:$0xff]  ;;  %v3092_v62 = vpack.c.bf16 %v171_v57, %v167_v54  ;;  %v269_v1 = vld [vmem:[%s7039_s1 + $0x740] sm:$0xff] }
  0x57   :  { %2679 = vmatprep.subr.bf16.mxu0 %v2678_v22  ;;  %v2696_v22 = vpack.c.bf16 %v241_v12, %v237_v11  ;;  %v2710_v63 = vpack.c.bf16 %v274_v59, %v270_v58  ;;  %v175_v3 = vld [vmem:[%s7039_s1 + $0x450] sm:$0xff]  ;;  %v278_v6 = vld [vmem:[%s7039_s1 + $0x788] sm:$0xff]  ;;  %v277_v13 = vld [vmem:[%s7039_s1 + $0x780] sm:$0xff] }
  0x58   :  { %3061 = vmatpush1.bf16.msra.mxu1 %v3060_v21  ;;  %v156_v21 = vld [vmem:[%s7039_s1 + $0x3b8] sm:$0xff]  ;;  %v179_v5 = vld [vmem:[%s7039_s1 + $0x470] sm:$0xff]  ;;  %v282_v7 = vld [vmem:[%s7039_s1 + $0x7a8] sm:$0xff] }
  0x59   :  { %3063 = vmatprep.subr.bf16.mxu1 %v3062_v26  ;;  %v249_v26 = vld [vmem:[%s7039_s1 + $0x6a0] sm:$0xff]  ;;  %v3082_v29 = vpack.c.bf16 %v156_v21, %v152_v20  ;;  %v3096_v11 = vpack.c.bf16 %v179_v5, %v175_v3  ;;  %v2714_v12 = vpack.c.bf16 %v282_v7, %v278_v6  ;;  %v183_v16 = vld [vmem:[%s7039_s1 + $0x490] sm:$0xff]  ;;  %v286_v19 = vld [vmem:[%s7039_s1 + $0x7c8] sm:$0xff] }
  0x5a   :  { %2681 = vmatpush1.bf16.msra.mxu0 %v2680_v34  ;;  %v160_v34 = vld [vmem:[%s7039_s1 + $0x3d8] sm:$0xff]  ;;  %v290_v20 = vld [vmem:[%s7039_s1 + $0x7e8] sm:$0xff]  ;;  %v191_v27 = vld [vmem:[%s7039_s1 + $0x4d0] sm:$0xff] }
  0x5b   :  { %2683 = vmatprep.subr.bf16.mxu0 %v2682_v36  ;;  %v2700_v36 = vpack.c.bf16 %v249_v26, %v245_v25  ;;  %v192_v21 = vld [vmem:[%s7039_s1 + $0x4d8] sm:$0xff]  ;;  %v2718_v25 = vpack.c.bf16 %v290_v20, %v286_v19  ;;  %v285_v26 = vld [vmem:[%s7039_s1 + $0x7c0] sm:$0xff]  ;;  %v195_v30 = vld [vmem:[%s7039_s1 + $0x4f0] sm:$0xff] }
  0x5c   :  { %3065 = vmatpush1.bf16.msra.mxu1 %v3064_v35  ;;  %v164_v35 = vld [vmem:[%s7039_s1 + $0x3f8] sm:$0xff]  ;;  %v294_v31 = vld [vmem:[%s7039_s1 + $0x808] sm:$0xff]  ;;  %v199_v41 = vld [vmem:[%s7039_s1 + $0x510] sm:$0xff] }
  0x5d   :  { %3067 = vmatprep.subr.bf16.mxu1 %v3066_v40  ;;  %v257_v40 = vld [vmem:[%s7039_s1 + $0x6e0] sm:$0xff]  ;;  %v3086_v42 = vpack.c.bf16 %v164_v35, %v160_v34  ;;  %v298_v33 = vld [vmem:[%s7039_s1 + $0x828] sm:$0xff]  ;;  %v200_v34 = vld [vmem:[%s7039_s1 + $0x518] sm:$0xff] }
  0x5e   :  { %2685 = vmatpush1.bf16.msra.mxu0 %v2684_v46  ;;  %v168_v46 = vld [vmem:[%s7039_s1 + $0x418] sm:$0xff]  ;;  %v203_v43 = vld [vmem:[%s7039_s1 + $0x530] sm:$0xff]  ;;  %v302_v44 = vld [vmem:[%s7039_s1 + $0x848] sm:$0xff] }
  0x5f   :  { %2687 = vmatprep.subr.bf16.mxu0 %v2686_v49  ;;  %v2704_v49 = vpack.c.bf16 %v257_v40, %v253_v39  ;;  %v204_v35 = vld [vmem:[%s7039_s1 + $0x538] sm:$0xff]  ;;  %v293_v39 = vld [vmem:[%s7039_s1 + $0x800] sm:$0xff]  ;;  %v306_v45 = vld [vmem:[%s7039_s1 + $0x868] sm:$0xff] }
  0x60   :  { %3069 = vmatpush1.bf16.msra.mxu1 %v3068_v48  ;;  %v172_v48 = vld [vmem:[%s7039_s1 + $0x438] sm:$0xff]  ;;  %v297_v40 = vld [vmem:[%s7039_s1 + $0x820] sm:$0xff]  ;;  %v211_v59 = vld [vmem:[%s7039_s1 + $0x570] sm:$0xff] }
  0x61   :  { %3071 = vmatprep.subr.bf16.mxu1 %v3070_v53  ;;  %v265_v53 = vld [vmem:[%s7039_s1 + $0x720] sm:$0xff]  ;;  %v3090_v55 = vpack.c.bf16 %v172_v48, %v168_v46  ;;  %v208_v46 = vld [vmem:[%s7039_s1 + $0x558] sm:$0xff]  ;;  %v215_v6 = vld [vmem:[%s7039_s1 + $0x590] sm:$0xff] }
  0x62   :  { %2689 = vmatpush1.bf16.msra.mxu0 %v2688_v60  ;;  %v176_v60 = vld [vmem:[%s7039_s1 + $0x458] sm:$0xff]  ;;  %v305_v54 = vld [vmem:[%s7039_s1 + $0x860] sm:$0xff]  ;;  %v223_v19 = vld [vmem:[%s7039_s1 + $0x5d0] sm:$0xff] }
  0x63   :  { %2691 = vmatprep.subr.bf16.mxu0 %v2690_v61  ;;  %v2708_v61 = vpack.c.bf16 %v265_v53, %v261_v52  ;;  %v212_v48 = vld [vmem:[%s7039_s1 + $0x578] sm:$0xff]  ;;  %v2726_v52 = vpack.c.bf16 %v306_v45, %v302_v44  ;;  %v301_v53 = vld [vmem:[%s7039_s1 + $0x840] sm:$0xff]  ;;  %v239_v44 = vld [vmem:[%s7039_s1 + $0x650] sm:$0xff] }
  0x64   :  { %3073 = vmatpush1.bf16.msra.mxu1 %v3072_v47  ;;  %v180_v47 = vld [vmem:[%s7039_s1 + $0x478] sm:$0xff]  ;;  %v3110_v58 = vpack.c.bf16 %v212_v48, %v208_v46  ;;  %v313_v5 = vld [vmem:[%s7039_s1 + $0x8a0] sm:$0xff]  ;;  %v243_v46 = vld [vmem:[%s7039_s1 + $0x670] sm:$0xff] }
  0x65   :  { %3075 = vmatprep.subr.bf16.mxu1 %v3074_v2  ;;  %v273_v2 = vld [vmem:[%s7039_s1 + $0x760] sm:$0xff]  ;;  %v3094_v4 = vpack.c.bf16 %v180_v47, %v176_v60  ;;  %v310_v60 = vld [vmem:[%s7039_s1 + $0x888] sm:$0xff] }
  0x66   :  { %2693 = vmatpush1.bf16.msra.mxu0 %v2692_v8  ;;  %v184_v8 = vld [vmem:[%s7039_s1 + $0x498] sm:$0xff]  ;;  %v314_v47 = vld [vmem:[%s7039_s1 + $0x8a8] sm:$0xff] }
  0x67   :  { %2695 = vmatprep.subr.bf16.mxu0 %v2694_v10  ;;  %v2712_v10 = vpack.c.bf16 %v273_v2, %v269_v1  ;;  %v2728_v1 = vpack.c.bf16 %v305_v54, %v301_v53  ;;  %v2730_v3 = vpack.c.bf16 %v314_v47, %v310_v60  ;;  %v342_v48 = vld [vmem:[%s7039_s1 + $0x988] sm:$0xff]  ;;  %v3128_v54 = vpack.c.bf16 %v243_v46, %v239_v44  ;;  %v247_v60 = vld [vmem:[%s7039_s1 + $0x690] sm:$0xff]  ;;  %v377_v46 = vld [vmem:[%s7039_s1 + $0xaa0] sm:$0xff] }
  0x68   :  { %3077 = vmatpush1.bf16.msra.mxu1 %v3076_v9  ;;  %v188_v9 = vld [vmem:[%s7039_s1 + $0x4b8] sm:$0xff] }
  0x69   :  { %3079 = vmatprep.subr.bf16.mxu1 %v3078_v15  ;;  %v281_v15 = vld [vmem:[%s7039_s1 + $0x7a0] sm:$0xff]  ;;  %v3098_v17 = vpack.c.bf16 %v188_v9, %v184_v8  ;;  %v219_v8 = vld [vmem:[%s7039_s1 + $0x5b0] sm:$0xff]  ;;  %v318_v9 = vld [vmem:[%s7039_s1 + $0x8c8] sm:$0xff] }
  0x6a   :  { %2697 = vmatpush1.bf16.msra.mxu0 %v2696_v22  ;;  %v196_v22 = vld [vmem:[%s7039_s1 + $0x4f8] sm:$0xff] }
  0x6b   :  { %2699 = vmatprep.subr.bf16.mxu0 %v2698_v24 }
  0x6c   :  { %3081 = vmatpush1.bf16.msra.mxu1 %v3080_v23  ;;  %v2716_v23 = vpack.c.bf16 %v281_v15, %v277_v13  ;;  %v3116_v15 = vpack.c.bf16 %v219_v8, %v215_v6  ;;  %v353_v8 = vld [vmem:[%s7039_s1 + $0x9e0] sm:$0xff] }
  0x6d   :  { %3083 = vmatprep.subr.bf16.mxu1 %v3082_v29  ;;  %v3102_v29 = vpack.c.bf16 %v196_v22, %v192_v21  ;;  %v227_v21 = vld [vmem:[%s7039_s1 + $0x5f0] sm:$0xff]  ;;  %v326_v22 = vld [vmem:[%s7039_s1 + $0x908] sm:$0xff] }
  0x6e   :  { %2701 = vmatpush1.bf16.msra.mxu0 %v2700_v36 }
  0x6f   :  { %2703 = vmatprep.subr.bf16.mxu0 %v2702_v38  ;;  %v2722_v38 = vpack.c.bf16 %v298_v33, %v294_v31  ;;  %v231_v31 = vld [vmem:[%s7039_s1 + $0x610] sm:$0xff] }
  0x70   :  { %3085 = vmatpush1.bf16.msra.mxu1 %v3084_v37  ;;  %v3104_v37 = vpack.c.bf16 %v195_v30, %v191_v27  ;;  %v329_v30 = vld [vmem:[%s7039_s1 + $0x920] sm:$0xff] }
  0x71   :  { %3087 = vmatprep.subr.bf16.mxu1 %v3086_v42  ;;  %v3106_v42 = vpack.c.bf16 %v204_v35, %v200_v34  ;;  %v235_v34 = vld [vmem:[%s7039_s1 + $0x630] sm:$0xff]  ;;  %v334_v35 = vld [vmem:[%s7039_s1 + $0x948] sm:$0xff] }
  0x72   :  { %2705 = vmatpush1.bf16.msra.mxu0 %v2704_v49  ;;  %v2724_v49 = vpack.c.bf16 %v297_v40, %v293_v39  ;;  %v3124_v40 = vpack.c.bf16 %v235_v34, %v231_v31  ;;  %v369_v34 = vld [vmem:[%s7039_s1 + $0xa60] sm:$0xff] }
  0x73   :  { %2707 = vmatprep.subr.bf16.mxu0 %v2706_v51  ;;  %v3108_v51 = vpack.c.bf16 %v203_v43, %v199_v41  ;;  %v337_v43 = vld [vmem:[%s7039_s1 + $0x960] sm:$0xff] }
  0x74   :  { %3089 = vmatpush1.bf16.msra.mxu1 %v3088_v50  ;;  %v4610_v50 = vld [vmem:[%s7038_s0 + $0x8] sm:$0xff] }
  0x75   :  { %3091 = vmatprep.subr.bf16.mxu1 %v3090_v55  ;;  %v207_v55 = vld [vmem:[%s7039_s1 + $0x550] sm:$0xff]  ;;  %v4623_v57 = vrot.slane %v4610_v50, %v4052_v14 }
  0x76   :  { %2709 = vmatpush1.bf16.msra.mxu0 %v2708_v61  ;;  %v216_v61 = vld [vmem:[%s7039_s1 + $0x598] sm:$0xff]  ;;  %v3112_v2 = vpack.c.bf16 %v211_v59, %v207_v55  ;;  %v345_v59 = vld [vmem:[%s7039_s1 + $0x9a0] sm:$0xff] }
  0x77   :  { %1564 = vmatmul.mubr.f32.vlgmr.msra.gmra.mrb[2].mxu1 %v4085_v28  ;;  %2711 = vmatprep.subr.bf16.mxu0 %v2710_v63  ;;  %v187_v28 = vld [vmem:[%s7039_s1 + $0x4b0] sm:$0xff]  ;;  %v4643_v63 = vcombine.high %v4623_v57, %v4623_v57 }
  0x78   :  { %3093 = vmatpush1.bf16.msra.mxu1 %v3092_v62  ;;  %1634 = vmatprep.mubr.f32.mxu1 %v4217_v32  ;;  %v3100_v24 = vpack.c.bf16 %v187_v28, %v183_v16  ;;  %v289_v32 = vld [vmem:[%s7039_s1 + $0x7e0] sm:$0xff]  ;;  %v220_v62 = vld [vmem:[%s7039_s1 + $0x5b8] sm:$0xff] }
  0x79   :  { %3095 = vmatprep.subr.bf16.mxu1 %v3094_v4  ;;  %v2720_v36 = vpack.c.bf16 %v289_v32, %v285_v26  ;;  %v309_v4 = vld [vmem:[%s7039_s1 + $0x880] sm:$0xff]  ;;  %v3114_v7 = vpack.c.bf16 %v220_v62, %v216_v61  ;;  %v3120_v32 = vpack.c.bf16 %v227_v21, %v223_v19  ;;  %v251_v61 = vld [vmem:[%s7039_s1 + $0x6b0] sm:$0xff]  ;;  %v350_v62 = vld [vmem:[%s7039_s1 + $0x9c8] sm:$0xff] }
  0x7a   :  { %2713 = vmatpush1.bf16.msra.mxu0 %v2712_v10  ;;  %v322_v10 = vld [vmem:[%s7039_s1 + $0x8e8] sm:$0xff]  ;;  %v2732_v13 = vpack.c.bf16 %v313_v5, %v309_v4  ;;  %v321_v28 = vld [vmem:[%s7039_s1 + $0x8e0] sm:$0xff]  ;;  %v3132_v5 = vpack.c.bf16 %v251_v61, %v247_v60 }
  0x7b   :  { %2715 = vmatprep.subr.bf16.mxu0 %v2714_v12  ;;  %v228_v12 = vld [vmem:[%s7039_s1 + $0x5f8] sm:$0xff]  ;;  %v2734_v16 = vpack.c.bf16 %v322_v10, %v318_v9  ;;  %v255_v9 = vld [vmem:[%s7039_s1 + $0x6d0] sm:$0xff]  ;;  %v361_v21 = vld [vmem:[%s7039_s1 + $0xa20] sm:$0xff] }
  0x7c   :  { %3097 = vmatpush1.bf16.msra.mxu1 %v3096_v11  ;;  %v224_v11 = vld [vmem:[%s7039_s1 + $0x5d8] sm:$0xff]  ;;  %v385_v61 = vld [vmem:[%s7039_s1 + $0xae0] sm:$0xff] }
  0x7d   :  { %3099 = vmatprep.subr.bf16.mxu1 %v3098_v17  ;;  %v317_v17 = vld [vmem:[%s7039_s1 + $0x8c0] sm:$0xff]  ;;  %v3118_v20 = vpack.c.bf16 %v228_v12, %v224_v11  ;;  %v259_v11 = vld [vmem:[%s7039_s1 + $0x6f0] sm:$0xff]  ;;  %v358_v12 = vld [vmem:[%s7039_s1 + $0xa08] sm:$0xff] }
  0x7e   :  { %2717 = vmatpush1.bf16.msra.mxu0 %v2716_v23  ;;  %v330_v23 = vld [vmem:[%s7039_s1 + $0x928] sm:$0xff]  ;;  %v2736_v26 = vpack.c.bf16 %v321_v28, %v317_v17  ;;  %v3136_v28 = vpack.c.bf16 %v259_v11, %v255_v9  ;;  %v393_v11 = vld [vmem:[%s7039_s1 + $0xb20] sm:$0xff] }
  0x7f   :  { %2719 = vmatprep.subr.bf16.mxu0 %v2718_v25  ;;  %v236_v25 = vld [vmem:[%s7039_s1 + $0x638] sm:$0xff]  ;;  %v2738_v27 = vpack.c.bf16 %v330_v23, %v326_v22  ;;  %v263_v22 = vld [vmem:[%s7039_s1 + $0x710] sm:$0xff] }
  0x80   :  { %3101 = vmatpush1.bf16.msra.mxu1 %v3100_v24  ;;  %v232_v24 = vld [vmem:[%s7039_s1 + $0x618] sm:$0xff] }
  0x81   :  { %3103 = vmatprep.subr.bf16.mxu1 %v3102_v29  ;;  %v325_v29 = vld [vmem:[%s7039_s1 + $0x900] sm:$0xff]  ;;  %v3122_v33 = vpack.c.bf16 %v236_v25, %v232_v24  ;;  %v267_v24 = vld [vmem:[%s7039_s1 + $0x730] sm:$0xff]  ;;  %v366_v25 = vld [vmem:[%s7039_s1 + $0xa48] sm:$0xff] }
  0x82   :  { %2721 = vmatpush1.bf16.msra.mxu0 %v2720_v36  ;;  %v338_v36 = vld [vmem:[%s7039_s1 + $0x968] sm:$0xff]  ;;  %v2740_v39 = vpack.c.bf16 %v329_v30, %v325_v29  ;;  %v3140_v30 = vpack.c.bf16 %v267_v24, %v263_v22  ;;  %v401_v24 = vld [vmem:[%s7039_s1 + $0xb60] sm:$0xff] }
  0x83   :  { %2723 = vmatprep.subr.bf16.mxu0 %v2722_v38  ;;  %v244_v38 = vld [vmem:[%s7039_s1 + $0x678] sm:$0xff]  ;;  %v2742_v41 = vpack.c.bf16 %v338_v36, %v334_v35  ;;  %v271_v35 = vld [vmem:[%s7039_s1 + $0x750] sm:$0xff] }
  0x84   :  { %3105 = vmatpush1.bf16.msra.mxu1 %v3104_v37  ;;  %v240_v37 = vld [vmem:[%s7039_s1 + $0x658] sm:$0xff] }
  0x85   :  { %3107 = vmatprep.subr.bf16.mxu1 %v3106_v42  ;;  %1138 = vmatmul.mubr.f32.vlgmr.msra.gmra.mrb[0].mxu0 %v4189_v18  ;;  %v333_v42 = vld [vmem:[%s7039_s1 + $0x940] sm:$0xff]  ;;  %v3126_v45 = vpack.c.bf16 %v244_v38, %v240_v37  ;;  %v275_v37 = vld [vmem:[%s7039_s1 + $0x770] sm:$0xff]  ;;  %v374_v38 = vld [vmem:[%s7039_s1 + $0xa88] sm:$0xff] }
  0x86   :  { %2725 = vmatpush1.bf16.msra.mxu0 %v2724_v49  ;;  %1208 = vmatprep.mubr.f32.mxu0 %v4643_v63  ;;  %v346_v49 = vld [vmem:[%s7039_s1 + $0x9a8] sm:$0xff]  ;;  %v2744_v53 = vpack.c.bf16 %v337_v43, %v333_v42  ;;  %v3144_v43 = vpack.c.bf16 %v275_v37, %v271_v35  ;;  %v409_v37 = vld [vmem:[%s7039_s1 + $0xba0] sm:$0xff] }
  0x87   :  { %2727 = vmatprep.subr.bf16.mxu0 %v2726_v52  ;;  %v252_v52 = vld [vmem:[%s7039_s1 + $0x6b8] sm:$0xff]  ;;  %v2746_v55 = vpack.c.bf16 %v346_v49, %v342_v48  ;;  %v279_v48 = vld [vmem:[%s7039_s1 + $0x790] sm:$0xff] }
  0x88   :  { %3109 = vmatpush1.bf16.msra.mxu1 %v3108_v51  ;;  %v248_v51 = vld [vmem:[%s7039_s1 + $0x698] sm:$0xff] }
  0x89   :  { %3111 = vmatprep.subr.bf16.mxu1 %v3110_v58  ;;  %v341_v58 = vld [vmem:[%s7039_s1 + $0x980] sm:$0xff]  ;;  %v3130_v47 = vpack.c.bf16 %v252_v52, %v248_v51  ;;  %v283_v51 = vld [vmem:[%s7039_s1 + $0x7b0] sm:$0xff]  ;;  %v382_v52 = vld [vmem:[%s7039_s1 + $0xac8] sm:$0xff] }
  0x8a   :  { %2729 = vmatpush1.bf16.msra.mxu0 %v2728_v1  ;;  %v354_v1 = vld [vmem:[%s7039_s1 + $0x9e8] sm:$0xff]  ;;  %v2748_v4 = vpack.c.bf16 %v345_v59, %v341_v58  ;;  %v3148_v59 = vpack.c.bf16 %v283_v51, %v279_v48  ;;  %v319_v51 = vld [vmem:[%s7039_s1 + $0x8d0] sm:$0xff] }
  0x8b   :  { %2731 = vmatprep.subr.bf16.mxu0 %v2730_v3  ;;  %v260_v3 = vld [vmem:[%s7039_s1 + $0x6f8] sm:$0xff]  ;;  %v2750_v6 = vpack.c.bf16 %v354_v1, %v350_v62  ;;  %v287_v62 = vld [vmem:[%s7039_s1 + $0x7d0] sm:$0xff] }
  0x8c   :  { %3113 = vmatpush1.bf16.msra.mxu1 %v3112_v2  ;;  %v256_v2 = vld [vmem:[%s7039_s1 + $0x6d8] sm:$0xff] }
  0x8d   :  { %3115 = vmatprep.subr.bf16.mxu1 %v3114_v7  ;;  %v349_v7 = vld [vmem:[%s7039_s1 + $0x9c0] sm:$0xff]  ;;  %v3134_v10 = vpack.c.bf16 %v260_v3, %v256_v2  ;;  %v291_v2 = vld [vmem:[%s7039_s1 + $0x7f0] sm:$0xff]  ;;  %v390_v3 = vld [vmem:[%s7039_s1 + $0xb08] sm:$0xff] }
  0x8e   :  { %2733 = vmatpush1.bf16.msra.mxu0 %v2732_v13  ;;  %v362_v13 = vld [vmem:[%s7039_s1 + $0xa28] sm:$0xff]  ;;  %v2752_v17 = vpack.c.bf16 %v353_v8, %v349_v7  ;;  %v3152_v8 = vpack.c.bf16 %v291_v2, %v287_v62  ;;  %v421_v62 = vld [vmem:[%s7039_s1 + $0xc00] sm:$0xff]  ;;  %v327_v2 = vld [vmem:[%s7039_s1 + $0x910] sm:$0xff] }
  0x8f   :  { %2735 = vmatprep.subr.bf16.mxu0 %v2734_v16  ;;  %v268_v16 = vld [vmem:[%s7039_s1 + $0x738] sm:$0xff]  ;;  %v2754_v19 = vpack.c.bf16 %v362_v13, %v358_v12  ;;  %v295_v12 = vld [vmem:[%s7039_s1 + $0x810] sm:$0xff] }
  0x90   :  { %3117 = vmatpush1.bf16.msra.mxu1 %v3116_v15  ;;  %v264_v15 = vld [vmem:[%s7039_s1 + $0x718] sm:$0xff] }
  0x91   :  { %3119 = vmatprep.subr.bf16.mxu1 %v3118_v20  ;;  %v357_v20 = vld [vmem:[%s7039_s1 + $0xa00] sm:$0xff]  ;;  %v3138_v23 = vpack.c.bf16 %v268_v16, %v264_v15  ;;  %v299_v15 = vld [vmem:[%s7039_s1 + $0x830] sm:$0xff]  ;;  %v398_v16 = vld [vmem:[%s7039_s1 + $0xb48] sm:$0xff] }
  0x92   :  { %2737 = vmatpush1.bf16.msra.mxu0 %v2736_v26  ;;  %v370_v26 = vld [vmem:[%s7039_s1 + $0xa68] sm:$0xff]  ;;  %v2756_v29 = vpack.c.bf16 %v361_v21, %v357_v20  ;;  %v3156_v21 = vpack.c.bf16 %v299_v15, %v295_v12  ;;  %v433_v15 = vld [vmem:[%s7039_s1 + $0xc60] sm:$0xff] }
  0x93   :  { %2739 = vmatprep.subr.bf16.mxu0 %v2738_v27  ;;  %v276_v27 = vld [vmem:[%s7039_s1 + $0x778] sm:$0xff]  ;;  %v2758_v31 = vpack.c.bf16 %v370_v26, %v366_v25  ;;  %v303_v25 = vld [vmem:[%s7039_s1 + $0x850] sm:$0xff] }
  0x94   :  { %3121 = vmatpush1.bf16.msra.mxu1 %v3120_v32  ;;  %v272_v32 = vld [vmem:[%s7039_s1 + $0x758] sm:$0xff] }
  0x95   :  { %3123 = vmatprep.subr.bf16.mxu1 %v3122_v33  ;;  %v365_v33 = vld [vmem:[%s7039_s1 + $0xa40] sm:$0xff]  ;;  %v3142_v36 = vpack.c.bf16 %v276_v27, %v272_v32  ;;  %v307_v32 = vld [vmem:[%s7039_s1 + $0x870] sm:$0xff]  ;;  %v406_v27 = vld [vmem:[%s7039_s1 + $0xb88] sm:$0xff] }
  0x96   :  { %2741 = vmatpush1.bf16.msra.mxu0 %v2740_v39  ;;  %v378_v39 = vld [vmem:[%s7039_s1 + $0xaa8] sm:$0xff]  ;;  %v2760_v42 = vpack.c.bf16 %v369_v34, %v365_v33  ;;  %v3160_v34 = vpack.c.bf16 %v307_v32, %v303_v25  ;;  %v441_v32 = vld [vmem:[%s7039_s1 + $0xca0] sm:$0xff] }
  0x97   :  { %2743 = vmatprep.subr.bf16.mxu0 %v2742_v41  ;;  %v284_v41 = vld [vmem:[%s7039_s1 + $0x7b8] sm:$0xff]  ;;  %v2762_v44 = vpack.c.bf16 %v378_v39, %v374_v38  ;;  %v311_v38 = vld [vmem:[%s7039_s1 + $0x890] sm:$0xff] }
  0x98   :  { %3125 = vmatpush1.bf16.msra.mxu1 %v3124_v40  ;;  %v280_v40 = vld [vmem:[%s7039_s1 + $0x798] sm:$0xff] }
  0x99   :  { %3127 = vmatprep.subr.bf16.mxu1 %v3126_v45  ;;  %v373_v45 = vld [vmem:[%s7039_s1 + $0xa80] sm:$0xff]  ;;  %v3146_v49 = vpack.c.bf16 %v284_v41, %v280_v40  ;;  %v414_v40 = vld [vmem:[%s7039_s1 + $0xbc8] sm:$0xff] }
  0x9a   :  { %2745 = vmatpush1.bf16.msra.mxu0 %v2744_v53  ;;  %v386_v53 = vld [vmem:[%s7039_s1 + $0xae8] sm:$0xff]  ;;  %v2764_v58 = vpack.c.bf16 %v377_v46, %v373_v45  ;;  %v944_v45 = vcombine.high %v4610_v50, %v4610_v50  ;;  %v323_v50 = vld [vmem:[%s7039_s1 + $0x8f0] sm:$0xff] }
  0x9b   :  { %2747 = vmatprep.subr.bf16.mxu0 %v2746_v55  ;;  %v292_v55 = vld [vmem:[%s7039_s1 + $0x7f8] sm:$0xff]  ;;  %v2766_v60 = vpack.c.bf16 %v386_v53, %v382_v52  ;;  %v418_v41 = vld [vmem:[%s7039_s1 + $0xbe8] sm:$0xff] }
  0x9c   :  { %3129 = vmatpush1.bf16.msra.mxu1 %v3128_v54  ;;  %v288_v54 = vld [vmem:[%s7039_s1 + $0x7d8] sm:$0xff]  ;;  %v2782_v48 = vpack.c.bf16 %v418_v41, %v414_v40  ;;  %v422_v53 = vld [vmem:[%s7039_s1 + $0xc08] sm:$0xff]  ;;  %v351_v40 = vld [vmem:[%s7039_s1 + $0x9d0] sm:$0xff] }
  0x9d   :  { %3131 = vmatprep.subr.bf16.mxu1 %v3130_v47  ;;  %v381_v47 = vld [vmem:[%s7039_s1 + $0xac0] sm:$0xff]  ;;  %v3150_v1 = vpack.c.bf16 %v292_v55, %v288_v54  ;;  %v426_v54 = vld [vmem:[%s7039_s1 + $0xc28] sm:$0xff]  ;;  %v328_v55 = vld [vmem:[%s7039_s1 + $0x918] sm:$0xff] }
  0x9e   :  { %2749 = vmatpush1.bf16.msra.mxu0 %v2748_v4  ;;  %v394_v4 = vld [vmem:[%s7039_s1 + $0xb28] sm:$0xff]  ;;  %v2768_v7 = vpack.c.bf16 %v385_v61, %v381_v47  ;;  %v3168_v47 = vpack.c.bf16 %v323_v50, %v319_v51  ;;  %v2786_v61 = vpack.c.bf16 %v426_v54, %v422_v53  ;;  %v453_v51 = vld [vmem:[%s7039_s1 + $0xd00] sm:$0xff]  ;;  %v359_v50 = vld [vmem:[%s7039_s1 + $0xa10] sm:$0xff] }
  0x9f   :  { %2751 = vmatprep.subr.bf16.mxu0 %v2750_v6  ;;  %v300_v6 = vld [vmem:[%s7039_s1 + $0x838] sm:$0xff]  ;;  %v2770_v9 = vpack.c.bf16 %v394_v4, %v390_v3  ;;  %v331_v4 = vld [vmem:[%s7039_s1 + $0x930] sm:$0xff] }
  0xa0   :  { %3133 = vmatpush1.bf16.msra.mxu1 %v3132_v5  ;;  %v296_v5 = vld [vmem:[%s7039_s1 + $0x818] sm:$0xff]  ;;  %v363_v54 = vld [vmem:[%s7039_s1 + $0xa30] sm:$0xff] }
  0xa1   :  { %3135 = vmatprep.subr.bf16.mxu1 %v3134_v10  ;;  %v389_v10 = vld [vmem:[%s7039_s1 + $0xb00] sm:$0xff]  ;;  %v3154_v13 = vpack.c.bf16 %v300_v6, %v296_v5  ;;  %v430_v5 = vld [vmem:[%s7039_s1 + $0xc48] sm:$0xff] }
  0xa2   :  { %2753 = vmatpush1.bf16.msra.mxu0 %v2752_v17  ;;  %v402_v17 = vld [vmem:[%s7039_s1 + $0xb68] sm:$0xff]  ;;  %v2772_v20 = vpack.c.bf16 %v393_v11, %v389_v10  ;;  %v3172_v11 = vpack.c.bf16 %v331_v4, %v327_v2  ;;  %v461_v2 = vld [vmem:[%s7039_s1 + $0xd40] sm:$0xff]  ;;  %v367_v4 = vld [vmem:[%s7039_s1 + $0xa50] sm:$0xff] }
  0xa3   :  { %2755 = vmatprep.subr.bf16.mxu0 %v2754_v19  ;;  %v308_v19 = vld [vmem:[%s7039_s1 + $0x878] sm:$0xff]  ;;  %v2774_v22 = vpack.c.bf16 %v402_v17, %v398_v16  ;;  %v434_v6 = vld [vmem:[%s7039_s1 + $0xc68] sm:$0xff]  ;;  %v335_v16 = vld [vmem:[%s7039_s1 + $0x950] sm:$0xff] }
  0xa4   :  { %3137 = vmatpush1.bf16.msra.mxu1 %v3136_v28  ;;  %v304_v28 = vld [vmem:[%s7039_s1 + $0x858] sm:$0xff]  ;;  %v2790_v12 = vpack.c.bf16 %v434_v6, %v430_v5  ;;  %v371_v6 = vld [vmem:[%s7039_s1 + $0xa70] sm:$0xff] }
  0xa5   :  { %3139 = vmatprep.subr.bf16.mxu1 %v3138_v23  ;;  %v397_v23 = vld [vmem:[%s7039_s1 + $0xb40] sm:$0xff]  ;;  %v3158_v26 = vpack.c.bf16 %v308_v19, %v304_v28  ;;  %v339_v28 = vld [vmem:[%s7039_s1 + $0x970] sm:$0xff]  ;;  %v438_v19 = vld [vmem:[%s7039_s1 + $0xc88] sm:$0xff] }
  0xa6   :  { %2757 = vmatpush1.bf16.msra.mxu0 %v2756_v29  ;;  %v410_v29 = vld [vmem:[%s7039_s1 + $0xba8] sm:$0xff]  ;;  %v2776_v33 = vpack.c.bf16 %v401_v24, %v397_v23  ;;  %v3176_v24 = vpack.c.bf16 %v339_v28, %v335_v16  ;;  %v469_v16 = vld [vmem:[%s7039_s1 + $0xd80] sm:$0xff]  ;;  %v375_v28 = vld [vmem:[%s7039_s1 + $0xa90] sm:$0xff] }
  0xa7   :  { %2759 = vmatprep.subr.bf16.mxu0 %v2758_v31  ;;  %v316_v31 = vld [vmem:[%s7039_s1 + $0x8b8] sm:$0xff]  ;;  %v2778_v35 = vpack.c.bf16 %v410_v29, %v406_v27  ;;  %v343_v27 = vld [vmem:[%s7039_s1 + $0x990] sm:$0xff] }
  0xa8   :  { %3141 = vmatpush1.bf16.msra.mxu1 %v3140_v30  ;;  %v312_v30 = vld [vmem:[%s7039_s1 + $0x898] sm:$0xff] }
  0xa9   :  { %3143 = vmatprep.subr.bf16.mxu1 %v3142_v36  ;;  %v405_v36 = vld [vmem:[%s7039_s1 + $0xb80] sm:$0xff]  ;;  %v3162_v39 = vpack.c.bf16 %v316_v31, %v312_v30  ;;  %v347_v30 = vld [vmem:[%s7039_s1 + $0x9b0] sm:$0xff]  ;;  %v446_v31 = vld [vmem:[%s7039_s1 + $0xcc8] sm:$0xff] }
  0xaa   :  { %2761 = vmatpush1.bf16.msra.mxu0 %v2760_v42  ;;  %v320_v42 = vld [vmem:[%s7039_s1 + $0x8d8] sm:$0xff] }
  0xab   :  { %2763 = vmatprep.subr.bf16.mxu0 %v2762_v44  ;;  %v2780_v44 = vpack.c.bf16 %v409_v37, %v405_v36  ;;  %v3180_v37 = vpack.c.bf16 %v347_v30, %v343_v27  ;;  %v477_v27 = vld [vmem:[%s7039_s1 + $0xdc0] sm:$0xff]  ;;  %v383_v30 = vld [vmem:[%s7039_s1 + $0xad0] sm:$0xff] }
  0xac   :  { %3145 = vmatpush1.bf16.msra.mxu1 %v3144_v43  ;;  %v324_v43 = vld [vmem:[%s7039_s1 + $0x8f8] sm:$0xff] }
  0xad   :  { %3147 = vmatprep.subr.bf16.mxu1 %v3146_v49  ;;  %v417_v49 = vld [vmem:[%s7039_s1 + $0xbe0] sm:$0xff]  ;;  %v3166_v52 = vpack.c.bf16 %v324_v43, %v320_v42  ;;  %v355_v42 = vld [vmem:[%s7039_s1 + $0x9f0] sm:$0xff]  ;;  %v454_v43 = vld [vmem:[%s7039_s1 + $0xd08] sm:$0xff] }
  0xae   :  { %2765 = vmatpush1.bf16.msra.mxu0 %v2764_v58  ;;  %v332_v58 = vld [vmem:[%s7039_s1 + $0x938] sm:$0xff] }
  0xaf   :  { %2767 = vmatprep.subr.bf16.mxu0 %v2766_v60  ;;  %v4987_v60 = vrot.slane %v944_v45, %v4052_v14  ;;  %v3170_v3 = vpack.c.bf16 %v332_v58, %v328_v55  ;;  %v360_v45 = vld [vmem:[%s7039_s1 + $0xa18] sm:$0xff]  ;;  %v462_v55 = vld [vmem:[%s7039_s1 + $0xd48] sm:$0xff] }
  0xb0   :  { %3149 = vmatpush1.bf16.msra.mxu1 %v3148_v59  ;;  %v466_v58 = vld [vmem:[%s7039_s1 + $0xd68] sm:$0xff] }
  0xb1   :  { %3151 = vmatprep.subr.bf16.mxu1 %v3150_v1  ;;  %v425_v1 = vld [vmem:[%s7039_s1 + $0xc20] sm:$0xff]  ;;  %v5015_v10 = vcombine.high %v4987_v60, %v4987_v60 }
  0xb2   :  { %2769 = vmatpush1.bf16.msra.mxu0 %v2768_v7  ;;  %v336_v7 = vld [vmem:[%s7039_s1 + $0x958] sm:$0xff] }
  0xb3   :  { %2771 = vmatprep.subr.bf16.mxu0 %v2770_v9  ;;  %v2788_v9 = vpack.c.bf16 %v425_v1, %v421_v62  ;;  %v3188_v62 = vpack.c.bf16 %v363_v54, %v359_v50  ;;  %v2806_v1 = vpack.c.bf16 %v466_v58, %v462_v55  ;;  %v493_v50 = vld [vmem:[%s7039_s1 + $0xe40] sm:$0xff]  ;;  %v399_v54 = vld [vmem:[%s7039_s1 + $0xb50] sm:$0xff] }
  0xb4   :  { %3153 = vmatpush1.bf16.msra.mxu1 %v3152_v8  ;;  %v340_v8 = vld [vmem:[%s7039_s1 + $0x978] sm:$0xff]  ;;  %v403_v58 = vld [vmem:[%s7039_s1 + $0xb70] sm:$0xff] }
  0xb5   :  { %3155 = vmatprep.subr.bf16.mxu1 %v3154_v13  ;;  %v429_v13 = vld [vmem:[%s7039_s1 + $0xc40] sm:$0xff]  ;;  %v3174_v17 = vpack.c.bf16 %v340_v8, %v336_v7  ;;  %v470_v7 = vld [vmem:[%s7039_s1 + $0xd88] sm:$0xff] }
  0xb6   :  { %2773 = vmatpush1.bf16.msra.mxu0 %v2772_v20  ;;  %v442_v20 = vld [vmem:[%s7039_s1 + $0xca8] sm:$0xff]  ;;  %v2792_v23 = vpack.c.bf16 %v433_v15, %v429_v13  ;;  %v3192_v13 = vpack.c.bf16 %v371_v6, %v367_v4  ;;  %v501_v4 = vld [vmem:[%s7039_s1 + $0xe80] sm:$0xff]  ;;  %v407_v6 = vld [vmem:[%s7039_s1 + $0xb90] sm:$0xff] }
  0xb7   :  { %1635 = vmatmul.mubr.f32.vlgmr.msra.gmra.mrb[2].mxu1 %v4189_v18  ;;  %2775 = vmatprep.subr.bf16.mxu0 %v2774_v22  ;;  %v315_v18 = vld [vmem:[%s7039_s1 + $0x8b0] sm:$0xff]  ;;  %v348_v22 = vld [vmem:[%s7039_s1 + $0x9b8] sm:$0xff]  ;;  %v2794_v25 = vpack.c.bf16 %v442_v20, %v438_v19  ;;  %v474_v8 = vld [vmem:[%s7039_s1 + $0xda8] sm:$0xff] }
  0xb8   :  { %3157 = vmatpush1.bf16.msra.mxu1 %v3156_v21  ;;  %1705 = vmatprep.mubr.f32.mxu1 %v4643_v63  ;;  %v3164_v46 = vpack.c.bf16 %v315_v18, %v311_v38  ;;  %v413_v63 = vld [vmem:[%s7039_s1 + $0xbc0] sm:$0xff]  ;;  %v344_v21 = vld [vmem:[%s7039_s1 + $0x998] sm:$0xff]  ;;  %v2810_v15 = vpack.c.bf16 %v474_v8, %v470_v7  ;;  %v379_v20 = vld [vmem:[%s7039_s1 + $0xab0] sm:$0xff] }
  0xb9   :  { %3159 = vmatprep.subr.bf16.mxu1 %v3158_v26  ;;  %v2784_v59 = vpack.c.bf16 %v417_v49, %v413_v63  ;;  %v437_v26 = vld [vmem:[%s7039_s1 + $0xc80] sm:$0xff]  ;;  %v3178_v29 = vpack.c.bf16 %v348_v22, %v344_v21  ;;  %v3184_v63 = vpack.c.bf16 %v355_v42, %v351_v40  ;;  %v478_v21 = vld [vmem:[%s7039_s1 + $0xdc8] sm:$0xff]  ;;  %v391_v42 = vld [vmem:[%s7039_s1 + $0xb10] sm:$0xff] }
  0xba   :  { %2777 = vmatpush1.bf16.msra.mxu0 %v2776_v33  ;;  %v450_v33 = vld [vmem:[%s7039_s1 + $0xce8] sm:$0xff]  ;;  %v2796_v36 = vpack.c.bf16 %v441_v32, %v437_v26  ;;  %v449_v18 = vld [vmem:[%s7039_s1 + $0xce0] sm:$0xff]  ;;  %v3196_v26 = vpack.c.bf16 %v379_v20, %v375_v28  ;;  %v411_v8 = vld [vmem:[%s7039_s1 + $0xbb0] sm:$0xff] }
  0xbb   :  { %2779 = vmatprep.subr.bf16.mxu0 %v2778_v35  ;;  %v356_v35 = vld [vmem:[%s7039_s1 + $0x9f8] sm:$0xff]  ;;  %v2798_v38 = vpack.c.bf16 %v450_v33, %v446_v31  ;;  %v482_v22 = vld [vmem:[%s7039_s1 + $0xde8] sm:$0xff]  ;;  %v387_v33 = vld [vmem:[%s7039_s1 + $0xaf0] sm:$0xff] }
  0xbc   :  { %3161 = vmatpush1.bf16.msra.mxu1 %v3160_v34  ;;  %v352_v34 = vld [vmem:[%s7039_s1 + $0x9d8] sm:$0xff]  ;;  %v2814_v32 = vpack.c.bf16 %v482_v22, %v478_v21  ;;  %v485_v40 = vld [vmem:[%s7039_s1 + $0xe00] sm:$0xff]  ;;  %v415_v20 = vld [vmem:[%s7039_s1 + $0xbd0] sm:$0xff] }
  0xbd   :  { %3163 = vmatprep.subr.bf16.mxu1 %v3162_v39  ;;  %v445_v39 = vld [vmem:[%s7039_s1 + $0xcc0] sm:$0xff]  ;;  %v3182_v41 = vpack.c.bf16 %v356_v35, %v352_v34  ;;  %v486_v34 = vld [vmem:[%s7039_s1 + $0xe08] sm:$0xff]  ;;  %v419_v22 = vld [vmem:[%s7039_s1 + $0xbf0] sm:$0xff] }
  0xbe   :  { %2781 = vmatpush1.bf16.msra.mxu0 %v2780_v44  ;;  %v458_v44 = vld [vmem:[%s7039_s1 + $0xd28] sm:$0xff]  ;;  %v509_v28 = vld [vmem:[%s7039_s1 + $0xec0] sm:$0xff] }
  0xbf   :  { %2783 = vmatprep.subr.bf16.mxu0 %v2782_v48  ;;  %v2800_v48 = vpack.c.bf16 %v449_v18, %v445_v39  ;;  %v2802_v49 = vpack.c.bf16 %v458_v44, %v454_v43  ;;  %v490_v35 = vld [vmem:[%s7039_s1 + $0xe28] sm:$0xff]  ;;  %v3200_v39 = vpack.c.bf16 %v387_v33, %v383_v30  ;;  %v395_v44 = vld [vmem:[%s7039_s1 + $0xb30] sm:$0xff]  ;;  %v517_v30 = vld [vmem:[%s7039_s1 + $0xf00] sm:$0xff] }
  0xc0   :  { %3165 = vmatpush1.bf16.msra.mxu1 %v3164_v46  ;;  %v364_v46 = vld [vmem:[%s7039_s1 + $0xa38] sm:$0xff]  ;;  %v2818_v18 = vpack.c.bf16 %v490_v35, %v486_v34  ;;  %v423_v33 = vld [vmem:[%s7039_s1 + $0xc10] sm:$0xff] }
  0xc1   :  { %3167 = vmatprep.subr.bf16.mxu1 %v3166_v52  ;;  %v457_v52 = vld [vmem:[%s7039_s1 + $0xd20] sm:$0xff]  ;;  %v3186_v53 = vpack.c.bf16 %v364_v46, %v360_v45  ;;  %v494_v45 = vld [vmem:[%s7039_s1 + $0xe48] sm:$0xff]  ;;  %v427_v35 = vld [vmem:[%s7039_s1 + $0xc30] sm:$0xff] }
  0xc2   :  { %2785 = vmatpush1.bf16.msra.mxu0 %v2784_v59  ;;  %v368_v59 = vld [vmem:[%s7039_s1 + $0xa58] sm:$0xff]  ;;  %v498_v46 = vld [vmem:[%s7039_s1 + $0xe68] sm:$0xff] }
  0xc3   :  { %2787 = vmatprep.subr.bf16.mxu0 %v2786_v61  ;;  %v2804_v61 = vpack.c.bf16 %v457_v52, %v453_v51  ;;  %v3204_v51 = vpack.c.bf16 %v395_v44, %v391_v42  ;;  %v2822_v52 = vpack.c.bf16 %v498_v46, %v494_v45  ;;  %v525_v42 = vld [vmem:[%s7039_s1 + $0xf40] sm:$0xff]  ;;  %v431_v44 = vld [vmem:[%s7039_s1 + $0xc50] sm:$0xff] }
  0xc4   :  { %3169 = vmatpush1.bf16.msra.mxu1 %v3168_v47  ;;  %v372_v47 = vld [vmem:[%s7039_s1 + $0xa78] sm:$0xff]  ;;  %v435_v46 = vld [vmem:[%s7039_s1 + $0xc70] sm:$0xff] }
  0xc5   :  { %3171 = vmatprep.subr.bf16.mxu1 %v3170_v3  ;;  %1209 = vmatmul.mubr.f32.vlgmr.msra.gmra.mrb[0].mxu0 %v4623_v57  ;;  %v465_v3 = vld [vmem:[%s7039_s1 + $0xd60] sm:$0xff]  ;;  %v3190_v5 = vpack.c.bf16 %v372_v47, %v368_v59  ;;  %v502_v59 = vld [vmem:[%s7039_s1 + $0xe88] sm:$0xff] }
  0xc6   :  { %2789 = vmatpush1.bf16.msra.mxu0 %v2788_v9  ;;  %1279 = vmatprep.mubr.f32.mxu0 %v5015_v10  ;;  %v376_v9 = vld [vmem:[%s7039_s1 + $0xa98] sm:$0xff]  ;;  %v506_v47 = vld [vmem:[%s7039_s1 + $0xea8] sm:$0xff] }
  0xc7   :  { %2791 = vmatprep.subr.bf16.mxu0 %v2790_v12  ;;  %v2808_v12 = vpack.c.bf16 %v465_v3, %v461_v2  ;;  %v3208_v2 = vpack.c.bf16 %v403_v58, %v399_v54  ;;  %v2826_v3 = vpack.c.bf16 %v506_v47, %v502_v59  ;;  %v533_v54 = vld [vmem:[%s7039_s1 + $0xf80] sm:$0xff]  ;;  %v439_v58 = vld [vmem:[%s7039_s1 + $0xc90] sm:$0xff]  ;;  %v542_v47 = vld [vmem:[%s7039_s1 + $0xfc8] sm:$0xff] }
  0xc8   :  { %3173 = vmatpush1.bf16.msra.mxu1 %v3172_v11  ;;  %v380_v11 = vld [vmem:[%s7039_s1 + $0xab8] sm:$0xff] }
  0xc9   :  { %3175 = vmatprep.subr.bf16.mxu1 %v3174_v17  ;;  %v473_v17 = vld [vmem:[%s7039_s1 + $0xda0] sm:$0xff]  ;;  %v3194_v19 = vpack.c.bf16 %v380_v11, %v376_v9  ;;  %v510_v9 = vld [vmem:[%s7039_s1 + $0xec8] sm:$0xff] }
  0xca   :  { %2793 = vmatpush1.bf16.msra.mxu0 %v2792_v23  ;;  %v384_v23 = vld [vmem:[%s7039_s1 + $0xad8] sm:$0xff]  ;;  %v514_v11 = vld [vmem:[%s7039_s1 + $0xee8] sm:$0xff] }
  0xcb   :  { %2795 = vmatprep.subr.bf16.mxu0 %v2794_v25  ;;  %v2812_v25 = vpack.c.bf16 %v473_v17, %v469_v16  ;;  %v3212_v16 = vpack.c.bf16 %v411_v8, %v407_v6  ;;  %v2830_v17 = vpack.c.bf16 %v514_v11, %v510_v9  ;;  %v447_v6 = vld [vmem:[%s7039_s1 + $0xcd0] sm:$0xff]  ;;  %v550_v11 = vld [vmem:[%s7039_s1 + $0x1008] sm:$0xff] }
  0xcc   :  { %3177 = vmatpush1.bf16.msra.mxu1 %v3176_v24  ;;  %v388_v24 = vld [vmem:[%s7039_s1 + $0xaf8] sm:$0xff]  ;;  %v451_v9 = vld [vmem:[%s7039_s1 + $0xcf0] sm:$0xff] }
  0xcd   :  { %3179 = vmatprep.subr.bf16.mxu1 %v3178_v29  ;;  %v481_v29 = vld [vmem:[%s7039_s1 + $0xde0] sm:$0xff]  ;;  %v3198_v31 = vpack.c.bf16 %v388_v24, %v384_v23  ;;  %v518_v23 = vld [vmem:[%s7039_s1 + $0xf08] sm:$0xff] }
  0xce   :  { %2797 = vmatpush1.bf16.msra.mxu0 %v2796_v36  ;;  %v392_v36 = vld [vmem:[%s7039_s1 + $0xb18] sm:$0xff]  ;;  %v522_v24 = vld [vmem:[%s7039_s1 + $0xf28] sm:$0xff] }
  0xcf   :  { %2799 = vmatprep.subr.bf16.mxu0 %v2798_v38  ;;  %v2816_v38 = vpack.c.bf16 %v481_v29, %v477_v27  ;;  %v3216_v27 = vpack.c.bf16 %v419_v22, %v415_v20  ;;  %v2834_v29 = vpack.c.bf16 %v522_v24, %v518_v23  ;;  %v549_v20 = vld [vmem:[%s7039_s1 + $0x1000] sm:$0xff]  ;;  %v455_v22 = vld [vmem:[%s7039_s1 + $0xd10] sm:$0xff] }
  0xd0   :  { %3181 = vmatpush1.bf16.msra.mxu1 %v3180_v37  ;;  %v396_v37 = vld [vmem:[%s7039_s1 + $0xb38] sm:$0xff]  ;;  %v459_v24 = vld [vmem:[%s7039_s1 + $0xd30] sm:$0xff] }
  0xd1   :  { %3183 = vmatprep.subr.bf16.mxu1 %v3182_v41  ;;  %v489_v41 = vld [vmem:[%s7039_s1 + $0xe20] sm:$0xff]  ;;  %v3202_v43 = vpack.c.bf16 %v396_v37, %v392_v36  ;;  %v526_v36 = vld [vmem:[%s7039_s1 + $0xf48] sm:$0xff] }
  0xd2   :  { %2801 = vmatpush1.bf16.msra.mxu0 %v2800_v48  ;;  %v400_v48 = vld [vmem:[%s7039_s1 + $0xb58] sm:$0xff]  ;;  %v530_v37 = vld [vmem:[%s7039_s1 + $0xf68] sm:$0xff] }
  0xd3   :  { %2803 = vmatprep.subr.bf16.mxu0 %v2802_v49  ;;  %v2820_v49 = vpack.c.bf16 %v489_v41, %v485_v40  ;;  %v3220_v40 = vpack.c.bf16 %v427_v35, %v423_v33  ;;  %v2838_v41 = vpack.c.bf16 %v530_v37, %v526_v36  ;;  %v3236_v33 = vpack.c.bf16 %v459_v24, %v455_v22  ;;  %v561_v35 = vld [vmem:[%s7039_s1 + $0x1060] sm:$0xff]  ;;  %v463_v36 = vld [vmem:[%s7039_s1 + $0xd50] sm:$0xff] }
  0xd4   :  { %3185 = vmatpush1.bf16.msra.mxu1 %v3184_v63  ;;  %v404_v63 = vld [vmem:[%s7039_s1 + $0xb78] sm:$0xff]  ;;  %v467_v37 = vld [vmem:[%s7039_s1 + $0xd70] sm:$0xff] }
  0xd5   :  { %3187 = vmatprep.subr.bf16.mxu1 %v3186_v53  ;;  %v497_v53 = vld [vmem:[%s7039_s1 + $0xe60] sm:$0xff]  ;;  %v3206_v55 = vpack.c.bf16 %v404_v63, %v400_v48  ;;  %v534_v48 = vld [vmem:[%s7039_s1 + $0xf88] sm:$0xff] }
  0xd6   :  { %2805 = vmatpush1.bf16.msra.mxu0 %v2804_v61  ;;  %v408_v61 = vld [vmem:[%s7039_s1 + $0xb98] sm:$0xff]  ;;  %v538_v63 = vld [vmem:[%s7039_s1 + $0xfa8] sm:$0xff] }
  0xd7   :  { %2807 = vmatprep.subr.bf16.mxu0 %v2806_v1  ;;  %v2824_v1 = vpack.c.bf16 %v497_v53, %v493_v50  ;;  %v3224_v50 = vpack.c.bf16 %v435_v46, %v431_v44  ;;  %v2842_v53 = vpack.c.bf16 %v538_v63, %v534_v48 }
  0xd8   :  { %3189 = vmatpush1.bf16.msra.mxu1 %v3188_v62  ;;  %v412_v62 = vld [vmem:[%s7039_s1 + $0xbb8] sm:$0xff] }
  0xd9   :  { %3191 = vmatprep.subr.bf16.mxu1 %v3190_v5  ;;  %v505_v5 = vld [vmem:[%s7039_s1 + $0xea0] sm:$0xff]  ;;  %v3210_v7 = vpack.c.bf16 %v412_v62, %v408_v61  ;;  %v546_v61 = vld [vmem:[%s7039_s1 + $0xfe8] sm:$0xff]  ;;  %v448_v62 = vld [vmem:[%s7039_s1 + $0xcd8] sm:$0xff] }
  0xda   :  { %2809 = vmatpush1.bf16.msra.mxu0 %v2808_v12  ;;  %v416_v12 = vld [vmem:[%s7039_s1 + $0xbd8] sm:$0xff] }
  0xdb   :  { %2811 = vmatprep.subr.bf16.mxu0 %v2810_v15  ;;  %v2828_v15 = vpack.c.bf16 %v505_v5, %v501_v4  ;;  %v2846_v5 = vpack.c.bf16 %v546_v61, %v542_v47 }
  0xdc   :  { %3193 = vmatpush1.bf16.msra.mxu1 %v3192_v13  ;;  %v420_v13 = vld [vmem:[%s7039_s1 + $0xbf8] sm:$0xff] }
  0xdd   :  { %3195 = vmatprep.subr.bf16.mxu1 %v3194_v19  ;;  %v513_v19 = vld [vmem:[%s7039_s1 + $0xee0] sm:$0xff]  ;;  %v3214_v21 = vpack.c.bf16 %v420_v13, %v416_v12  ;;  %v554_v12 = vld [vmem:[%s7039_s1 + $0x1028] sm:$0xff]  ;;  %v456_v13 = vld [vmem:[%s7039_s1 + $0xd18] sm:$0xff] }
  0xde   :  { %2813 = vmatpush1.bf16.msra.mxu0 %v2812_v25  ;;  %v424_v25 = vld [vmem:[%s7039_s1 + $0xc18] sm:$0xff] }
  0xdf   :  { %2815 = vmatprep.subr.bf16.mxu0 %v2814_v32  ;;  %v2832_v32 = vpack.c.bf16 %v513_v19, %v509_v28  ;;  %v3232_v28 = vpack.c.bf16 %v451_v9, %v447_v6  ;;  %v2850_v19 = vpack.c.bf16 %v554_v12, %v550_v11 }
  0xe0   :  { %3197 = vmatpush1.bf16.msra.mxu1 %v3196_v26  ;;  %v428_v26 = vld [vmem:[%s7039_s1 + $0xc38] sm:$0xff] }
  0xe1   :  { %3199 = vmatprep.subr.bf16.mxu1 %v3198_v31  ;;  %v521_v31 = vld [vmem:[%s7039_s1 + $0xf20] sm:$0xff]  ;;  %v3218_v34 = vpack.c.bf16 %v428_v26, %v424_v25  ;;  %v558_v25 = vld [vmem:[%s7039_s1 + $0x1048] sm:$0xff] }
  0xe2   :  { %2817 = vmatpush1.bf16.msra.mxu0 %v2816_v38  ;;  %v432_v38 = vld [vmem:[%s7039_s1 + $0xc58] sm:$0xff]  ;;  %v562_v26 = vld [vmem:[%s7039_s1 + $0x1068] sm:$0xff] }
  0xe3   :  { %2819 = vmatprep.subr.bf16.mxu0 %v2818_v18  ;;  %v2836_v18 = vpack.c.bf16 %v521_v31, %v517_v30  ;;  %v557_v30 = vld [vmem:[%s7039_s1 + $0x1040] sm:$0xff] }
  0xe4   :  { %3201 = vmatpush1.bf16.msra.mxu1 %v3200_v39  ;;  %v436_v39 = vld [vmem:[%s7039_s1 + $0xc78] sm:$0xff] }
  0xe5   :  { %3203 = vmatprep.subr.bf16.mxu1 %v3202_v43  ;;  %v529_v43 = vld [vmem:[%s7039_s1 + $0xf60] sm:$0xff]  ;;  %v3222_v45 = vpack.c.bf16 %v436_v39, %v432_v38  ;;  %v566_v39 = vld [vmem:[%s7039_s1 + $0x1088] sm:$0xff] }
  0xe6   :  { %2821 = vmatpush1.bf16.msra.mxu0 %v2820_v49  ;;  %v440_v49 = vld [vmem:[%s7039_s1 + $0xc98] sm:$0xff] }
  0xe7   :  { %2823 = vmatprep.subr.bf16.mxu0 %v2822_v52  ;;  %v2840_v52 = vpack.c.bf16 %v529_v43, %v525_v42 }
  0xe8   :  { %3205 = vmatpush1.bf16.msra.mxu1 %v3204_v51  ;;  %v444_v51 = vld [vmem:[%s7039_s1 + $0xcb8] sm:$0xff] }
  0xe9   :  { %3207 = vmatprep.subr.bf16.mxu1 %v3206_v55  ;;  %v537_v55 = vld [vmem:[%s7039_s1 + $0xfa0] sm:$0xff]  ;;  %v3226_v59 = vpack.c.bf16 %v444_v51, %v440_v49 }
  0xea   :  { %2825 = vmatpush1.bf16.msra.mxu0 %v2824_v1  ;;  %v452_v1 = vld [vmem:[%s7039_s1 + $0xcf8] sm:$0xff] }
  0xeb   :  { %2827 = vmatprep.subr.bf16.mxu0 %v2826_v3  ;;  %v541_v3 = vld [vmem:[%s7039_s1 + $0xfc0] sm:$0xff]  ;;  %v3230_v8 = vpack.c.bf16 %v452_v1, %v448_v62 }
  0xec   :  { %3209 = vmatpush1.bf16.msra.mxu1 %v3208_v2  ;;  %v2844_v2 = vpack.c.bf16 %v537_v55, %v533_v54 }
  0xed   :  { %3211 = vmatprep.subr.bf16.mxu1 %v3210_v7  ;;  %v5369_v7 = vld [vmem:[%s7038_s0 + $0x10] sm:$0xff] }
  0xee   :  { %2829 = vmatpush1.bf16.msra.mxu0 %v2828_v15  ;;  %v460_v15 = vld [vmem:[%s7039_s1 + $0xd38] sm:$0xff] }
  0xef   :  { %2831 = vmatprep.subr.bf16.mxu0 %v2830_v17  ;;  %v5388_v17 = vrot.slane %v5369_v7, %v4052_v14  ;;  %v3234_v23 = vpack.c.bf16 %v460_v15, %v456_v13 }
  0xf0   :  { %3213 = vmatpush1.bf16.msra.mxu1 %v3212_v16 }
  0xf1   :  { %3215 = vmatprep.subr.bf16.mxu1 %v3214_v21  ;;  %v553_v21 = vld [vmem:[%s7039_s1 + $0x1020] sm:$0xff]  ;;  %v5419_v31 = vcombine.high %v5388_v17, %v5388_v17 }
  0xf2   :  { %2833 = vmatpush1.bf16.msra.mxu0 %v2832_v32  ;;  %v464_v32 = vld [vmem:[%s7039_s1 + $0xd58] sm:$0xff] }
  0xf3   :  { %2835 = vmatprep.subr.bf16.mxu0 %v2834_v29  ;;  %v2852_v29 = vpack.c.bf16 %v553_v21, %v549_v20 }
  0xf4   :  { %3217 = vmatpush1.bf16.msra.mxu1 %v3216_v27  ;;  %v468_v27 = vld [vmem:[%s7039_s1 + $0xd78] sm:$0xff] }
  0xf5   :  { %3219 = vmatprep.subr.bf16.mxu1 %v3218_v34  ;;  %v2854_v34 = vpack.c.bf16 %v562_v26, %v558_v25  ;;  %v3238_v38 = vpack.c.bf16 %v468_v27, %v464_v32 }
  0xf6   :  { %2837 = vmatpush1.bf16.msra.mxu0 %v2836_v18  ;;  %v570_v18 = vld [vmem:[%s7039_s1 + $0x10a8] sm:$0xff] }
  0xf7   :  { %1706 = vmatmul.mubr.f32.vlgmr.msra.gmra.mrb[2].mxu1 %v4623_v57  ;;  %2839 = vmatprep.subr.bf16.mxu0 %v2838_v41  ;;  %v443_v57 = vld [vmem:[%s7039_s1 + $0xcb0] sm:$0xff] }
  0xf8   :  { %3221 = vmatpush1.bf16.msra.mxu1 %v3220_v40  ;;  %1776 = vmatprep.mubr.f32.mxu1 %v5015_v10  ;;  %v3228_v4 = vpack.c.bf16 %v443_v57, %v439_v58  ;;  %v545_v10 = vld [vmem:[%s7039_s1 + $0xfe0] sm:$0xff] }
  0xf9   :  { %3223 = vmatprep.subr.bf16.mxu1 %v3222_v45  ;;  %v2848_v16 = vpack.c.bf16 %v545_v10, %v541_v3 }
  0xfa   :  { %2841 = vmatpush1.bf16.msra.mxu0 %v2840_v52 }
  0xfb   :  { %2843 = vmatprep.subr.bf16.mxu0 %v2842_v53 }
  0xfc   :  { %3225 = vmatpush1.bf16.msra.mxu1 %v3224_v50 }
  0xfd   :  { %3227 = vmatprep.subr.bf16.mxu1 %v3226_v59 }
  0xfe   :  { %2845 = vmatpush1.bf16.msra.mxu0 %v2844_v2 }
  0xff   :  { %2847 = vmatprep.subr.bf16.mxu0 %v2846_v5 }
 0x100   :  { %3229 = vmatpush1.bf16.msra.mxu1 %v3228_v4 }
 0x101   :  { %3231 = vmatprep.subr.bf16.mxu1 %v3230_v8 }
 0x102   :  { %2849 = vmatpush1.bf16.msra.mxu0 %v2848_v16 }
 0x103   :  { %2851 = vmatprep.subr.bf16.mxu0 %v2850_v19 }
 0x104   :  { %3233 = vmatpush1.bf16.msra.mxu1 %v3232_v28 }
 0x105   :  { %3235 = vmatprep.subr.bf16.mxu1 %v3234_v23 }
 0x106   :  { %14 = vsyncpa [#allocation3], 0  ;;  %1280 = vmatmul.mubr.f32.vlgmr.msra.gmra.mrb[0].mxu0 %v4987_v60  ;;  %v472_v40 = vld [vmem:[%s7039_s1 + $0xd98] sm:$0xff]  ;;  %v2856_v42 = vpack.c.bf16 %v561_v35, %v557_v30  ;;  %v3240_v43 = vpack.c.bf16 %v467_v37, %v463_v36  ;;  %v2858_v44 = vpack.c.bf16 %v570_v18, %v566_v39  ;;  %v565_v45 = vld [vmem:[%s7039_s1 + $0x1080] sm:$0xff]  ;;  %vm3709_vm1 = vmmov 0  }
 0x107   :  { %v476_v41 = vld [vmem:[%s7039_s1 + $0xdb8] sm:$0xff]  ;;  %2853 = vmatpush1.bf16.msra.mxu0 %v2852_v29  ;;  %1350 = vmatprep.mubr.f32.mxu0 %v5419_v31  ;;  %v569_v46 = vld [vmem:[%s7039_s1 + $0x10a0] sm:$0xff]  ;;  %v471_v48 = vld [vmem:[%s7039_s1 + $0xd90] sm:$0xff] }
 0x108   :  { %3237 = vmatpush1.bf16.msra.mxu1 %v3236_v33  ;;  %2855 = vmatprep.subr.bf16.mxu0 %v2854_v34  ;;  %v3242_v63 = vpack.c.bf16 %v476_v41, %v472_v40  ;;  %v475_v49 = vld [vmem:[%s7039_s1 + $0xdb0] sm:$0xff]  ;;  %v574_v51 = vld [vmem:[%s7039_s1 + $0x10c8] sm:$0xff]  ;;  %v480_v53 = vld [vmem:[%s7039_s1 + $0xdd8] sm:$0xff]  ;;  %v2860_v58 = vpack.c.bf16 %v569_v46, %v565_v45 }
 0x109   :  { %3239 = vmatprep.subr.bf16.mxu1 %v3238_v38  ;;  %v578_v52 = vld [vmem:[%s7039_s1 + $0x10e8] sm:$0xff]  ;;  %v484_v54 = vld [vmem:[%s7039_s1 + $0xdf8] sm:$0xff]  ;;  %v3244_v59 = vpack.c.bf16 %v475_v49, %v471_v48  ;;  %v573_v47 = vld [vmem:[%s7039_s1 + $0x10c0] sm:$0xff] }
 0x10a   :  { %v5462_v50 = vpop.f32.mrb[0].mxu1  ;;  %v2862_v57 = vpack.c.bf16 %v578_v52, %v574_v51  ;;  %v577_v61 = vld [vmem:[%s7039_s1 + $0x10e0] sm:$0xff]  ;;  %v479_v62 = vld [vmem:[%s7039_s1 + $0xdd0] sm:$0xff]  ;;  %v3246_v1 = vpack.c.bf16 %v484_v54, %v480_v53  ;;  %v582_v3 = vld [vmem:[%s7039_s1 + $0x1108] sm:$0xff] }
 0x10b   :  { %v5470_v55 = vpop.f32.mrb[1].mxu1  ;;  %2857 = vmatpush1.bf16.msra.mxu0 %v2856_v42  ;;  %v483_v2 = vld [vmem:[%s7039_s1 + $0xdf0] sm:$0xff]  ;;  %v586_v4 = vld [vmem:[%s7039_s1 + $0x1128] sm:$0xff]  ;;  %v488_v5 = vld [vmem:[%s7039_s1 + $0xe18] sm:$0xff]  ;;  %v2864_v6 = vpack.c.bf16 %v577_v61, %v573_v47 }
 0x10c   :  { %3241 = vmatpush1.bf16.msra.mxu1 %v3240_v43  ;;  %2859 = vmatprep.subr.bf16.mxu0 %v2858_v44  ;;  %v492_v10 = vld [vmem:[%s7039_s1 + $0xe38] sm:$0xff]  ;;  %v3248_v8 = vpack.c.bf16 %v483_v2, %v479_v62  ;;  %v2866_v9 = vpack.c.bf16 %v586_v4, %v582_v3  ;;  %v581_v11 = vld [vmem:[%s7039_s1 + $0x1100] sm:$0xff]  ;;  %v487_v13 = vld [vmem:[%s7039_s1 + $0xe10] sm:$0xff] }
 0x10d   :  { %3243 = vmatprep.subr.bf16.mxu1 %v3242_v63  ;;  %v585_v12 = vld [vmem:[%s7039_s1 + $0x1120] sm:$0xff]  ;;  %v3250_v15 = vpack.c.bf16 %v492_v10, %v488_v5  ;;  %v491_v16 = vld [vmem:[%s7039_s1 + $0xe30] sm:$0xff]  ;;  %v590_v28 = vld [vmem:[%s7039_s1 + $0x1148] sm:$0xff] }
 0x10e   :  { %v594_v19 = vld [vmem:[%s7039_s1 + $0x1168] sm:$0xff]  ;;  %v496_v20 = vld [vmem:[%s7039_s1 + $0xe58] sm:$0xff]  ;;  %v2868_v22 = vpack.c.bf16 %v585_v12, %v581_v11  ;;  %v3252_v23 = vpack.c.bf16 %v491_v16, %v487_v13  ;;  %v589_v25 = vld [vmem:[%s7039_s1 + $0x1140] sm:$0xff] }
 0x10f   :  { %2861 = vmatpush1.bf16.msra.mxu0 %v2860_v58  ;;  %v500_v21 = vld [vmem:[%s7039_s1 + $0xe78] sm:$0xff]  ;;  %v2870_v24 = vpack.c.bf16 %v594_v19, %v590_v28  ;;  %v593_v26 = vld [vmem:[%s7039_s1 + $0x1160] sm:$0xff]  ;;  %v495_v32 = vld [vmem:[%s7039_s1 + $0xe50] sm:$0xff] }
 0x110   :  { %3245 = vmatpush1.bf16.msra.mxu1 %v3244_v59  ;;  %2863 = vmatprep.subr.bf16.mxu0 %v2862_v57  ;;  %v3254_v27 = vpack.c.bf16 %v500_v21, %v496_v20  ;;  %v499_v29 = vld [vmem:[%s7039_s1 + $0xe70] sm:$0xff]  ;;  %v598_v30 = vld [vmem:[%s7039_s1 + $0x1188] sm:$0xff]  ;;  %v504_v34 = vld [vmem:[%s7039_s1 + $0xe98] sm:$0xff]  ;;  %v2872_v36 = vpack.c.bf16 %v593_v26, %v589_v25 }
 0x111   :  { %3247 = vmatprep.subr.bf16.mxu1 %v3246_v1  ;;  %v602_v33 = vld [vmem:[%s7039_s1 + $0x11a8] sm:$0xff]  ;;  %v508_v35 = vld [vmem:[%s7039_s1 + $0xeb8] sm:$0xff]  ;;  %v3256_v37 = vpack.c.bf16 %v499_v29, %v495_v32  ;;  %v597_v39 = vld [vmem:[%s7039_s1 + $0x1180] sm:$0xff] }
 0x112   :  { %v2874_v38 = vpack.c.bf16 %v602_v33, %v598_v30  ;;  %v601_v18 = vld [vmem:[%s7039_s1 + $0x11a0] sm:$0xff]  ;;  %v503_v40 = vld [vmem:[%s7039_s1 + $0xe90] sm:$0xff]  ;;  %v3258_v41 = vpack.c.bf16 %v508_v35, %v504_v34  ;;  %v606_v43 = vld [vmem:[%s7039_s1 + $0x11c8] sm:$0xff] }
 0x113   :  { %2865 = vmatpush1.bf16.msra.mxu0 %v2864_v6  ;;  %v507_v42 = vld [vmem:[%s7039_s1 + $0xeb0] sm:$0xff]  ;;  %v610_v44 = vld [vmem:[%s7039_s1 + $0x11e8] sm:$0xff]  ;;  %v512_v45 = vld [vmem:[%s7039_s1 + $0xed8] sm:$0xff]  ;;  %v2876_v48 = vpack.c.bf16 %v601_v18, %v597_v39 }
 0x114   :  { %3249 = vmatpush1.bf16.msra.mxu1 %v3248_v8  ;;  %2867 = vmatprep.subr.bf16.mxu0 %v2866_v9  ;;  %v516_v46 = vld [vmem:[%s7039_s1 + $0xef8] sm:$0xff]  ;;  %v3260_v63 = vpack.c.bf16 %v507_v42, %v503_v40  ;;  %v2878_v49 = vpack.c.bf16 %v610_v44, %v606_v43  ;;  %v605_v51 = vld [vmem:[%s7039_s1 + $0x11c0] sm:$0xff]  ;;  %v511_v53 = vld [vmem:[%s7039_s1 + $0xed0] sm:$0xff] }
 0x115   :  { %3251 = vmatprep.subr.bf16.mxu1 %v3250_v15  ;;  %v609_v52 = vld [vmem:[%s7039_s1 + $0x11e0] sm:$0xff]  ;;  %v3262_v54 = vpack.c.bf16 %v516_v46, %v512_v45  ;;  %v515_v58 = vld [vmem:[%s7039_s1 + $0xef0] sm:$0xff]  ;;  %v614_v59 = vld [vmem:[%s7039_s1 + $0x1208] sm:$0xff] }
 0x116   :  { %v618_v57 = vld [vmem:[%s7039_s1 + $0x1228] sm:$0xff]  ;;  %v520_v47 = vld [vmem:[%s7039_s1 + $0xf18] sm:$0xff]  ;;  %v2880_v62 = vpack.c.bf16 %v609_v52, %v605_v51  ;;  %v3264_v1 = vpack.c.bf16 %v515_v58, %v511_v53  ;;  %v613_v3 = vld [vmem:[%s7039_s1 + $0x1200] sm:$0xff] }
 0x117   :  { %2869 = vmatpush1.bf16.msra.mxu0 %v2868_v22  ;;  %v524_v61 = vld [vmem:[%s7039_s1 + $0xf38] sm:$0xff]  ;;  %v2882_v2 = vpack.c.bf16 %v618_v57, %v614_v59  ;;  %v617_v4 = vld [vmem:[%s7039_s1 + $0x1220] sm:$0xff]  ;;  %v519_v5 = vld [vmem:[%s7039_s1 + $0xf10] sm:$0xff] }
 0x118   :  { %3253 = vmatpush1.bf16.msra.mxu1 %v3252_v23  ;;  %2871 = vmatprep.subr.bf16.mxu0 %v2870_v24  ;;  %v3266_v10 = vpack.c.bf16 %v524_v61, %v520_v47  ;;  %v523_v6 = vld [vmem:[%s7039_s1 + $0xf30] sm:$0xff]  ;;  %v622_v8 = vld [vmem:[%s7039_s1 + $0x1248] sm:$0xff]  ;;  %v528_v11 = vld [vmem:[%s7039_s1 + $0xf58] sm:$0xff]  ;;  %v2884_v13 = vpack.c.bf16 %v617_v4, %v613_v3 }
 0x119   :  { %3255 = vmatprep.subr.bf16.mxu1 %v3254_v27  ;;  %v626_v9 = vld [vmem:[%s7039_s1 + $0x1268] sm:$0xff]  ;;  %v532_v12 = vld [vmem:[%s7039_s1 + $0xf78] sm:$0xff]  ;;  %v3268_v15 = vpack.c.bf16 %v523_v6, %v519_v5  ;;  %v621_v28 = vld [vmem:[%s7039_s1 + $0x1240] sm:$0xff] }
 0x11a   :  { %v2886_v16 = vpack.c.bf16 %v626_v9, %v622_v8  ;;  %v625_v19 = vld [vmem:[%s7039_s1 + $0x1260] sm:$0xff]  ;;  %v527_v20 = vld [vmem:[%s7039_s1 + $0xf50] sm:$0xff]  ;;  %v3270_v21 = vpack.c.bf16 %v532_v12, %v528_v11  ;;  %v630_v23 = vld [vmem:[%s7039_s1 + $0x1288] sm:$0xff] }
 0x11b   :  { %2873 = vmatpush1.bf16.msra.mxu0 %v2872_v36  ;;  %v531_v22 = vld [vmem:[%s7039_s1 + $0xf70] sm:$0xff]  ;;  %v634_v24 = vld [vmem:[%s7039_s1 + $0x12a8] sm:$0xff]  ;;  %v536_v25 = vld [vmem:[%s7039_s1 + $0xf98] sm:$0xff]  ;;  %v2888_v32 = vpack.c.bf16 %v625_v19, %v621_v28 }
 0x11c   :  { %3257 = vmatpush1.bf16.msra.mxu1 %v3256_v37  ;;  %2875 = vmatprep.subr.bf16.mxu0 %v2874_v38  ;;  %v540_v26 = vld [vmem:[%s7039_s1 + $0xfb8] sm:$0xff]  ;;  %v3272_v27 = vpack.c.bf16 %v531_v22, %v527_v20  ;;  %v2890_v29 = vpack.c.bf16 %v634_v24, %v630_v23  ;;  %v629_v30 = vld [vmem:[%s7039_s1 + $0x1280] sm:$0xff]  ;;  %v535_v34 = vld [vmem:[%s7039_s1 + $0xf90] sm:$0xff] }
 0x11d   :  { %3259 = vmatprep.subr.bf16.mxu1 %v3258_v41  ;;  %v633_v33 = vld [vmem:[%s7039_s1 + $0x12a0] sm:$0xff]  ;;  %v3274_v35 = vpack.c.bf16 %v540_v26, %v536_v25  ;;  %v539_v36 = vld [vmem:[%s7039_s1 + $0xfb0] sm:$0xff]  ;;  %v638_v37 = vld [vmem:[%s7039_s1 + $0x12c8] sm:$0xff] }
 0x11e   :  { %v642_v38 = vld [vmem:[%s7039_s1 + $0x12e8] sm:$0xff]  ;;  %v544_v39 = vld [vmem:[%s7039_s1 + $0xfd8] sm:$0xff]  ;;  %v2892_v40 = vpack.c.bf16 %v633_v33, %v629_v30  ;;  %v3276_v41 = vpack.c.bf16 %v539_v36, %v535_v34  ;;  %v637_v43 = vld [vmem:[%s7039_s1 + $0x12c0] sm:$0xff]  ;;  %v961_v34 = vcombine.high %v5369_v7, %v5369_v7 }
 0x11f   :  { %2877 = vmatpush1.bf16.msra.mxu0 %v2876_v48  ;;  %v548_v18 = vld [vmem:[%s7039_s1 + $0xff8] sm:$0xff]  ;;  %v2894_v42 = vpack.c.bf16 %v642_v38, %v638_v37  ;;  %v641_v44 = vld [vmem:[%s7039_s1 + $0x12e0] sm:$0xff]  ;;  %v543_v45 = vld [vmem:[%s7039_s1 + $0xfd0] sm:$0xff] }
 0x120   :  { %3261 = vmatpush1.bf16.msra.mxu1 %v3260_v63  ;;  %2879 = vmatprep.subr.bf16.mxu0 %v2878_v49  ;;  %v3278_v46 = vpack.c.bf16 %v548_v18, %v544_v39  ;;  %v547_v48 = vld [vmem:[%s7039_s1 + $0xff0] sm:$0xff]  ;;  %v646_v63 = vld [vmem:[%s7039_s1 + $0x1308] sm:$0xff]  ;;  %v552_v51 = vld [vmem:[%s7039_s1 + $0x1018] sm:$0xff]  ;;  %v2896_v53 = vpack.c.bf16 %v641_v44, %v637_v43  ;;  %v5789_v44 = vrot.slane %v961_v34, %v4052_v14 }
 0x121   :  { %3263 = vmatprep.subr.bf16.mxu1 %v3262_v54  ;;  %v650_v49 = vld [vmem:[%s7039_s1 + $0x1328] sm:$0xff]  ;;  %v556_v52 = vld [vmem:[%s7039_s1 + $0x1038] sm:$0xff]  ;;  %v3280_v54 = vpack.c.bf16 %v547_v48, %v543_v45  ;;  %v645_v59 = vld [vmem:[%s7039_s1 + $0x1300] sm:$0xff] }
 0x122   :  { %v2898_v58 = vpack.c.bf16 %v650_v49, %v646_v63  ;;  %v649_v57 = vld [vmem:[%s7039_s1 + $0x1320] sm:$0xff]  ;;  %v551_v47 = vld [vmem:[%s7039_s1 + $0x1010] sm:$0xff]  ;;  %v3282_v61 = vpack.c.bf16 %v556_v52, %v552_v51  ;;  %v560_v3 = vld [vmem:[%s7039_s1 + $0x1058] sm:$0xff] }
 0x123   :  { %2881 = vmatpush1.bf16.msra.mxu0 %v2880_v62  ;;  %v555_v62 = vld [vmem:[%s7039_s1 + $0x1030] sm:$0xff]  ;;  %v564_v4 = vld [vmem:[%s7039_s1 + $0x1078] sm:$0xff]  ;;  %v2900_v5 = vpack.c.bf16 %v649_v57, %v645_v59  ;;  %v653_v8 = vld [vmem:[%s7039_s1 + $0x1340] sm:$0xff]  ;;  %v5817_v57 = vcombine.high %v5789_v44, %v5789_v44 }
 0x124   :  { %3265 = vmatpush1.bf16.msra.mxu1 %v3264_v1  ;;  %2883 = vmatprep.subr.bf16.mxu0 %v2882_v2  ;;  %v654_v1 = vld [vmem:[%s7039_s1 + $0x1348] sm:$0xff]  ;;  %v657_v9 = vld [vmem:[%s7039_s1 + $0x1360] sm:$0xff]  ;;  %v559_v11 = vld [vmem:[%s7039_s1 + $0x1050] sm:$0xff]  ;;  %v3286_v12 = vpack.c.bf16 %v564_v4, %v560_v3 }
 0x125   :  { %3267 = vmatprep.subr.bf16.mxu1 %v3266_v10  ;;  %v658_v2 = vld [vmem:[%s7039_s1 + $0x1368] sm:$0xff]  ;;  %v3284_v10 = vpack.c.bf16 %v555_v62, %v551_v47  ;;  %v568_v28 = vld [vmem:[%s7039_s1 + $0x1098] sm:$0xff]  ;;  %v2904_v20 = vpack.c.bf16 %v657_v9, %v653_v8  ;;  %v661_v23 = vld [vmem:[%s7039_s1 + $0x1380] sm:$0xff] }
 0x126   :  { %v2902_v6 = vpack.c.bf16 %v658_v2, %v654_v1  ;;  %v572_v19 = vld [vmem:[%s7039_s1 + $0x10b8] sm:$0xff]  ;;  %v665_v24 = vld [vmem:[%s7039_s1 + $0x13a0] sm:$0xff]  ;;  %v567_v25 = vld [vmem:[%s7039_s1 + $0x1090] sm:$0xff] }
 0x127   :  { %2885 = vmatpush1.bf16.msra.mxu0 %v2884_v13  ;;  %v563_v13 = vld [vmem:[%s7039_s1 + $0x1070] sm:$0xff]  ;;  %v3290_v26 = vpack.c.bf16 %v572_v19, %v568_v28  ;;  %v580_v30 = vld [vmem:[%s7039_s1 + $0x10f8] sm:$0xff]  ;;  %v2908_v33 = vpack.c.bf16 %v665_v24, %v661_v23  ;;  %v673_v37 = vld [vmem:[%s7039_s1 + $0x13e0] sm:$0xff] }
 0x128   :  { %3269 = vmatpush1.bf16.msra.mxu1 %v3268_v15  ;;  %2887 = vmatprep.subr.bf16.mxu0 %v2886_v16  ;;  %v662_v15 = vld [vmem:[%s7039_s1 + $0x1388] sm:$0xff]  ;;  %v575_v38 = vld [vmem:[%s7039_s1 + $0x10d0] sm:$0xff]  ;;  %v677_v48 = vld [vmem:[%s7039_s1 + $0x1400] sm:$0xff] }
 0x129   :  { %3271 = vmatprep.subr.bf16.mxu1 %v3270_v21  ;;  %v666_v16 = vld [vmem:[%s7039_s1 + $0x13a8] sm:$0xff]  ;;  %v3288_v21 = vpack.c.bf16 %v563_v13, %v559_v11  ;;  %v579_v7 = vld [vmem:[%s7039_s1 + $0x10f0] sm:$0xff]  ;;  %v681_v63 = vld [vmem:[%s7039_s1 + $0x1420] sm:$0xff] }
 0x12a   :  { %v2906_v22 = vpack.c.bf16 %v666_v16, %v662_v15  ;;  %v678_v18 = vld [vmem:[%s7039_s1 + $0x1408] sm:$0xff]  ;;  %v3296_v45 = vpack.c.bf16 %v579_v7, %v575_v38  ;;  %v583_v49 = vld [vmem:[%s7039_s1 + $0x1110] sm:$0xff]  ;;  %v2916_v59 = vpack.c.bf16 %v681_v63, %v677_v48  ;;  %v685_v62 = vld [vmem:[%s7039_s1 + $0x1440] sm:$0xff] }
 0x12b   :  { %2889 = vmatpush1.bf16.msra.mxu0 %v2888_v32  ;;  %v670_v32 = vld [vmem:[%s7039_s1 + $0x13c8] sm:$0xff]  ;;  %v587_v14 = vld [vmem:[%s7039_s1 + $0x1130] sm:$0xff]  ;;  %v689_v1 = vld [vmem:[%s7039_s1 + $0x1460] sm:$0xff] }
 0x12c   :  { %3273 = vmatpush1.bf16.msra.mxu1 %v3272_v27  ;;  %2891 = vmatprep.subr.bf16.mxu0 %v2890_v29  ;;  %v674_v27 = vld [vmem:[%s7039_s1 + $0x13e8] sm:$0xff]  ;;  %v576_v29 = vld [vmem:[%s7039_s1 + $0x10d8] sm:$0xff]  ;;  %v3300_v47 = vpack.c.bf16 %v587_v14, %v583_v49  ;;  %v591_v2 = vld [vmem:[%s7039_s1 + $0x1150] sm:$0xff]  ;;  %v2920_v9 = vpack.c.bf16 %v689_v1, %v685_v62 }
 0x12d   :  { %3275 = vmatprep.subr.bf16.mxu1 %v3274_v35  ;;  %v2910_v36 = vpack.c.bf16 %v674_v27, %v670_v32  ;;  %v3294_v39 = vpack.c.bf16 %v580_v30, %v576_v29  ;;  %v686_v52 = vld [vmem:[%s7039_s1 + $0x1448] sm:$0xff]  ;;  %v595_v4 = vld [vmem:[%s7039_s1 + $0x1170] sm:$0xff]  ;;  %v604_v8 = vld [vmem:[%s7039_s1 + $0x11b8] sm:$0xff] }
 0x12e   :  { %v3304_v11 = vpack.c.bf16 %v595_v4, %v591_v2  ;;  %v693_v13 = vld [vmem:[%s7039_s1 + $0x1480] sm:$0xff]  ;;  %v599_v16 = vld [vmem:[%s7039_s1 + $0x1190] sm:$0xff]  ;;  %v612_v23 = vld [vmem:[%s7039_s1 + $0x11f8] sm:$0xff] }
 0x12f   :  { %2893 = vmatpush1.bf16.msra.mxu0 %v2892_v40  ;;  %v682_v40 = vld [vmem:[%s7039_s1 + $0x1428] sm:$0xff]  ;;  %v697_v15 = vld [vmem:[%s7039_s1 + $0x14a0] sm:$0xff]  ;;  %v603_v19 = vld [vmem:[%s7039_s1 + $0x11b0] sm:$0xff] }
 0x130   :  { %3277 = vmatpush1.bf16.msra.mxu1 %v3276_v41  ;;  %2895 = vmatprep.subr.bf16.mxu0 %v2894_v42  ;;  %v584_v41 = vld [vmem:[%s7039_s1 + $0x1118] sm:$0xff]  ;;  %v2924_v24 = vpack.c.bf16 %v697_v15, %v693_v13  ;;  %v705_v32 = vld [vmem:[%s7039_s1 + $0x14e0] sm:$0xff]  ;;  %v607_v27 = vld [vmem:[%s7039_s1 + $0x11d0] sm:$0xff] }
 0x131   :  { %3279 = vmatprep.subr.bf16.mxu1 %v3278_v46  ;;  %v588_v42 = vld [vmem:[%s7039_s1 + $0x1138] sm:$0xff]  ;;  %v2914_v46 = vpack.c.bf16 %v682_v40, %v678_v18  ;;  %v611_v30 = vld [vmem:[%s7039_s1 + $0x11f0] sm:$0xff]  ;;  %v714_v34 = vld [vmem:[%s7039_s1 + $0x1528] sm:$0xff] }
 0x132   :  { %v3298_v51 = vpack.c.bf16 %v588_v42, %v584_v41  ;;  %v713_v7 = vld [vmem:[%s7039_s1 + $0x1520] sm:$0xff]  ;;  %v615_v18 = vld [vmem:[%s7039_s1 + $0x1210] sm:$0xff]  ;;  %v718_v42 = vld [vmem:[%s7039_s1 + $0x1548] sm:$0xff] }
 0x133   :  { %2897 = vmatpush1.bf16.msra.mxu0 %v2896_v53  ;;  %v690_v53 = vld [vmem:[%s7039_s1 + $0x1468] sm:$0xff]  ;;  %v619_v41 = vld [vmem:[%s7039_s1 + $0x1230] sm:$0xff]  ;;  %v721_v14 = vld [vmem:[%s7039_s1 + $0x1560] sm:$0xff] }
 0x134   :  { %3281 = vmatpush1.bf16.msra.mxu1 %v3280_v54  ;;  %2899 = vmatprep.subr.bf16.mxu0 %v2898_v58  ;;  %v592_v54 = vld [vmem:[%s7039_s1 + $0x1158] sm:$0xff]  ;;  %v3316_v63 = vpack.c.bf16 %v619_v41, %v615_v18  ;;  %v729_v4 = vld [vmem:[%s7039_s1 + $0x15a0] sm:$0xff] }
 0x135   :  { %3283 = vmatprep.subr.bf16.mxu1 %v3282_v61  ;;  %v596_v58 = vld [vmem:[%s7039_s1 + $0x1178] sm:$0xff]  ;;  %v2918_v61 = vpack.c.bf16 %v690_v53, %v686_v52  ;;  %v623_v52 = vld [vmem:[%s7039_s1 + $0x1250] sm:$0xff]  ;;  %v753_v41 = vld [vmem:[%s7039_s1 + $0x1660] sm:$0xff] }
 0x136   :  { %v3302_v3 = vpack.c.bf16 %v596_v58, %v592_v54  ;;  %v627_v54 = vld [vmem:[%s7039_s1 + $0x1270] sm:$0xff]  ;;  %v726_v58 = vld [vmem:[%s7039_s1 + $0x1588] sm:$0xff] }
 0x137   :  { %2901 = vmatpush1.bf16.msra.mxu0 %v2900_v5  ;;  %1777 = vmatmul.mubr.f32.vlgmr.msra.gmra.mrb[2].mxu1 %v4987_v60  ;;  %v571_v60 = vld [vmem:[%s7039_s1 + $0x10b0] sm:$0xff]  ;;  %v694_v5 = vld [vmem:[%s7039_s1 + $0x1488] sm:$0xff]  ;;  %v3320_v1 = vpack.c.bf16 %v627_v54, %v623_v52  ;;  %v761_v54 = vld [vmem:[%s7039_s1 + $0x16a0] sm:$0xff] }
 0x138   :  { %3285 = vmatpush1.bf16.msra.mxu1 %v3284_v10  ;;  %2903 = vmatprep.subr.bf16.mxu0 %v2902_v6  ;;  %v3292_v35 = vpack.c.bf16 %v571_v60, %v567_v25  ;;  %v698_v10 = vld [vmem:[%s7039_s1 + $0x14a8] sm:$0xff]  ;;  %v600_v6 = vld [vmem:[%s7039_s1 + $0x1198] sm:$0xff]  ;;  %v3308_v25 = vpack.c.bf16 %v603_v19, %v599_v16  ;;  %v701_v60 = vld [vmem:[%s7039_s1 + $0x14c0] sm:$0xff] }
 0x139   :  { %3287 = vmatprep.subr.bf16.mxu1 %v3286_v12  ;;  %1847 = vmatprep.mubr.f32.mxu1 %v5419_v31  ;;  %v669_v31 = vld [vmem:[%s7039_s1 + $0x13c0] sm:$0xff]  ;;  %v2922_v12 = vpack.c.bf16 %v698_v10, %v694_v5  ;;  %v3306_v28 = vpack.c.bf16 %v604_v8, %v600_v6  ;;  %v631_v5 = vld [vmem:[%s7039_s1 + $0x1290] sm:$0xff]  ;;  %v734_v8 = vld [vmem:[%s7039_s1 + $0x15c8] sm:$0xff] }
 0x13a   :  { %v2912_v43 = vpack.c.bf16 %v673_v37, %v669_v31  ;;  %v2928_v31 = vpack.c.bf16 %v705_v32, %v701_v60  ;;  %v3312_v37 = vpack.c.bf16 %v611_v30, %v607_v27  ;;  %v635_v6 = vld [vmem:[%s7039_s1 + $0x12b0] sm:$0xff]  ;;  %v737_v19 = vld [vmem:[%s7039_s1 + $0x15e0] sm:$0xff] }
 0x13b   :  { %2905 = vmatpush1.bf16.msra.mxu0 %v2904_v20  ;;  %v702_v20 = vld [vmem:[%s7039_s1 + $0x14c8] sm:$0xff]  ;;  %v3324_v15 = vpack.c.bf16 %v635_v6, %v631_v5  ;;  %v745_v30 = vld [vmem:[%s7039_s1 + $0x1620] sm:$0xff] }
 0x13c   :  { %3289 = vmatpush1.bf16.msra.mxu1 %v3288_v21  ;;  %2907 = vmatprep.subr.bf16.mxu0 %v2906_v22  ;;  %v706_v21 = vld [vmem:[%s7039_s1 + $0x14e8] sm:$0xff]  ;;  %v608_v22 = vld [vmem:[%s7039_s1 + $0x11d8] sm:$0xff]  ;;  %v769_v6 = vld [vmem:[%s7039_s1 + $0x16e0] sm:$0xff] }
 0x13d   :  { %3291 = vmatprep.subr.bf16.mxu1 %v3290_v26  ;;  %v2926_v26 = vpack.c.bf16 %v706_v21, %v702_v20  ;;  %v3310_v29 = vpack.c.bf16 %v612_v23, %v608_v22  ;;  %v639_v20 = vld [vmem:[%s7039_s1 + $0x12d0] sm:$0xff]  ;;  %v742_v23 = vld [vmem:[%s7039_s1 + $0x1608] sm:$0xff] }
 0x13e   :  { %v643_v22 = vld [vmem:[%s7039_s1 + $0x12f0] sm:$0xff] }
 0x13f   :  { %2909 = vmatpush1.bf16.msra.mxu0 %v2908_v33  ;;  %v710_v33 = vld [vmem:[%s7039_s1 + $0x1508] sm:$0xff]  ;;  %v3328_v32 = vpack.c.bf16 %v643_v22, %v639_v20  ;;  %v777_v22 = vld [vmem:[%s7039_s1 + $0x1720] sm:$0xff] }
 0x140   :  { %3293 = vmatpush1.bf16.msra.mxu1 %v3292_v35  ;;  %2911 = vmatprep.subr.bf16.mxu0 %v2910_v36  ;;  %v616_v35 = vld [vmem:[%s7039_s1 + $0x1218] sm:$0xff]  ;;  %v2930_v38 = vpack.c.bf16 %v714_v34, %v710_v33  ;;  %v647_v33 = vld [vmem:[%s7039_s1 + $0x1310] sm:$0xff] }
 0x141   :  { %3295 = vmatprep.subr.bf16.mxu1 %v3294_v39  ;;  %v620_v36 = vld [vmem:[%s7039_s1 + $0x1238] sm:$0xff]  ;;  %v709_v39 = vld [vmem:[%s7039_s1 + $0x1500] sm:$0xff] }
 0x142   :  { %v3314_v40 = vpack.c.bf16 %v620_v36, %v616_v35  ;;  %v2932_v48 = vpack.c.bf16 %v713_v7, %v709_v39  ;;  %v651_v35 = vld [vmem:[%s7039_s1 + $0x1330] sm:$0xff]  ;;  %v750_v36 = vld [vmem:[%s7039_s1 + $0x1648] sm:$0xff] }
 0x143   :  { %2913 = vmatpush1.bf16.msra.mxu0 %v2912_v43  ;;  %v722_v43 = vld [vmem:[%s7039_s1 + $0x1568] sm:$0xff]  ;;  %v3332_v7 = vpack.c.bf16 %v651_v35, %v647_v33  ;;  %v785_v35 = vld [vmem:[%s7039_s1 + $0x1760] sm:$0xff] }
 0x144   :  { %3297 = vmatpush1.bf16.msra.mxu1 %v3296_v45  ;;  %2915 = vmatprep.subr.bf16.mxu0 %v2914_v46  ;;  %v624_v45 = vld [vmem:[%s7039_s1 + $0x1258] sm:$0xff]  ;;  %v2934_v49 = vpack.c.bf16 %v722_v43, %v718_v42  ;;  %v655_v42 = vld [vmem:[%s7039_s1 + $0x1350] sm:$0xff] }
 0x145   :  { %3299 = vmatprep.subr.bf16.mxu1 %v3298_v51  ;;  %v628_v46 = vld [vmem:[%s7039_s1 + $0x1278] sm:$0xff]  ;;  %v717_v51 = vld [vmem:[%s7039_s1 + $0x1540] sm:$0xff] }
 0x146   :  { %1351 = vmatmul.mubr.f32.vlgmr.msra.gmra.mrb[0].mxu0 %v5388_v17  ;;  %v3318_v53 = vpack.c.bf16 %v628_v46, %v624_v45  ;;  %v2936_v62 = vpack.c.bf16 %v721_v14, %v717_v51  ;;  %v659_v45 = vld [vmem:[%s7039_s1 + $0x1370] sm:$0xff]  ;;  %v758_v46 = vld [vmem:[%s7039_s1 + $0x1688] sm:$0xff] }
 0x147   :  { %2917 = vmatpush1.bf16.msra.mxu0 %v2916_v59  ;;  %1421 = vmatprep.mubr.f32.mxu0 %v5817_v57  ;;  %v730_v59 = vld [vmem:[%s7039_s1 + $0x15a8] sm:$0xff]  ;;  %v3336_v14 = vpack.c.bf16 %v659_v45, %v655_v42  ;;  %v793_v45 = vld [vmem:[%s7039_s1 + $0x17a0] sm:$0xff] }
 0x148   :  { %3301 = vmatpush1.bf16.msra.mxu1 %v3300_v47  ;;  %2919 = vmatprep.subr.bf16.mxu0 %v2918_v61  ;;  %v632_v47 = vld [vmem:[%s7039_s1 + $0x1298] sm:$0xff]  ;;  %v2938_v2 = vpack.c.bf16 %v730_v59, %v726_v58  ;;  %v663_v58 = vld [vmem:[%s7039_s1 + $0x1390] sm:$0xff] }
 0x149   :  { %3303 = vmatprep.subr.bf16.mxu1 %v3302_v3  ;;  %v636_v61 = vld [vmem:[%s7039_s1 + $0x12b8] sm:$0xff]  ;;  %v725_v3 = vld [vmem:[%s7039_s1 + $0x1580] sm:$0xff] }
 0x14a   :  { %v3322_v10 = vpack.c.bf16 %v636_v61, %v632_v47  ;;  %v2940_v13 = vpack.c.bf16 %v729_v4, %v725_v3  ;;  %v667_v47 = vld [vmem:[%s7039_s1 + $0x13b0] sm:$0xff]  ;;  %v766_v61 = vld [vmem:[%s7039_s1 + $0x16c8] sm:$0xff] }
 0x14b   :  { %2921 = vmatpush1.bf16.msra.mxu0 %v2920_v9  ;;  %v738_v9 = vld [vmem:[%s7039_s1 + $0x15e8] sm:$0xff]  ;;  %v3340_v4 = vpack.c.bf16 %v667_v47, %v663_v58  ;;  %v797_v58 = vld [vmem:[%s7039_s1 + $0x17c0] sm:$0xff] }
 0x14c   :  { %3305 = vmatpush1.bf16.msra.mxu1 %v3304_v11  ;;  %2923 = vmatprep.subr.bf16.mxu0 %v2922_v12  ;;  %v640_v11 = vld [vmem:[%s7039_s1 + $0x12d8] sm:$0xff]  ;;  %v2942_v16 = vpack.c.bf16 %v738_v9, %v734_v8  ;;  %v671_v8 = vld [vmem:[%s7039_s1 + $0x13d0] sm:$0xff] }
 0x14d   :  { %3307 = vmatprep.subr.bf16.mxu1 %v3306_v28  ;;  %v644_v12 = vld [vmem:[%s7039_s1 + $0x12f8] sm:$0xff]  ;;  %v733_v28 = vld [vmem:[%s7039_s1 + $0x15c0] sm:$0xff] }
 0x14e   :  { %v3326_v21 = vpack.c.bf16 %v644_v12, %v640_v11  ;;  %v2944_v60 = vpack.c.bf16 %v737_v19, %v733_v28  ;;  %v675_v11 = vld [vmem:[%s7039_s1 + $0x13f0] sm:$0xff]  ;;  %v774_v12 = vld [vmem:[%s7039_s1 + $0x1708] sm:$0xff] }
 0x14f   :  { %2925 = vmatpush1.bf16.msra.mxu0 %v2924_v24  ;;  %v746_v24 = vld [vmem:[%s7039_s1 + $0x1628] sm:$0xff]  ;;  %v3344_v19 = vpack.c.bf16 %v675_v11, %v671_v8  ;;  %v2000_v8 = vld [vmem:[%s7041_s3] sm:$0xff] }
 0x150   :  { %3309 = vmatpush1.bf16.msra.mxu1 %v3308_v25  ;;  %2927 = vmatprep.subr.bf16.mxu0 %v2926_v26  ;;  %v648_v25 = vld [vmem:[%s7039_s1 + $0x1318] sm:$0xff]  ;;  %v2946_v27 = vpack.c.bf16 %v746_v24, %v742_v23  ;;  %v679_v23 = vld [vmem:[%s7039_s1 + $0x1410] sm:$0xff] }
 0x151   :  { %3311 = vmatprep.subr.bf16.mxu1 %v3310_v29  ;;  %v652_v26 = vld [vmem:[%s7039_s1 + $0x1338] sm:$0xff]  ;;  %v741_v29 = vld [vmem:[%s7039_s1 + $0x1600] sm:$0xff] }
 0x152   :  { %v3330_v34 = vpack.c.bf16 %v652_v26, %v648_v25  ;;  %v2948_v39 = vpack.c.bf16 %v745_v30, %v741_v29  ;;  %v683_v25 = vld [vmem:[%s7039_s1 + $0x1430] sm:$0xff]  ;;  %v782_v26 = vld [vmem:[%s7039_s1 + $0x1748] sm:$0xff] }
 0x153   :  { %2929 = vmatpush1.bf16.msra.mxu0 %v2928_v31  ;;  %v754_v31 = vld [vmem:[%s7039_s1 + $0x1668] sm:$0xff]  ;;  %v3348_v30 = vpack.c.bf16 %v683_v25, %v679_v23  ;;  %v2004_v23 = vld [vmem:[%s7041_s3 + $0x20] sm:$0xff] }
 0x154   :  { %3313 = vmatpush1.bf16.msra.mxu1 %v3312_v37  ;;  %2931 = vmatprep.subr.bf16.mxu0 %v2930_v38  ;;  %v656_v37 = vld [vmem:[%s7039_s1 + $0x1358] sm:$0xff]  ;;  %v2950_v18 = vpack.c.bf16 %v754_v31, %v750_v36  ;;  %v687_v36 = vld [vmem:[%s7039_s1 + $0x1450] sm:$0xff] }
 0x155   :  { %3315 = vmatprep.subr.bf16.mxu1 %v3314_v40  ;;  %v660_v38 = vld [vmem:[%s7039_s1 + $0x1378] sm:$0xff]  ;;  %v749_v40 = vld [vmem:[%s7039_s1 + $0x1640] sm:$0xff] }
 0x156   :  { %v3334_v43 = vpack.c.bf16 %v660_v38, %v656_v37  ;;  %v2952_v51 = vpack.c.bf16 %v753_v41, %v749_v40  ;;  %v691_v37 = vld [vmem:[%s7039_s1 + $0x1470] sm:$0xff]  ;;  %v790_v38 = vld [vmem:[%s7039_s1 + $0x1788] sm:$0xff] }
 0x157   :  { %2933 = vmatpush1.bf16.msra.mxu0 %v2932_v48  ;;  %v762_v48 = vld [vmem:[%s7039_s1 + $0x16a8] sm:$0xff]  ;;  %v3352_v41 = vpack.c.bf16 %v691_v37, %v687_v36  ;;  %v2008_v36 = vld [vmem:[%s7041_s3 + $0x40] sm:$0xff] }
 0x158   :  { %3317 = vmatpush1.bf16.msra.mxu1 %v3316_v63  ;;  %2935 = vmatprep.subr.bf16.mxu0 %v2934_v49  ;;  %v664_v63 = vld [vmem:[%s7039_s1 + $0x1398] sm:$0xff]  ;;  %v2954_v52 = vpack.c.bf16 %v762_v48, %v758_v46  ;;  %v695_v46 = vld [vmem:[%s7039_s1 + $0x1490] sm:$0xff] }
 0x159   :  { %3319 = vmatprep.subr.bf16.mxu1 %v3318_v53  ;;  %v668_v49 = vld [vmem:[%s7039_s1 + $0x13b8] sm:$0xff]  ;;  %v757_v53 = vld [vmem:[%s7039_s1 + $0x1680] sm:$0xff] }
 0x15a   :  { %v3338_v59 = vpack.c.bf16 %v668_v49, %v664_v63  ;;  %v2956_v3 = vpack.c.bf16 %v761_v54, %v757_v53  ;;  %v798_v63 = vld [vmem:[%s7039_s1 + $0x17c8] sm:$0xff] }
 0x15b   :  { %2937 = vmatpush1.bf16.msra.mxu0 %v2936_v62  ;;  %v770_v62 = vld [vmem:[%s7039_s1 + $0x16e8] sm:$0xff] }
 0x15c   :  { %3321 = vmatpush1.bf16.msra.mxu1 %v3320_v1  ;;  %2939 = vmatprep.subr.bf16.mxu0 %v2938_v2  ;;  %v672_v1 = vld [vmem:[%s7039_s1 + $0x13d8] sm:$0xff]  ;;  %v2958_v5 = vpack.c.bf16 %v770_v62, %v766_v61  ;;  %v802_v49 = vld [vmem:[%s7039_s1 + $0x17e8] sm:$0xff]  ;;  %v707_v61 = vld [vmem:[%s7039_s1 + $0x14f0] sm:$0xff] }
 0x15d   :  { %3323 = vmatprep.subr.bf16.mxu1 %v3322_v10  ;;  %v676_v2 = vld [vmem:[%s7039_s1 + $0x13f8] sm:$0xff]  ;;  %v765_v10 = vld [vmem:[%s7039_s1 + $0x16c0] sm:$0xff]  ;;  %v2974_v54 = vpack.c.bf16 %v802_v49, %v798_v63  ;;  %v2001_v62 = vld [vmem:[%s7041_s3 + $0x8] sm:$0xff] }
 0x15e   :  { %v3342_v9 = vpack.c.bf16 %v676_v2, %v672_v1  ;;  %v2960_v28 = vpack.c.bf16 %v769_v6, %v765_v10  ;;  %v2003_v1 = vld [vmem:[%s7041_s3 + $0x18] sm:$0xff]  ;;  %v711_v10 = vld [vmem:[%s7039_s1 + $0x1510] sm:$0xff]  ;;  %v2017_v49 = vld [vmem:[%s7041_s3 + $0x88] sm:$0xff] }
 0x15f   :  { %2941 = vmatpush1.bf16.msra.mxu0 %v2940_v13  ;;  %v778_v13 = vld [vmem:[%s7039_s1 + $0x1728] sm:$0xff]  ;;  %v712_v2 = vld [vmem:[%s7039_s1 + $0x1518] sm:$0xff]  ;;  %v3458_v6 = vpack.c.bf16 %v2003_v1, %v2001_v62  ;;  %v739_v63 = vld [vmem:[%s7039_s1 + $0x15f0] sm:$0xff] }
 0x160   :  { %3325 = vmatpush1.bf16.msra.mxu1 %v3324_v15  ;;  %2943 = vmatprep.subr.bf16.mxu0 %v2942_v16  ;;  %v680_v15 = vld [vmem:[%s7039_s1 + $0x1418] sm:$0xff]  ;;  %v2962_v20 = vpack.c.bf16 %v778_v13, %v774_v12  ;;  %v715_v12 = vld [vmem:[%s7039_s1 + $0x1530] sm:$0xff]  ;;  %v2005_v13 = vld [vmem:[%s7041_s3 + $0x28] sm:$0xff] }
 0x161   :  { %3327 = vmatprep.subr.bf16.mxu1 %v3326_v21  ;;  %v684_v16 = vld [vmem:[%s7039_s1 + $0x1438] sm:$0xff]  ;;  %v773_v21 = vld [vmem:[%s7039_s1 + $0x1700] sm:$0xff]  ;;  %v747_v62 = vld [vmem:[%s7039_s1 + $0x1630] sm:$0xff] }
 0x162   :  { %v3346_v24 = vpack.c.bf16 %v684_v16, %v680_v15  ;;  %v2964_v29 = vpack.c.bf16 %v777_v22, %v773_v21  ;;  %v2007_v15 = vld [vmem:[%s7041_s3 + $0x38] sm:$0xff]  ;;  %v719_v21 = vld [vmem:[%s7039_s1 + $0x1550] sm:$0xff]  ;;  %v2021_v1 = vld [vmem:[%s7041_s3 + $0xa8] sm:$0xff] }
 0x163   :  { %2945 = vmatpush1.bf16.msra.mxu0 %v2944_v60  ;;  %v786_v60 = vld [vmem:[%s7039_s1 + $0x1768] sm:$0xff]  ;;  %v720_v16 = vld [vmem:[%s7039_s1 + $0x1558] sm:$0xff]  ;;  %v3462_v22 = vpack.c.bf16 %v2007_v15, %v2005_v13  ;;  %v755_v13 = vld [vmem:[%s7039_s1 + $0x1670] sm:$0xff] }
 0x164   :  { %3329 = vmatpush1.bf16.msra.mxu1 %v3328_v32  ;;  %2947 = vmatprep.subr.bf16.mxu0 %v2946_v27  ;;  %v688_v32 = vld [vmem:[%s7039_s1 + $0x1458] sm:$0xff]  ;;  %v2966_v33 = vpack.c.bf16 %v786_v60, %v782_v26  ;;  %v723_v26 = vld [vmem:[%s7039_s1 + $0x1570] sm:$0xff]  ;;  %v2009_v60 = vld [vmem:[%s7041_s3 + $0x48] sm:$0xff] }
 0x165   :  { %3331 = vmatprep.subr.bf16.mxu1 %v3330_v34  ;;  %v692_v27 = vld [vmem:[%s7039_s1 + $0x1478] sm:$0xff]  ;;  %v781_v34 = vld [vmem:[%s7039_s1 + $0x1740] sm:$0xff]  ;;  %v2025_v15 = vld [vmem:[%s7041_s3 + $0xc8] sm:$0xff] }
 0x166   :  { %v3350_v31 = vpack.c.bf16 %v692_v27, %v688_v32  ;;  %v2968_v40 = vpack.c.bf16 %v785_v35, %v781_v34  ;;  %v2011_v32 = vld [vmem:[%s7041_s3 + $0x58] sm:$0xff]  ;;  %v727_v34 = vld [vmem:[%s7039_s1 + $0x1590] sm:$0xff] }
 0x167   :  { %2949 = vmatpush1.bf16.msra.mxu0 %v2948_v39  ;;  %v794_v39 = vld [vmem:[%s7039_s1 + $0x17a8] sm:$0xff]  ;;  %v728_v27 = vld [vmem:[%s7039_s1 + $0x1598] sm:$0xff]  ;;  %v3466_v35 = vpack.c.bf16 %v2011_v32, %v2009_v60  ;;  %v763_v60 = vld [vmem:[%s7039_s1 + $0x16b0] sm:$0xff] }
 0x168   :  { %3333 = vmatpush1.bf16.msra.mxu1 %v3332_v7  ;;  %2951 = vmatprep.subr.bf16.mxu0 %v2950_v18  ;;  %v696_v7 = vld [vmem:[%s7039_s1 + $0x1498] sm:$0xff]  ;;  %v2970_v42 = vpack.c.bf16 %v794_v39, %v790_v38  ;;  %v731_v38 = vld [vmem:[%s7039_s1 + $0x15b0] sm:$0xff]  ;;  %v2013_v39 = vld [vmem:[%s7041_s3 + $0x68] sm:$0xff] }
 0x169   :  { %3335 = vmatprep.subr.bf16.mxu1 %v3334_v43  ;;  %v700_v18 = vld [vmem:[%s7039_s1 + $0x14b8] sm:$0xff]  ;;  %v789_v43 = vld [vmem:[%s7039_s1 + $0x1780] sm:$0xff]  ;;  %v2029_v32 = vld [vmem:[%s7041_s3 + $0xe8] sm:$0xff] }
 0x16a   :  { %v3354_v48 = vpack.c.bf16 %v700_v18, %v696_v7  ;;  %v2015_v7 = vld [vmem:[%s7041_s3 + $0x78] sm:$0xff] }
 0x16b   :  { %2953 = vmatpush1.bf16.msra.mxu0 %v2952_v51  ;;  %v704_v51 = vld [vmem:[%s7039_s1 + $0x14d8] sm:$0xff] }
 0x16c   :  { %3337 = vmatpush1.bf16.msra.mxu1 %v3336_v14  ;;  %2955 = vmatprep.subr.bf16.mxu0 %v2954_v52  ;;  %v708_v14 = vld [vmem:[%s7039_s1 + $0x14f8] sm:$0xff]  ;;  %v2972_v52 = vpack.c.bf16 %v793_v45, %v789_v43  ;;  %v735_v43 = vld [vmem:[%s7039_s1 + $0x15d0] sm:$0xff]  ;;  %v3470_v45 = vpack.c.bf16 %v2015_v7, %v2013_v39  ;;  %v2033_v7 = vld [vmem:[%s7041_s3 + $0x108] sm:$0xff] }
 0x16d   :  { %3339 = vmatprep.subr.bf16.mxu1 %v3338_v59  ;;  %v703_v59 = vld [vmem:[%s7039_s1 + $0x14d0] sm:$0xff]  ;;  %v3358_v47 = vpack.c.bf16 %v708_v14, %v704_v51  ;;  %v736_v18 = vld [vmem:[%s7039_s1 + $0x15d8] sm:$0xff] }
 0x16e   :  { %v2019_v51 = vld [vmem:[%s7041_s3 + $0x98] sm:$0xff]  ;;  %v771_v39 = vld [vmem:[%s7039_s1 + $0x16f0] sm:$0xff] }
 0x16f   :  { %2957 = vmatpush1.bf16.msra.mxu0 %v2956_v3  ;;  %v716_v3 = vld [vmem:[%s7039_s1 + $0x1538] sm:$0xff] }
 0x170   :  { %3341 = vmatpush1.bf16.msra.mxu1 %v3340_v4  ;;  %2959 = vmatprep.subr.bf16.mxu0 %v2958_v5  ;;  %v3360_v5 = vpack.c.bf16 %v707_v61, %v703_v59  ;;  %v3362_v11 = vpack.c.bf16 %v716_v3, %v712_v2  ;;  %v744_v14 = vld [vmem:[%s7039_s1 + $0x1618] sm:$0xff]  ;;  %v2016_v59 = vld [vmem:[%s7041_s3 + $0x80] sm:$0xff] }
 0x171   :  { %3343 = vmatprep.subr.bf16.mxu1 %v3342_v9  ;;  %v2002_v9 = vld [vmem:[%s7041_s3 + $0x10] sm:$0xff]  ;;  %v2023_v2 = vld [vmem:[%s7041_s3 + $0xb8] sm:$0xff] }
 0x172   :  { %v752_v3 = vld [vmem:[%s7039_s1 + $0x1658] sm:$0xff] }
 0x173   :  { %2961 = vmatpush1.bf16.msra.mxu0 %v2960_v28  ;;  %v724_v28 = vld [vmem:[%s7039_s1 + $0x1578] sm:$0xff] }
 0x174   :  { %3345 = vmatpush1.bf16.msra.mxu1 %v3344_v19  ;;  %2963 = vmatprep.subr.bf16.mxu0 %v2962_v20  ;;  %v3460_v19 = vpack.c.bf16 %v2002_v9, %v2000_v8  ;;  %v3364_v20 = vpack.c.bf16 %v715_v12, %v711_v10  ;;  %v3366_v25 = vpack.c.bf16 %v724_v28, %v720_v16  ;;  %v2020_v9 = vld [vmem:[%s7041_s3 + $0xa0] sm:$0xff]  ;;  %v2027_v16 = vld [vmem:[%s7041_s3 + $0xd8] sm:$0xff] }
 0x175   :  { %3347 = vmatprep.subr.bf16.mxu1 %v3346_v24  ;;  %v2006_v24 = vld [vmem:[%s7041_s3 + $0x30] sm:$0xff]  ;;  %v3478_v8 = vpack.c.bf16 %v2023_v2, %v2021_v1  ;;  %v760_v28 = vld [vmem:[%s7039_s1 + $0x1698] sm:$0xff]  ;;  %v2041_v2 = vld [vmem:[%s7041_s3 + $0x148] sm:$0xff] }
 0x176   :  { %v787_v1 = vld [vmem:[%s7039_s1 + $0x1770] sm:$0xff] }
 0x177   :  { %2965 = vmatpush1.bf16.msra.mxu0 %v2964_v29  ;;  %1848 = vmatmul.mubr.f32.vlgmr.msra.gmra.mrb[2].mxu1 %v5388_v17  ;;  %v699_v17 = vld [vmem:[%s7039_s1 + $0x14b0] sm:$0xff]  ;;  %v732_v29 = vld [vmem:[%s7039_s1 + $0x15b8] sm:$0xff] }
 0x178   :  { %3349 = vmatpush1.bf16.msra.mxu1 %v3348_v30  ;;  %2967 = vmatprep.subr.bf16.mxu0 %v2966_v33  ;;  %v3356_v53 = vpack.c.bf16 %v699_v17, %v695_v46  ;;  %v3464_v30 = vpack.c.bf16 %v2006_v24, %v2004_v23  ;;  %v3368_v33 = vpack.c.bf16 %v723_v26, %v719_v21  ;;  %v2012_v46 = vld [vmem:[%s7041_s3 + $0x60] sm:$0xff] }
 0x179   :  { %3351 = vmatprep.subr.bf16.mxu1 %v3350_v31  ;;  %1918 = vmatprep.mubr.f32.mxu1 %v5817_v57  ;;  %v801_v57 = vld [vmem:[%s7039_s1 + $0x17e0] sm:$0xff]  ;;  %v2010_v31 = vld [vmem:[%s7041_s3 + $0x50] sm:$0xff]  ;;  %v3370_v37 = vpack.c.bf16 %v732_v29, %v728_v27  ;;  %v3482_v23 = vpack.c.bf16 %v2027_v16, %v2025_v15  ;;  %v2031_v27 = vld [vmem:[%s7041_s3 + $0xf8] sm:$0xff] }
 0x17a   :  { %v2976_v4 = vpack.c.bf16 %v801_v57, %v797_v58  ;;  %v743_v58 = vld [vmem:[%s7039_s1 + $0x1610] sm:$0xff]  ;;  %v3474_v57 = vpack.c.bf16 %v2019_v51, %v2017_v49  ;;  %v2024_v24 = vld [vmem:[%s7041_s3 + $0xc0] sm:$0xff]  ;;  %v768_v29 = vld [vmem:[%s7039_s1 + $0x16d8] sm:$0xff] }
 0x17b   :  { %2969 = vmatpush1.bf16.msra.mxu0 %v2968_v40  ;;  %v740_v40 = vld [vmem:[%s7039_s1 + $0x15f8] sm:$0xff]  ;;  %v3380_v10 = vpack.c.bf16 %v747_v62, %v743_v58  ;;  %v779_v49 = vld [vmem:[%s7039_s1 + $0x1730] sm:$0xff]  ;;  %v2037_v51 = vld [vmem:[%s7041_s3 + $0x128] sm:$0xff] }
 0x17c   :  { %3353 = vmatpush1.bf16.msra.mxu1 %v3352_v41  ;;  %2971 = vmatprep.subr.bf16.mxu0 %v2970_v42  ;;  %v3468_v41 = vpack.c.bf16 %v2010_v31, %v2008_v36  ;;  %v3372_v42 = vpack.c.bf16 %v731_v38, %v727_v34  ;;  %v3374_v17 = vpack.c.bf16 %v740_v40, %v736_v18  ;;  %v2028_v31 = vld [vmem:[%s7041_s3 + $0xe0] sm:$0xff]  ;;  %v2035_v18 = vld [vmem:[%s7041_s3 + $0x118] sm:$0xff]  ;;  %v795_v15 = vld [vmem:[%s7039_s1 + $0x17b0] sm:$0xff] }
 0x17d   :  { %3355 = vmatprep.subr.bf16.mxu1 %v3354_v48  ;;  %v2014_v48 = vld [vmem:[%s7041_s3 + $0x70] sm:$0xff]  ;;  %v3486_v36 = vpack.c.bf16 %v2031_v27, %v2029_v32  ;;  %v776_v40 = vld [vmem:[%s7039_s1 + $0x1718] sm:$0xff]  ;;  %v2045_v16 = vld [vmem:[%s7041_s3 + $0x168] sm:$0xff] }
 0x17e   :  { %v803_v32 = vld [vmem:[%s7039_s1 + $0x17f0] sm:$0xff]  ;;  %v2049_v27 = vld [vmem:[%s7041_s3 + $0x188] sm:$0xff] }
 0x17f   :  { %2973 = vmatpush1.bf16.msra.mxu0 %v2972_v52  ;;  %v748_v52 = vld [vmem:[%s7039_s1 + $0x1638] sm:$0xff] }
 0x180   :  { %3357 = vmatpush1.bf16.msra.mxu1 %v3356_v53  ;;  %2975 = vmatprep.subr.bf16.mxu0 %v2974_v54  ;;  %v3472_v53 = vpack.c.bf16 %v2014_v48, %v2012_v46  ;;  %v3376_v54 = vpack.c.bf16 %v739_v63, %v735_v43  ;;  %v3378_v61 = vpack.c.bf16 %v748_v52, %v744_v14  ;;  %v2032_v48 = vld [vmem:[%s7041_s3 + $0x100] sm:$0xff]  ;;  %v2039_v14 = vld [vmem:[%s7041_s3 + $0x138] sm:$0xff] }
 0x181   :  { %3359 = vmatprep.subr.bf16.mxu1 %v3358_v47  ;;  %v2018_v47 = vld [vmem:[%s7041_s3 + $0x90] sm:$0xff]  ;;  %v3490_v46 = vpack.c.bf16 %v2035_v18, %v2033_v7  ;;  %v784_v52 = vld [vmem:[%s7039_s1 + $0x1758] sm:$0xff] }
 0x182   :  { %v811_v7 = vld [vmem:[%s7039_s1 + $0x1830] sm:$0xff]  ;;  %v816_v18 = vld [vmem:[%s7039_s1 + $0x1858] sm:$0xff] }
 0x183   :  { %2977 = vmatpush1.bf16.msra.mxu0 %v2976_v4  ;;  %v756_v4 = vld [vmem:[%s7039_s1 + $0x1678] sm:$0xff] }
 0x184   :  { %3361 = vmatpush1.bf16.msra.mxu1 %v3360_v5  ;;  %3459 = vmatprep.subr.bf16.mxu0 %v3458_v6  ;;  %v3476_v5 = vpack.c.bf16 %v2018_v47, %v2016_v59  ;;  %v751_v6 = vld [vmem:[%s7039_s1 + $0x1650] sm:$0xff]  ;;  %v3382_v12 = vpack.c.bf16 %v756_v4, %v752_v3  ;;  %v3494_v59 = vpack.c.bf16 %v2039_v14, %v2037_v51  ;;  %v2036_v47 = vld [vmem:[%s7041_s3 + $0x120] sm:$0xff]  ;;  %v2043_v3 = vld [vmem:[%s7041_s3 + $0x158] sm:$0xff] }
 0x185   :  { %3363 = vmatprep.subr.bf16.mxu1 %v3362_v11  ;;  %v2022_v11 = vld [vmem:[%s7041_s3 + $0xb0] sm:$0xff]  ;;  %v3384_v21 = vpack.c.bf16 %v755_v13, %v751_v6  ;;  %v792_v4 = vld [vmem:[%s7039_s1 + $0x1798] sm:$0xff] }
 0x186   :  { %1422 = vmatmul.mubr.f32.vlgmr.msra.gmra.mrb[0].mxu0 %v5789_v44  ;;  %v824_v14 = vld [vmem:[%s7039_s1 + $0x1898] sm:$0xff] }
 0x187   :  { %3461 = vmatpush1.bf16.msra.mxu0 %v3460_v19  ;;  %v764_v19 = vld [vmem:[%s7039_s1 + $0x16b8] sm:$0xff] }
 0x188   :  { %3365 = vmatpush1.bf16.msra.mxu1 %v3364_v20  ;;  %3463 = vmatprep.subr.bf16.mxu0 %v3462_v22  ;;  %v3480_v20 = vpack.c.bf16 %v2022_v11, %v2020_v9  ;;  %v759_v22 = vld [vmem:[%s7039_s1 + $0x1690] sm:$0xff]  ;;  %v3386_v26 = vpack.c.bf16 %v764_v19, %v760_v28  ;;  %v3498_v9 = vpack.c.bf16 %v2043_v3, %v2041_v2  ;;  %v2040_v11 = vld [vmem:[%s7041_s3 + $0x140] sm:$0xff]  ;;  %v2047_v28 = vld [vmem:[%s7041_s3 + $0x178] sm:$0xff] }
 0x189   :  { %3367 = vmatprep.subr.bf16.mxu1 %v3366_v25  ;;  %v2026_v25 = vld [vmem:[%s7041_s3 + $0xd0] sm:$0xff]  ;;  %v3388_v34 = vpack.c.bf16 %v763_v60, %v759_v22  ;;  %v800_v19 = vld [vmem:[%s7039_s1 + $0x17d8] sm:$0xff] }
 0x18a   :  { %v840_v2 = vld [vmem:[%s7039_s1 + $0x1918] sm:$0xff] }
 0x18b   :  { %3465 = vmatpush1.bf16.msra.mxu0 %v3464_v30  ;;  %v772_v30 = vld [vmem:[%s7039_s1 + $0x16f8] sm:$0xff] }
 0x18c   :  { %3369 = vmatpush1.bf16.msra.mxu1 %v3368_v33  ;;  %3467 = vmatprep.subr.bf16.mxu0 %v3466_v35  ;;  %v3484_v33 = vpack.c.bf16 %v2026_v25, %v2024_v24  ;;  %v767_v35 = vld [vmem:[%s7039_s1 + $0x16d0] sm:$0xff]  ;;  %v3390_v38 = vpack.c.bf16 %v772_v30, %v768_v29  ;;  %v3502_v24 = vpack.c.bf16 %v2047_v28, %v2045_v16  ;;  %v2044_v25 = vld [vmem:[%s7041_s3 + $0x160] sm:$0xff]  ;;  %v2051_v29 = vld [vmem:[%s7041_s3 + $0x198] sm:$0xff] }
 0x18d   :  { %3371 = vmatprep.subr.bf16.mxu1 %v3370_v37  ;;  %v2030_v37 = vld [vmem:[%s7041_s3 + $0xf0] sm:$0xff]  ;;  %v3392_v43 = vpack.c.bf16 %v771_v39, %v767_v35  ;;  %v808_v30 = vld [vmem:[%s7039_s1 + $0x1818] sm:$0xff] }
 0x18e   :  { %v807_v39 = vld [vmem:[%s7039_s1 + $0x1810] sm:$0xff]  ;;  %v844_v3 = vld [vmem:[%s7039_s1 + $0x1938] sm:$0xff] }
 0x18f   :  { %3469 = vmatpush1.bf16.msra.mxu0 %v3468_v41  ;;  %v780_v41 = vld [vmem:[%s7039_s1 + $0x1738] sm:$0xff] }
 0x190   :  { %3373 = vmatpush1.bf16.msra.mxu1 %v3372_v42  ;;  %3471 = vmatprep.subr.bf16.mxu0 %v3470_v45  ;;  %v3488_v42 = vpack.c.bf16 %v2030_v37, %v2028_v31  ;;  %v775_v45 = vld [vmem:[%s7039_s1 + $0x1710] sm:$0xff]  ;;  %v3394_v63 = vpack.c.bf16 %v780_v41, %v776_v40  ;;  %v2048_v31 = vld [vmem:[%s7041_s3 + $0x180] sm:$0xff]  ;;  %v820_v40 = vld [vmem:[%s7039_s1 + $0x1878] sm:$0xff] }
 0x191   :  { %3375 = vmatprep.subr.bf16.mxu1 %v3374_v17  ;;  %v2034_v17 = vld [vmem:[%s7041_s3 + $0x110] sm:$0xff]  ;;  %v3396_v58 = vpack.c.bf16 %v779_v49, %v775_v45  ;;  %v2053_v41 = vld [vmem:[%s7041_s3 + $0x1a8] sm:$0xff]  ;;  %v3412_v45 = vpack.c.bf16 %v811_v7, %v807_v39  ;;  %v856_v16 = vld [vmem:[%s7039_s1 + $0x1998] sm:$0xff] }
 0x192   :  { %v2050_v37 = vld [vmem:[%s7041_s3 + $0x190] sm:$0xff]  ;;  %v860_v28 = vld [vmem:[%s7039_s1 + $0x19b8] sm:$0xff] }
 0x193   :  { %3473 = vmatpush1.bf16.msra.mxu0 %v3472_v53  ;;  %v788_v53 = vld [vmem:[%s7039_s1 + $0x1778] sm:$0xff]  ;;  %v819_v49 = vld [vmem:[%s7039_s1 + $0x1870] sm:$0xff] }
 0x194   :  { %3377 = vmatpush1.bf16.msra.mxu1 %v3376_v54  ;;  %3475 = vmatprep.subr.bf16.mxu0 %v3474_v57  ;;  %v3492_v54 = vpack.c.bf16 %v2034_v17, %v2032_v48  ;;  %v783_v57 = vld [vmem:[%s7039_s1 + $0x1750] sm:$0xff]  ;;  %v3398_v62 = vpack.c.bf16 %v788_v53, %v784_v52  ;;  %v3414_v17 = vpack.c.bf16 %v820_v40, %v816_v18  ;;  %v828_v52 = vld [vmem:[%s7039_s1 + $0x18b8] sm:$0xff] }
 0x195   :  { %3379 = vmatprep.subr.bf16.mxu1 %v3378_v61  ;;  %v2038_v61 = vld [vmem:[%s7041_s3 + $0x130] sm:$0xff]  ;;  %v3400_v6 = vpack.c.bf16 %v787_v1, %v783_v57  ;;  %v888_v18 = vld [vmem:[%s7039_s1 + $0x1a98] sm:$0xff] }
 0x196   :  { %v2054_v48 = vld [vmem:[%s7041_s3 + $0x1b0] sm:$0xff]  ;;  %v892_v40 = vld [vmem:[%s7039_s1 + $0x1ab8] sm:$0xff] }
 0x197   :  { %3477 = vmatpush1.bf16.msra.mxu0 %v3476_v5  ;;  %v796_v5 = vld [vmem:[%s7039_s1 + $0x17b8] sm:$0xff]  ;;  %v823_v57 = vld [vmem:[%s7039_s1 + $0x1890] sm:$0xff] }
 0x198   :  { %3381 = vmatpush1.bf16.msra.mxu1 %v3380_v10  ;;  %3479 = vmatprep.subr.bf16.mxu0 %v3478_v8  ;;  %v3496_v10 = vpack.c.bf16 %v2038_v61, %v2036_v47  ;;  %v791_v8 = vld [vmem:[%s7039_s1 + $0x1790] sm:$0xff]  ;;  %v3402_v13 = vpack.c.bf16 %v796_v5, %v792_v4  ;;  %v836_v47 = vld [vmem:[%s7039_s1 + $0x18f8] sm:$0xff]  ;;  %v3426_v5 = vpack.c.bf16 %v844_v3, %v840_v2  ;;  %v2065_v2 = vld [vmem:[%s7041_s3 + $0x208] sm:$0xff] }
 0x199   :  { %3383 = vmatprep.subr.bf16.mxu1 %v3382_v12  ;;  %v2042_v12 = vld [vmem:[%s7041_s3 + $0x150] sm:$0xff]  ;;  %v3404_v22 = vpack.c.bf16 %v795_v15, %v791_v8  ;;  %v848_v8 = vld [vmem:[%s7039_s1 + $0x1958] sm:$0xff] }
 0x19a   :  { %v835_v1 = vld [vmem:[%s7039_s1 + $0x18f0] sm:$0xff]  ;;  %v2067_v3 = vld [vmem:[%s7041_s3 + $0x218] sm:$0xff] }
 0x19b   :  { %3481 = vmatpush1.bf16.msra.mxu0 %v3480_v20  ;;  %v804_v20 = vld [vmem:[%s7039_s1 + $0x17f8] sm:$0xff]  ;;  %v851_v15 = vld [vmem:[%s7039_s1 + $0x1970] sm:$0xff] }
 0x19c   :  { %3385 = vmatpush1.bf16.msra.mxu1 %v3384_v21  ;;  %3483 = vmatprep.subr.bf16.mxu0 %v3482_v23  ;;  %v3500_v21 = vpack.c.bf16 %v2042_v12, %v2040_v11  ;;  %v799_v23 = vld [vmem:[%s7039_s1 + $0x17d0] sm:$0xff]  ;;  %v3406_v60 = vpack.c.bf16 %v804_v20, %v800_v19  ;;  %v3434_v20 = vpack.c.bf16 %v860_v28, %v856_v16 }
 0x19d   :  { %3387 = vmatprep.subr.bf16.mxu1 %v3386_v26  ;;  %v2046_v26 = vld [vmem:[%s7041_s3 + $0x170] sm:$0xff]  ;;  %v3408_v35 = vpack.c.bf16 %v803_v32, %v799_v23  ;;  %v864_v23 = vld [vmem:[%s7039_s1 + $0x19d8] sm:$0xff] }
 0x19e   :  { %v867_v32 = vld [vmem:[%s7039_s1 + $0x19f0] sm:$0xff] }
 0x19f   :  { %3485 = vmatpush1.bf16.msra.mxu0 %v3484_v33  ;;  %v812_v33 = vld [vmem:[%s7039_s1 + $0x1838] sm:$0xff]  ;;  %v879_v39 = vld [vmem:[%s7039_s1 + $0x1a50] sm:$0xff] }
 0x1a0   :  { %3389 = vmatpush1.bf16.msra.mxu1 %v3388_v34  ;;  %3487 = vmatprep.subr.bf16.mxu0 %v3486_v36  ;;  %v3504_v34 = vpack.c.bf16 %v2046_v26, %v2044_v25  ;;  %v3506_v36 = vpack.c.bf16 %v2051_v29, %v2049_v27  ;;  %v872_v27 = vld [vmem:[%s7039_s1 + $0x1a18] sm:$0xff]  ;;  %v883_v7 = vld [vmem:[%s7039_s1 + $0x1a70] sm:$0xff] }
 0x1a1   :  { %3391 = vmatprep.subr.bf16.mxu1 %v3390_v38  ;;  %v3410_v38 = vpack.c.bf16 %v812_v33, %v808_v30  ;;  %v876_v29 = vld [vmem:[%s7039_s1 + $0x1a38] sm:$0xff]  ;;  %v2286_v28 = vld [vmem:[%s7043_s5 + $0x10] sm:$0xff] }
 0x1a2   :  { %v3442_v33 = vpack.c.bf16 %v876_v29, %v872_v27  ;;  %v2290_v29 = vld [vmem:[%s7043_s5 + $0x30] sm:$0xff] }
 0x1a3   :  { %3489 = vmatpush1.bf16.msra.mxu0 %v3488_v42  ;;  %v2055_v42 = vld [vmem:[%s7041_s3 + $0x1b8] sm:$0xff] }
 0x1a4   :  { %3393 = vmatpush1.bf16.msra.mxu1 %v3392_v43  ;;  %3491 = vmatprep.subr.bf16.mxu0 %v3490_v46  ;;  %v3508_v43 = vpack.c.bf16 %v2050_v37, %v2048_v31  ;;  %v2052_v46 = vld [vmem:[%s7041_s3 + $0x1a0] sm:$0xff]  ;;  %v3510_v51 = vpack.c.bf16 %v2055_v42, %v2053_v41  ;;  %v884_v31 = vld [vmem:[%s7039_s1 + $0x1a78] sm:$0xff]  ;;  %v3448_v41 = vpack.c.bf16 %v883_v7, %v879_v39  ;;  %v887_v42 = vld [vmem:[%s7039_s1 + $0x1a90] sm:$0xff] }
 0x1a5   :  { %3395 = vmatprep.subr.bf16.mxu1 %v3394_v63  ;;  %v815_v63 = vld [vmem:[%s7039_s1 + $0x1850] sm:$0xff]  ;;  %v3512_v53 = vpack.c.bf16 %v2054_v48, %v2052_v46  ;;  %v3450_v46 = vpack.c.bf16 %v892_v40, %v888_v18  ;;  %v2311_v39 = vld [vmem:[%s7043_s5 + $0xd8] sm:$0xff]  ;;  %v905_v18 = vsub.s32 0, %v4025_v0 }
 0x1a6   :  { %v891_v48 = vld [vmem:[%s7039_s1 + $0x1ab0] sm:$0xff] }
 0x1a7   :  { %3493 = vmatpush1.bf16.msra.mxu0 %v3492_v54  ;;  %v3416_v54 = vpack.c.bf16 %v819_v49, %v815_v63  ;;  %v2056_v63 = vld [vmem:[%s7041_s3 + $0x1c0] sm:$0xff]  ;;  %v2058_v49 = vld [vmem:[%s7041_s3 + $0x1d0] sm:$0xff] }
 0x1a8   :  { %3397 = vmatpush1.bf16.msra.mxu1 %v3396_v58  ;;  %3495 = vmatprep.subr.bf16.mxu0 %v3494_v59  ;;  %v3418_v58 = vpack.c.bf16 %v828_v52, %v824_v14  ;;  %v827_v59 = vld [vmem:[%s7039_s1 + $0x18b0] sm:$0xff]  ;;  %v900_v14 = vld [vmem:[%s7039_s1 + $0x1af8] sm:$0xff]  ;;  %v3516_v52 = vpack.c.bf16 %v2058_v49, %v2056_v63 }
 0x1a9   :  { %3399 = vmatprep.subr.bf16.mxu1 %v3398_v62  ;;  %v831_v62 = vld [vmem:[%s7039_s1 + $0x18d0] sm:$0xff] }
 0x1aa   :  { %v3424_v4 = vpack.c.bf16 %v835_v1, %v831_v62 }
 0x1ab   :  { %3497 = vmatpush1.bf16.msra.mxu0 %v3496_v10  ;;  %v839_v10 = vld [vmem:[%s7039_s1 + $0x1910] sm:$0xff] }
 0x1ac   :  { %3401 = vmatpush1.bf16.msra.mxu1 %v3400_v6  ;;  %3499 = vmatprep.subr.bf16.mxu0 %v3498_v9  ;;  %v843_v6 = vld [vmem:[%s7039_s1 + $0x1930] sm:$0xff]  ;;  %v852_v9 = vld [vmem:[%s7039_s1 + $0x1978] sm:$0xff] }
 0x1ad   :  { %3403 = vmatprep.subr.bf16.mxu1 %v3402_v13  ;;  %v3428_v11 = vpack.c.bf16 %v843_v6, %v839_v10  ;;  %v3430_v12 = vpack.c.bf16 %v852_v9, %v848_v8  ;;  %v847_v13 = vld [vmem:[%s7039_s1 + $0x1950] sm:$0xff]  ;;  %v2300_v10 = vld [vmem:[%s7043_s5 + $0x80] sm:$0xff]  ;;  %v2301_v6 = vld [vmem:[%s7043_s5 + $0x88] sm:$0xff] }
 0x1ae   :  { %v3432_v19 = vpack.c.bf16 %v851_v15, %v847_v13  ;;  %v2284_v8 = vld [vmem:[%s7043_s5] sm:$0xff]  ;;  %v3586_v9 = vpack.c.bf16 %v2301_v6, %v2300_v10  ;;  %v2303_v13 = vld [vmem:[%s7043_s5 + $0x98] sm:$0xff] }
 0x1af   :  { %3501 = vmatpush1.bf16.msra.mxu0 %v3500_v21  ;;  %v855_v21 = vld [vmem:[%s7039_s1 + $0x1990] sm:$0xff]  ;;  %v2072_v6 = vld [vmem:[%s7041_s3 + $0x240] sm:$0xff] }
 0x1b0   :  { %3405 = vmatpush1.bf16.msra.mxu1 %v3404_v22  ;;  %3503 = vmatprep.subr.bf16.mxu0 %v3502_v24  ;;  %v859_v22 = vld [vmem:[%s7039_s1 + $0x19b0] sm:$0xff]  ;;  %v868_v24 = vld [vmem:[%s7039_s1 + $0x19f8] sm:$0xff] }
 0x1b1   :  { %3407 = vmatprep.subr.bf16.mxu1 %v3406_v60  ;;  %v3436_v25 = vpack.c.bf16 %v859_v22, %v855_v21  ;;  %v3438_v26 = vpack.c.bf16 %v868_v24, %v864_v23  ;;  %v863_v60 = vld [vmem:[%s7039_s1 + $0x19d0] sm:$0xff]  ;;  %v2305_v21 = vld [vmem:[%s7043_s5 + $0xa8] sm:$0xff]  ;;  %v2288_v24 = vld [vmem:[%s7043_s5 + $0x20] sm:$0xff] }
 0x1b2   :  { %v3440_v30 = vpack.c.bf16 %v867_v32, %v863_v60  ;;  %v2307_v60 = vld [vmem:[%s7043_s5 + $0xb8] sm:$0xff] }
 0x1b3   :  { %3505 = vmatpush1.bf16.msra.mxu0 %v3504_v34  ;;  %v871_v34 = vld [vmem:[%s7039_s1 + $0x1a10] sm:$0xff] }
 0x1b4   :  { %3409 = vmatpush1.bf16.msra.mxu1 %v3408_v35  ;;  %3507 = vmatprep.subr.bf16.mxu0 %v3506_v36  ;;  %v875_v35 = vld [vmem:[%s7039_s1 + $0x1a30] sm:$0xff]  ;;  %v880_v36 = vld [vmem:[%s7039_s1 + $0x1a58] sm:$0xff] }
 0x1b5   :  { %3411 = vmatprep.subr.bf16.mxu1 %v3410_v38  ;;  %v3444_v37 = vpack.c.bf16 %v875_v35, %v871_v34  ;;  %v3446_v38 = vpack.c.bf16 %v884_v31, %v880_v36  ;;  %v2309_v34 = vld [vmem:[%s7043_s5 + $0xc8] sm:$0xff]  ;;  %v2292_v31 = vld [vmem:[%s7043_s5 + $0x40] sm:$0xff] }
 0x1b7   :  { %1919 = vmatmul.mubr.f32.vlgmr.msra.gmra.mrb[2].mxu1 %v5789_v44  ;;  %3509 = vmatpush1.bf16.msra.mxu0 %v3508_v43  ;;  %v832_v44 = vld [vmem:[%s7039_s1 + $0x18d8] sm:$0xff]  ;;  %v2057_v43 = vld [vmem:[%s7041_s3 + $0x1c8] sm:$0xff] }
 0x1b8   :  { %3413 = vmatpush1.bf16.msra.mxu1 %v3412_v45  ;;  %2504 = vmatprep.mubr.msk.f32.mxu1 %vm999_vm0, %v4006_v56  ;;  %v3420_v56 = vpack.c.bf16 %v827_v59, %v823_v57  ;;  %v3422_v61 = vpack.c.bf16 %v836_v47, %v832_v44  ;;  %v2059_v45 = vld [vmem:[%s7041_s3 + $0x1d8] sm:$0xff]  ;;  %v899_v44 = vld [vmem:[%s7039_s1 + $0x1af0] sm:$0xff] }
 0x1b9   :  { %3415 = vmatprep.subr.bf16.mxu1 %v3414_v17  ;;  %3511 = vmatprep.subr.bf16.mxu0 %v3510_v51  ;;  %v3514_v17 = vpack.c.bf16 %v2059_v45, %v2057_v43  ;;  %v896_v51 = vld [vmem:[%s7039_s1 + $0x1ad8] sm:$0xff]  ;;  %v6740_v43 = vld [vmem:[%s7040_s2] sm:$0xf]  ;;  %v909_v45 = vsub.s32 1, %v4025_v0 }
 0x1ba   :  { %v2063_v57 = vld [vmem:[%s7041_s3 + $0x1f8] sm:$0xff]  ;;  %v3454_v59 = vpack.c.bf16 %v900_v14, %v896_v51  ;;  %v906_v63 = vrot.slane %v6740_v43, %v905_v18 }
 0x1bb   :  { %3513 = vmatpush1.bf16.msra.mxu0 %v3512_v53  ;;  %v3452_v53 = vpack.c.bf16 %v891_v48, %v887_v42  ;;  %v2295_v42 = vld [vmem:[%s7043_s5 + $0x58] sm:$0xff]  ;;  %v2313_v48 = vld [vmem:[%s7043_s5 + $0xe8] sm:$0xff]  ;;  %v910_v51 = vrot.slane %v6740_v43, %v909_v45 }
 0x1bc   :  { %3417 = vmatpush1.bf16.msra.mxu1 %v3416_v54  ;;  %3515 = vmatprep.subr.bf16.mxu0 %v3514_v17  ;;  %v895_v54 = vld [vmem:[%s7039_s1 + $0x1ad0] sm:$0xff] }
 0x1bd   :  { %3419 = vmatprep.subr.bf16.mxu1 %v3418_v58  ;;  %v2061_v58 = vld [vmem:[%s7041_s3 + $0x1e8] sm:$0xff]  ;;  %v3456_v1 = vpack.c.bf16 %v899_v44, %v895_v54 }
 0x1be   :  { %v3518_v47 = vpack.c.bf16 %v2063_v57, %v2061_v58  ;;  %v2064_v57 = vld [vmem:[%s7041_s3 + $0x200] sm:$0xff] }
 0x1bf   :  { %3517 = vmatpush1.bf16.msra.mxu0 %v3516_v52 }
 0x1c0   :  { %3421 = vmatpush1.bf16.msra.mxu1 %v3420_v56  ;;  %v2060_v56 = vld [vmem:[%s7041_s3 + $0x1e0] sm:$0xff]  ;;  %3519 = vmatprep.subr.bf16.mxu0 %v3518_v47  ;;  %v2069_v47 = vld [vmem:[%s7041_s3 + $0x228] sm:$0xff] }
 0x1c1   :  { %3423 = vmatprep.subr.bf16.mxu1 %v3422_v61  ;;  %v2062_v61 = vld [vmem:[%s7041_s3 + $0x1f0] sm:$0xff] }
 0x1c2   :  { %v3520_v62 = vpack.c.bf16 %v2062_v61, %v2060_v56  ;;  %v2071_v56 = vld [vmem:[%s7041_s3 + $0x238] sm:$0xff] }
 0x1c4   :  { %3425 = vmatpush1.bf16.msra.mxu1 %v3424_v4  ;;  %3521 = vmatpush1.bf16.msra.mxu0 %v3520_v62  ;;  %v3522_v4 = vpack.c.bf16 %v2067_v3, %v2065_v2  ;;  %v2068_v2 = vld [vmem:[%s7041_s3 + $0x220] sm:$0xff]  ;;  %v2073_v3 = vld [vmem:[%s7041_s3 + $0x248] sm:$0xff] }
 0x1c5   :  { %3427 = vmatprep.subr.bf16.mxu1 %v3426_v5  ;;  %v3682_v5 = vld.sshfl [vmem:[%s7038_s0 + $0x18] sm:$0x33 pattern:$0x76325410] }
 0x1c6   :  { %3523 = vmatprep.subr.bf16.mxu0 %v3522_v4  ;;  %v2075_v4 = vld [vmem:[%s7041_s3 + $0x258] sm:$0xff] }
 0x1c7   :  { %v3530_v10 = vpack.c.bf16 %v2075_v4, %v2073_v3  ;;  %v2113_v3 = vld [vmem:[%s7041_s3 + $0x388] sm:$0xff]  ;;  %v2115_v4 = vld [vmem:[%s7041_s3 + $0x398] sm:$0xff] }
 0x1c8   :  { %3429 = vmatpush1.bf16.msra.mxu1 %v3428_v11  ;;  %v2285_v11 = vld [vmem:[%s7043_s5 + $0x8] sm:$0xff] }
 0x1c9   :  { %3431 = vmatprep.subr.bf16.mxu1 %v3430_v12  ;;  %v2302_v12 = vld [vmem:[%s7043_s5 + $0x90] sm:$0xff]  ;;  %v3588_v15 = vpack.c.bf16 %v2285_v11, %v2284_v8  ;;  %v2079_v11 = vld [vmem:[%s7041_s3 + $0x278] sm:$0xff] }
 0x1ca   :  { %v3590_v16 = vpack.c.bf16 %v2303_v13, %v2302_v12  ;;  %v2074_v8 = vld [vmem:[%s7041_s3 + $0x250] sm:$0xff] }
 0x1cb   :  { %v3532_v12 = vpack.c.bf16 %v2074_v8, %v2072_v6  ;;  %v2112_v6 = vld [vmem:[%s7041_s3 + $0x380] sm:$0xff]  ;;  %v2114_v8 = vld [vmem:[%s7041_s3 + $0x390] sm:$0xff] }
 0x1cc   :  { %3433 = vmatpush1.bf16.msra.mxu1 %v3432_v19  ;;  %v2287_v19 = vld [vmem:[%s7043_s5 + $0x18] sm:$0xff] }
 0x1cd   :  { %3435 = vmatprep.subr.bf16.mxu1 %v3434_v20  ;;  %v2304_v20 = vld [vmem:[%s7043_s5 + $0xa0] sm:$0xff]  ;;  %v3592_v22 = vpack.c.bf16 %v2287_v19, %v2286_v28  ;;  %v2081_v28 = vld [vmem:[%s7041_s3 + $0x288] sm:$0xff]  ;;  %v2083_v19 = vld [vmem:[%s7041_s3 + $0x298] sm:$0xff] }
 0x1ce   :  { %v3594_v23 = vpack.c.bf16 %v2305_v21, %v2304_v20  ;;  %v3538_v21 = vpack.c.bf16 %v2083_v19, %v2081_v28  ;;  %v2121_v28 = vld [vmem:[%s7041_s3 + $0x3c8] sm:$0xff]  ;;  %v2123_v19 = vld [vmem:[%s7041_s3 + $0x3d8] sm:$0xff] }
 0x1d0   :  { %3437 = vmatpush1.bf16.msra.mxu1 %v3436_v25  ;;  %v2289_v25 = vld [vmem:[%s7043_s5 + $0x28] sm:$0xff] }
 0x1d1   :  { %3439 = vmatprep.subr.bf16.mxu1 %v3438_v26  ;;  %v2306_v26 = vld [vmem:[%s7043_s5 + $0xb0] sm:$0xff]  ;;  %v3596_v32 = vpack.c.bf16 %v2289_v25, %v2288_v24  ;;  %v2085_v24 = vld [vmem:[%s7041_s3 + $0x2a8] sm:$0xff]  ;;  %v2087_v25 = vld [vmem:[%s7041_s3 + $0x2b8] sm:$0xff] }
 0x1d2   :  { %v3598_v27 = vpack.c.bf16 %v2307_v60, %v2306_v26  ;;  %v3542_v60 = vpack.c.bf16 %v2087_v25, %v2085_v24  ;;  %v2125_v24 = vld [vmem:[%s7041_s3 + $0x3e8] sm:$0xff]  ;;  %v2127_v25 = vld [vmem:[%s7041_s3 + $0x3f8] sm:$0xff] }
 0x1d4   :  { %3441 = vmatpush1.bf16.msra.mxu1 %v3440_v30  ;;  %v2291_v30 = vld [vmem:[%s7043_s5 + $0x38] sm:$0xff] }
 0x1d5   :  { %3443 = vmatprep.subr.bf16.mxu1 %v3442_v33  ;;  %v2308_v33 = vld [vmem:[%s7043_s5 + $0xc0] sm:$0xff]  ;;  %v3600_v35 = vpack.c.bf16 %v2291_v30, %v2290_v29  ;;  %v2089_v29 = vld [vmem:[%s7041_s3 + $0x2c8] sm:$0xff]  ;;  %v2091_v30 = vld [vmem:[%s7041_s3 + $0x2d8] sm:$0xff] }
 0x1d6   :  { %v3602_v36 = vpack.c.bf16 %v2309_v34, %v2308_v33  ;;  %v3546_v34 = vpack.c.bf16 %v2091_v30, %v2089_v29  ;;  %v913_v30 = vsub.s32 2, %v4025_v0 }
 0x1d8   :  { %3445 = vmatpush1.bf16.msra.mxu1 %v3444_v37  ;;  %v2293_v37 = vld [vmem:[%s7043_s5 + $0x48] sm:$0xff] }
 0x1d9   :  { %3447 = vmatprep.subr.bf16.mxu1 %v3446_v38  ;;  %v2310_v38 = vld [vmem:[%s7043_s5 + $0xd0] sm:$0xff]  ;;  %v3604_v7 = vpack.c.bf16 %v2293_v37, %v2292_v31  ;;  %v2093_v31 = vld [vmem:[%s7041_s3 + $0x2e8] sm:$0xff]  ;;  %v2095_v37 = vld [vmem:[%s7041_s3 + $0x2f8] sm:$0xff] }
 0x1da   :  { %v3606_v40 = vpack.c.bf16 %v2311_v39, %v2310_v38  ;;  %v3550_v39 = vpack.c.bf16 %v2095_v37, %v2093_v31 }
 0x1dc   :  { %3449 = vmatpush1.bf16.msra.mxu1 %v3448_v41  ;;  %v2294_v41 = vld [vmem:[%s7043_s5 + $0x50] sm:$0xff] }
 0x1dd   :  { %3451 = vmatprep.subr.bf16.mxu1 %v3450_v46  ;;  %v2312_v46 = vld [vmem:[%s7043_s5 + $0xe0] sm:$0xff]  ;;  %v3608_v17 = vpack.c.bf16 %v2295_v42, %v2294_v41  ;;  %v2097_v41 = vld [vmem:[%s7041_s3 + $0x308] sm:$0xff]  ;;  %v2099_v42 = vld [vmem:[%s7041_s3 + $0x318] sm:$0xff] }
 0x1de   :  { %v3610_v49 = vpack.c.bf16 %v2313_v48, %v2312_v46  ;;  %v3554_v48 = vpack.c.bf16 %v2099_v42, %v2097_v41  ;;  %v2297_v41 = vld [vmem:[%s7043_s5 + $0x68] sm:$0xff] }
 0x1e0   :  { %3453 = vmatpush1.bf16.msra.mxu1 %v3452_v53 }
 0x1e1   :  { %3455 = vmatprep.subr.bf16.mxu1 %v3454_v59  ;;  %v2066_v59 = vld [vmem:[%s7041_s3 + $0x210] sm:$0xff] }
 0x1e4   :  { %3457 = vmatpush1.bf16.msra.mxu1 %v3456_v1  ;;  %v3526_v1 = vpack.c.bf16 %v2071_v56, %v2069_v47  ;;  %v2104_v47 = vld [vmem:[%s7041_s3 + $0x340] sm:$0xff]  ;;  %v2106_v56 = vld [vmem:[%s7041_s3 + $0x350] sm:$0xff] }
 0x1e5   :  { %3587 = vmatprep.subr.bf16.mxu1 %v3586_v9  ;;  %v2077_v9 = vld [vmem:[%s7041_s3 + $0x268] sm:$0xff] }
 0x1e6   :  { %v3534_v13 = vpack.c.bf16 %v2079_v11, %v2077_v9  ;;  %v2117_v9 = vld [vmem:[%s7041_s3 + $0x3a8] sm:$0xff]  ;;  %v2119_v11 = vld [vmem:[%s7041_s3 + $0x3b8] sm:$0xff] }
 0x1e7   :  { %1990 = vmatmul.mubr.f32.vlgmr.msra.gmra.mrb[2].mxu1 %v3682_v5 }
 0x1e8   :  { %3589 = vmatpush3.bf16.msra.mxu1 %v3588_v15  ;;  %v2076_v15 = vld [vmem:[%s7041_s3 + $0x260] sm:$0xff] }
 0x1e9   :  { %3591 = vmatprep.subr.bf16.mxu1 %v3590_v16  ;;  %v2078_v16 = vld [vmem:[%s7041_s3 + $0x270] sm:$0xff] }
 0x1ea   :  { %v3536_v20 = vpack.c.bf16 %v2078_v16, %v2076_v15  ;;  %v2116_v15 = vld [vmem:[%s7041_s3 + $0x3a0] sm:$0xff]  ;;  %v2118_v16 = vld [vmem:[%s7041_s3 + $0x3b0] sm:$0xff] }
 0x1ec   :  { %3593 = vmatpush3.bf16.msra.mxu1 %v3592_v22  ;;  %v2080_v22 = vld [vmem:[%s7041_s3 + $0x280] sm:$0xff] }
 0x1ed   :  { %3595 = vmatprep.subr.bf16.mxu1 %v3594_v23  ;;  %v2082_v23 = vld [vmem:[%s7041_s3 + $0x290] sm:$0xff] }
 0x1ee   :  { %v3540_v26 = vpack.c.bf16 %v2082_v23, %v2080_v22  ;;  %v2120_v22 = vld [vmem:[%s7041_s3 + $0x3c0] sm:$0xff]  ;;  %v2122_v23 = vld [vmem:[%s7041_s3 + $0x3d0] sm:$0xff] }
 0x1f0   :  { %3597 = vmatpush3.bf16.msra.mxu1 %v3596_v32  ;;  %v2084_v32 = vld [vmem:[%s7041_s3 + $0x2a0] sm:$0xff] }
 0x1f1   :  { %3599 = vmatprep.subr.bf16.mxu1 %v3598_v27  ;;  %v2086_v27 = vld [vmem:[%s7041_s3 + $0x2b0] sm:$0xff] }
 0x1f2   :  { %v3544_v33 = vpack.c.bf16 %v2086_v27, %v2084_v32  ;;  %v2124_v32 = vld [vmem:[%s7041_s3 + $0x3e0] sm:$0xff]  ;;  %v2126_v27 = vld [vmem:[%s7041_s3 + $0x3f0] sm:$0xff] }
 0x1f3   :  { %v3584_v29 = vpack.c.bf16 %v2126_v27, %v2124_v32 }
 0x1f4   :  { %3601 = vmatpush3.bf16.msra.mxu1 %v3600_v35  ;;  %v2088_v35 = vld [vmem:[%s7041_s3 + $0x2c0] sm:$0xff] }
 0x1f5   :  { %3603 = vmatprep.subr.bf16.mxu1 %v3602_v36  ;;  %v2090_v36 = vld [vmem:[%s7041_s3 + $0x2d0] sm:$0xff] }
 0x1f6   :  { %v3548_v38 = vpack.c.bf16 %v2090_v36, %v2088_v35 }
 0x1f8   :  { %3605 = vmatpush3.bf16.msra.mxu1 %v3604_v7  ;;  %v2092_v7 = vld [vmem:[%s7041_s3 + $0x2e0] sm:$0xff] }
 0x1f9   :  { %3607 = vmatprep.subr.bf16.mxu1 %v3606_v40  ;;  %v2094_v40 = vld [vmem:[%s7041_s3 + $0x2f0] sm:$0xff] }
 0x1fa   :  { %v3552_v46 = vpack.c.bf16 %v2094_v40, %v2092_v7  ;;  %v2296_v40 = vld [vmem:[%s7043_s5 + $0x60] sm:$0xff] }
 0x1fb   :  { %v3612_v42 = vpack.c.bf16 %v2297_v41, %v2296_v40 }
 0x1fc   :  { %3609 = vmatpush3.bf16.msra.mxu1 %v3608_v17  ;;  %v2096_v17 = vld [vmem:[%s7041_s3 + $0x300] sm:$0xff] }
 0x1fd   :  { %3611 = vmatprep.subr.bf16.mxu1 %v3610_v49  ;;  %v2101_v49 = vld [vmem:[%s7041_s3 + $0x328] sm:$0xff] }
 0x200   :  { %3613 = vmatpush3.bf16.msra.mxu1 %v3612_v42 }
 0x259   :  { %v1423_v14 = vpop.f32.mrb[0].mxu0 }
 0x25a   :  { %v3642_v52 = vadd.f32 %v1423_v14, %v906_v63  ;;  %v1425_v53 = vpop.f32.mrb[1].mxu0  ;;  %v2098_v63 = vld [vmem:[%s7041_s3 + $0x310] sm:$0xff] }
 0x25b   :  { %v3644_v54 = vadd.f32 %v1425_v53, %v910_v51  ;;  %v2103_v51 = vld [vmem:[%s7041_s3 + $0x338] sm:$0xff]  ;;  %v3556_v14 = vpack.c.bf16 %v2098_v63, %v2096_v17  ;;  %v2100_v53 = vld [vmem:[%s7041_s3 + $0x320] sm:$0xff]  ;;  %v2298_v17 = vld [vmem:[%s7043_s5 + $0x70] sm:$0xff] }
 0x25c   :  { %v3643_v58 = vadd.f32 %v3642_v52, %v5462_v50  ;;  %v3524_v50 = vpack.c.bf16 %v2066_v59, %v2064_v57  ;;  %v3558_v52 = vpack.c.bf16 %v2103_v51, %v2101_v49  ;;  %v2107_v57 = vld [vmem:[%s7041_s3 + $0x358] sm:$0xff]  ;;  %v3708_v51 = vmov 0.0|0.0  }
 0x25d   :  { %v3645_v44 = vadd.f32 %v3644_v54, %v5470_v55  ;;  %v2070_v55 = vld [vmem:[%s7041_s3 + $0x230] sm:$0xff]  ;;  %v2299_v63 = vld [vmem:[%s7043_s5 + $0x78] sm:$0xff] }
 0x25e   :  { %v1996_v62 = vmax.f32 %v3643_v58, 0.0  ;;  %v3528_v5 = vpack.c.bf16 %v2070_v55, %v2068_v2  ;;  %v2102_v54 = vld [vmem:[%s7041_s3 + $0x330] sm:$0xff]  ;;  %v2105_v58 = vld [vmem:[%s7041_s3 + $0x348] sm:$0xff]  ;;  %v2108_v2 = vld [vmem:[%s7041_s3 + $0x360] sm:$0xff]  ;;  %v3616_v49 = vpack.c.bf16 %v2299_v63, %v2298_v17 }
 0x25f   :  { %v1997_v61 = vmax.f32 %v3645_v44, 0.0  ;;  %v3560_v59 = vpack.c.bf16 %v2102_v54, %v2100_v53  ;;  %v3562_v44 = vpack.c.bf16 %v2107_v57, %v2105_v58  ;;  %v2110_v55 = vld [vmem:[%s7041_s3 + $0x370] sm:$0xff] }
 0x261   :  { %2204 = vmatprep.mubr.f32.mxu0 %v1997_v61  ;;  %v2109_v61 = vld [vmem:[%s7041_s3 + $0x368] sm:$0xff] }
 0x262   :  { %2205 = vmatmul.mubr.f32.vlgmr.msra.gmra.mrb[2].mxu0 %v1996_v62  ;;  %v3564_v62 = vpack.c.bf16 %v2106_v56, %v2104_v47 }
 0x263   :  { %3525 = vmatpush1.bf16.msra.mxu0 %v3524_v50  ;;  %v2111_v50 = vld [vmem:[%s7041_s3 + $0x378] sm:$0xff] }
 0x264   :  { %3527 = vmatprep.subr.bf16.mxu0 %v3526_v1  ;;  %v3566_v1 = vpack.c.bf16 %v2111_v50, %v2109_v61 }
 0x267   :  { %3529 = vmatpush1.bf16.msra.mxu0 %v3528_v5  ;;  %v3568_v5 = vpack.c.bf16 %v2110_v55, %v2108_v2  ;;  %v2400_v55 = vld [vmem:[%s7045_s7 + $0x30] sm:$0xff] }
 0x268   :  { %3531 = vmatprep.subr.bf16.mxu0 %v3530_v10  ;;  %v3570_v10 = vpack.c.bf16 %v2115_v4, %v2113_v3  ;;  %v2401_v3 = vld [vmem:[%s7045_s7 + $0x38] sm:$0xff] }
 0x269   :  { %v3628_v4 = vpack.c.bf16 %v2401_v3, %v2400_v55 }
 0x26b   :  { %3533 = vmatpush1.bf16.msra.mxu0 %v3532_v12  ;;  %v3572_v12 = vpack.c.bf16 %v2114_v8, %v2112_v6  ;;  %v2404_v8 = vld [vmem:[%s7045_s7 + $0x50] sm:$0xff] }
 0x26c   :  { %3535 = vmatprep.subr.bf16.mxu0 %v3534_v13  ;;  %v3574_v13 = vpack.c.bf16 %v2119_v11, %v2117_v9  ;;  %v2405_v9 = vld [vmem:[%s7045_s7 + $0x58] sm:$0xff] }
 0x26d   :  { %v3634_v11 = vpack.c.bf16 %v2405_v9, %v2404_v8 }
 0x26f   :  { %3537 = vmatpush1.bf16.msra.mxu0 %v3536_v20  ;;  %v3576_v20 = vpack.c.bf16 %v2118_v16, %v2116_v15  ;;  %v2408_v16 = vld [vmem:[%s7045_s7 + $0x70] sm:$0xff] }
 0x270   :  { %3539 = vmatprep.subr.bf16.mxu0 %v3538_v21  ;;  %v3578_v21 = vpack.c.bf16 %v2123_v19, %v2121_v28  ;;  %v2409_v28 = vld [vmem:[%s7045_s7 + $0x78] sm:$0xff] }
 0x271   :  { %v3640_v19 = vpack.c.bf16 %v2409_v28, %v2408_v16 }
 0x273   :  { %3541 = vmatpush1.bf16.msra.mxu0 %v3540_v26  ;;  %v3580_v26 = vpack.c.bf16 %v2122_v23, %v2120_v22  ;;  %v2505_v22 = vld [vmem:[%s7044_s6] ss:$0 sm:$0xff] }
 0x274   :  { %3543 = vmatprep.subr.bf16.mxu0 %v3542_v60  ;;  %v3582_v60 = vpack.c.bf16 %v2127_v25, %v2125_v24 }
 0x277   :  { %3545 = vmatpush1.bf16.msra.mxu0 %v3544_v33  ;;  %v917_v33 = vsub.s32 3, %v4025_v0  ;;  %v2396_v0 = vld [vmem:[%s7045_s7 + $0x10] sm:$0xff] }
 0x278   :  { %3547 = vmatprep.subr.bf16.mxu0 %v3546_v34  ;;  %v914_v34 = vrot.slane %v6740_v43, %v913_v30 }
 0x279   :  { %v918_v35 = vrot.slane %v6740_v43, %v917_v33  ;;  %v2314_v43 = vld [vmem:[%s7043_s5 + $0xf0] sm:$0xff] }
 0x27b   :  { %3549 = vmatpush1.bf16.msra.mxu0 %v3548_v38 }
 0x27c   :  { %3551 = vmatprep.subr.bf16.mxu0 %v3550_v39 }
 0x27f   :  { %3553 = vmatpush1.bf16.msra.mxu0 %v3552_v46  ;;  %v2315_v46 = vld [vmem:[%s7043_s5 + $0xf8] sm:$0xff] }
 0x280   :  { %3555 = vmatprep.subr.bf16.mxu0 %v3554_v48  ;;  %v3614_v48 = vpack.c.bf16 %v2315_v46, %v2314_v43 }
 0x282   :  { %3615 = vmatprep.subr.bf16.mxu1 %v3614_v48 }
 0x283   :  { %3557 = vmatpush1.bf16.msra.mxu0 %v3556_v14  ;;  %3617 = vmatpush3.bf16.msra.mxu1 %v3616_v49  ;;  %v2128_v14 = vld [vmem:[%s7042_s4] sm:$0x3] }
 0x284   :  { %3559 = vmatprep.subr.bf16.mxu0 %v3558_v52  ;;  %3618 = vmatprep.subr.bf16.mxu1 %v3708_v51  ;;  %v2133_v52 = vrot.slane %v2128_v14, %v905_v18  ;;  %v2137_v53 = vrot.slane %v2128_v14, %v909_v45  ;;  %v2397_v18 = vld [vmem:[%s7045_s7 + $0x18] sm:$0xff] }
 0x285   :  { %v3622_v45 = vpack.c.bf16 %v2397_v18, %v2396_v0 }
 0x287   :  { %3561 = vmatpush1.bf16.msra.mxu0 %v3560_v59  ;;  %v2394_v59 = vld [vmem:[%s7045_s7] sm:$0xff] }
 0x288   :  { %3563 = vmatprep.subr.bf16.mxu0 %v3562_v44  ;;  %v2395_v44 = vld [vmem:[%s7045_s7 + $0x8] sm:$0xff] }
 0x289   :  { %v3619_v61 = vpack.c.bf16 %v2395_v44, %v2394_v59 }
 0x28b   :  { %3565 = vmatpush1.bf16.msra.mxu0 %v3564_v62  ;;  %v2398_v62 = vld [vmem:[%s7045_s7 + $0x20] sm:$0xff] }
 0x28c   :  { %3567 = vmatprep.subr.bf16.mxu0 %v3566_v1  ;;  %v2399_v1 = vld [vmem:[%s7045_s7 + $0x28] sm:$0xff] }
 0x28d   :  { %v3625_v2 = vpack.c.bf16 %v2399_v1, %v2398_v62 }
 0x28f   :  { %3569 = vmatpush1.bf16.msra.mxu0 %v3568_v5  ;;  %v2402_v5 = vld [vmem:[%s7045_s7 + $0x40] sm:$0xff] }
 0x290   :  { %3571 = vmatprep.subr.bf16.mxu0 %v3570_v10  ;;  %v2403_v10 = vld [vmem:[%s7045_s7 + $0x48] sm:$0xff] }
 0x291   :  { %v3631_v6 = vpack.c.bf16 %v2403_v10, %v2402_v5 }
 0x293   :  { %3573 = vmatpush1.bf16.msra.mxu0 %v3572_v12  ;;  %v2406_v12 = vld [vmem:[%s7045_s7 + $0x60] sm:$0xff] }
 0x294   :  { %3575 = vmatprep.subr.bf16.mxu0 %v3574_v13  ;;  %v2407_v13 = vld [vmem:[%s7045_s7 + $0x68] sm:$0xff]  ;;  %s3711_s7 = smov [#allocation2]  }
 0x295   :  { %v3637_v15 = vpack.c.bf16 %v2407_v13, %v2406_v12  ;;  %s2494_s2 = sshll.u32 %s3711_s7, 4  ;;  %s2495_s2 = int_to_ptr.vmem [resolvable:$true] %s2494_s2 }
 0x296   :  { %s3683_s17 = scalar_lea.vmem %s2495_s2, 32  ;;  %p3688_p1 = scmp.lt.s32.totalorder %s2495_s2, %s2495_s2 }
 0x297   :  { %3577 = vmatpush1.bf16.msra.mxu0 %v3576_v20  ;;  %v3710_v20 = vmov 0.0   ;;  %p3684_p0 = scmp.ne.s32.totalorder %s2495_s2, %s3683_s17  ;;  %p3689_p2 = scmp.lt.s32.totalorder %s3683_s17, %s3683_s17 }
 0x298   :  { %3579 = vmatprep.subr.bf16.mxu0 %v3578_v21 }
 0x299   :  { %p3690_p3 = por %p3689_p2, %p3688_p1 }
 0x29b   :  { %3581 = vmatpush1.bf16.msra.mxu0 %v3580_v26  ;;  %p3691_p4 = pnand %p3690_p3, %p3684_p0 }
 0x29c   :  { %3583 = vmatprep.subr.bf16.mxu0 %v3582_v60  ;;  %v2506_v60 = vld [vmem:[%s7046_s8] ss:$0 sm:$0xff] }
 0x29f   :  { %3585 = vmatpush1.bf16.msra.mxu0 %v3584_v29 }
 0x2ba   :  { %v1991_v36 = vpop.f32.mrb[2].mxu1 }
 0x2bb   :  { %v3646_v31 = vadd.f32 %v1991_v36, %v914_v34  ;;  %v1993_v37 = vpop.f32.mrb[3].mxu1 }
 0x2bc   :  { %v3647_v38 = vadd.f32 %v1993_v37, %v918_v35 }
 0x2bd   :  { %v1998_v7 = vmax.f32 %v3646_v31, 0.0 }
 0x2be   :  { %v1999_v39 = vmax.f32 %v3647_v38, 0.0 }
 0x2c0   :  { %2275 = vmatprep.mubr.f32.mxu0 %v1999_v39 }
 0x2c1   :  { %2276 = vmatmul.mubr.f32.vlgmr.msra.gmra.mrb[2].mxu0 %v1998_v7 }
 0x394   :  { %v2277_v54 = vpop.f32.mrb[2].mxu0 }
 0x395   :  { %v3648_v58 = vadd.f32 %v2277_v54, %v2133_v52  ;;  %v2279_v57 = vpop.f32.mrb[3].mxu0 }
 0x396   :  { %v3649_v47 = vadd.f32 %v2279_v57, %v2137_v53 }
 0x397   :  { %v2282_v50 = vmax.f32 %v3648_v58, 0.0 }
 0x398   :  { %v2283_v56 = vmax.f32 %v3649_v47, 0.0 }
 0x39a   :  { %2387 = vmatprep.mubr.f32.mxu1 %v2283_v56 }
 0x39b   :  { %2388 = vmatmul.mubr.f32.vlgmr.msra.gmra.mrb[4].mxu1 %v2282_v50 }
 0x39c   :  { %3620 = vmatpush3.bf16.msra.mxu1 %v3619_v61  ;;  %2591 = vmatprep.mubr.msk.f32.mxu1 %vm3709_vm1, %v3710_v20 }
 0x39d   :  { %3621 = vmatprep.subr.bf16.mxu1 %v3708_v51 }
 0x3a0   :  { %3623 = vmatpush3.bf16.msra.mxu1 %v3622_v45 }
 0x3a1   :  { %3624 = vmatprep.subr.bf16.mxu1 %v3708_v51 }
 0x3a4   :  { %3626 = vmatpush3.bf16.msra.mxu1 %v3625_v2 }
 0x3a5   :  { %3627 = vmatprep.subr.bf16.mxu1 %v3708_v51 }
 0x3a8   :  { %3629 = vmatpush3.bf16.msra.mxu1 %v3628_v4 }
 0x3a9   :  { %3630 = vmatprep.subr.bf16.mxu1 %v3708_v51 }
 0x3ac   :  { %3632 = vmatpush3.bf16.msra.mxu1 %v3631_v6 }
 0x3ad   :  { %3633 = vmatprep.subr.bf16.mxu1 %v3708_v51 }
 0x3b0   :  { %3635 = vmatpush3.bf16.msra.mxu1 %v3634_v11 }
 0x3b1   :  { %3636 = vmatprep.subr.bf16.mxu1 %v3708_v51 }
 0x3b4   :  { %3638 = vmatpush3.bf16.msra.mxu1 %v3637_v15 }
 0x3b5   :  { %3639 = vmatprep.subr.bf16.mxu1 %v3708_v51 }
 0x3b8   :  { %3641 = vmatpush3.bf16.msra.mxu1 %v3640_v19 }
 0x46e   :  { %v2539_v21 = vpop.f32.mrb[4].mxu1 }
 0x46f   :  { %v2540_v23 = vpop.f32.mrb[5].mxu1 }
 0x470   :  { %v2541_v24 = vadd.f32 %v2540_v23, %v2539_v21 }
 0x472   :  { %v2390_v25 = vadd.f32 %v2541_v24, %v2505_v22 }
 0x474   :  { %v2393_v26 = vmax.f32 %v2390_v25, 0.0 }
 0x476   :  { %2592 = vmatmul.mubr.f32.vlgmr.msra.gmra.mrb[6].mxu1 %v2393_v26 }
 0x549   :  { %v2483_v32 = vpop.f32.mrb[6].mxu1 }
 0x54a   :  { %v2484_v27 = vadd.f32 %v2506_v60, %v2483_v32  ;;  %v2593_v29 = vpop.f32.mrb[7].mxu1 }
 0x54c   :  { %2487 = vst [vmem:[#allocation2] sm:$0x3] %v2484_v27 }
 0x54d   :  { %3694 = shalt.err (!%p3691_p4)
}
 0x54e   :  { %s3695_s18 = scalar_lea.hbm %s7047_s9, 32 }
 0x54f   :  { %p3696_p5 = scmp.ne.s32.totalorder %s7047_s9, %s3695_s18  ;;  %p3699_p6 = scmp.lt.u32.totalorder %s3695_s18, %s7047_s9 }
 0x551   :  { %p3701_p7 = pnand %p3699_p6, %p3696_p5 }
 0x553   :  { %3704 = shalt.err (!%p3701_p7)
}
 0x554   :  { %2497 = dma.vmem_to_hbm [thread:$0]  %s2495_s2, 32, %s7047_s9, [#allocation3]  }
 0x555   :  { %3705 = dma.done.wait [#allocation3], 32  }
 0x556   :  { %3706 = vsyncadd [#allocation3], 4294967264 }
 0x557   :  { %2501 = vsyncpa [#allocation3], 1 }

</bundles_post_ra>
